<compile_context>
chip_gen: v5e
topology: v5e:2x2
jax: 0.10.0
libtpu: 0.0.40
codegen_flags: <defaults>
</compile_context>

<pallas_src>
import math
import numpy as np
import jax
import jax.numpy as jnp
from jax.experimental import pallas as pl
from jax.experimental.pallas import tpu as pltpu

# ---- model hyper-parameters (small, consistent with the module's structure) ----
EMBED_DIM = 32      # reference default 1936
NHEAD = 4           # reference default 8
DIM_FF = 64         # reference default 2048
ENC_LAYERS = 1      # local_attention depth
DEC_LAYERS = 3      # global_attention depth
LN_EPS = 1e-5
MASK_BIAS = -1e30


# --------------------------------------------------------------------------
# Fused kernel: one grid step = (one batch block) x (one encoder layer).
#   grid = (num_batch_blocks, num_layers); layer axis "arbitrary"; the y output block is
#   revisited across it so activations stay VMEM-resident for the whole layer sweep.
#   All weights arrive as full per-layer stacks with constant index maps (DMA'd once);
#   the kernel indexes them with ref[layer].
# --------------------------------------------------------------------------
def _make_stack_kernel(nhead, bb, lp, e):
    dh = e // nhead
    inv_h = 1.0 / nhead
    rows = bb * lp

    def layer_norm(t, g, b):
        mu = jnp.mean(t, axis=-1, keepdims=True)
        var = jnp.mean(jnp.square(t - mu), axis=-1, keepdims=True)
        return (t - mu) * jax.lax.rsqrt(var + LN_EPS) * g + b

    def kernel(x_ref, mbias_ref,
               wqkv_ref, bqkv_ref, wo_ref, w1_ref, b1_ref, w2_ref, vecs_ref,
               y_ref, attn_ref):
        layer = pl.program_id(1)

        # Seed the resident activation at the first layer of each batch block.
        @pl.when(layer == 0)
        def _init():
            y_ref[...] = x_ref[...]

        # Per-layer weight views; the whole stack is VMEM-resident (constant block index),
        # so these are cheap dynamic loads along the leading (layer) axis.
        wqkv = wqkv_ref[layer]          # [E, QKV_PAD] bf16 (Q columns pre-scaled by 1/sqrt(Dh))
        bqkv = bqkv_ref[layer]          # [1, QKV_PAD] f32
        wo = wo_ref[layer]              # [E, E] bf16
        w1 = w1_ref[layer]              # [E, DFF] bf16
        b1 = b1_ref[layer]              # [1, DFF] f32
        w2 = w2_ref[layer]              # [DFF, E] bf16
        vecs = vecs_ref[layer]          # [6, E] f32: bo, b2, g1, be1, g2, be2
        bo, b2 = vecs[0:1, :], vecs[1:2, :]
        g1, be1 = vecs[2:3, :], vecs[3:4, :]
        g2, be2 = vecs[4:5, :], vecs[5:6, :]

        x2 = y_ref[...].reshape(rows, e)             # f32 activations [Bb*L, E]
        x2b = x2.astype(jnp.bfloat16)
        mb = mbias_ref[...]                          # [Bb, 1, L] additive key mask

        # --- fused QKV in-projection: one MXU pass ---
        qkv = jnp.dot(x2b, wqkv, preferred_element_type=jnp.float32) + bqkv   # [rows, QKV_PAD]
        q = qkv[:, 0 * e:1 * e].reshape(bb, lp, nhead, dh)
        k = qkv[:, 1 * e:2 * e].reshape(bb, lp, nhead, dh)
        v = qkv[:, 2 * e:3 * e].reshape(bb, lp, nhead, dh)
        q3 = jnp.transpose(q, (0, 2, 1, 3)).reshape(bb * nhead, lp, dh).astype(jnp.bfloat16)
        k3 = jnp.transpose(k, (0, 2, 1, 3)).reshape(bb * nhead, lp, dh).astype(jnp.bfloat16)
        v3 = jnp.transpose(v, (0, 2, 1, 3)).reshape(bb * nhead, lp, dh).astype(jnp.bfloat16)

        # --- scores for all heads in one batched dot; mask + softmax done once (f32) ---
        s = jax.lax.dot_general(q3, k3, (((2,), (2,)), ((0,), (0,))),
                                preferred_element_type=jnp.float32)           # [Bb*H, L, L]
        s = s.reshape(bb, nhead, lp, lp) + mb[:, :, None, :]
        s = s - jnp.max(s, axis=-1, keepdims=True)
        p = jnp.exp(s)
        p = p / jnp.sum(p, axis=-1, keepdims=True)    # exact division (parity with reference)

        # averaged-over-heads attention weights (PyTorch default), lane-flattened writeback
        attn_ref[0] = (jnp.sum(p, axis=1) * inv_h).reshape(bb, lp * lp)

        # --- context + single out-projection matmul ---
        ctx = jax.lax.dot_general(p.reshape(bb * nhead, lp, lp).astype(jnp.bfloat16), v3,
                                  (((2,), (1,)), ((0,), (0,))),
                                  preferred_element_type=jnp.float32)         # [Bb*H, L, Dh]
        ctx = jnp.transpose(ctx.reshape(bb, nhead, lp, dh), (0, 2, 1, 3)).reshape(rows, e)
        proj = jnp.dot(ctx.astype(jnp.bfloat16), wo,
                       preferred_element_type=jnp.float32) + bo

        # residual + LayerNorm 1 (f32)
        src = layer_norm(x2 + proj, g1, be1)

        # feed-forward (bf16 operands, f32 accumulation)
        h1 = jnp.dot(src.astype(jnp.bfloat16), w1, preferred_element_type=jnp.float32) + b1
        h1 = jnp.maximum(h1, 0.0)
        h2 = jnp.dot(h1.astype(jnp.bfloat16), w2, preferred_element_type=jnp.float32) + b2

        # residual + LayerNorm 2 (f32)
        src = layer_norm(src + h2, g2, be2)
        y_ref[...] = src.reshape(bb, lp, e)

    return kernel


def encoder_stack_forward(x, mbias, packed, bblk):
    """Run the fused stack of all layers.

    x:      [B_pad, L_pad, E] f32 (padded, batch-first)
    mbias:  [B_pad, 1, L_pad] f32 additive key-padding bias (0 or -1e30)
    packed: dict of stacked per-layer weights (leading layer axis)
    Returns (y [B_pad, L_pad, E] f32, attn_flat [n_layers, B_pad, L_pad*L_pad] f32).
    """
    b_pad, lp, e = x.shape
    nl = packed["wqkv"].shape[0]
    qkv_pad = packed["wqkv"].shape[-1]
    dff = packed["w1"].shape[-1]
    n_bblk = b_pad // bblk

    kernel = _make_stack_kernel(NHEAD, bblk, lp, e)

    wkeys = ["wqkv", "bqkv", "wo", "w1", "b1", "w2", "vecs"]
    weights = [packed[k] for k in wkeys]

    def const_spec(a):
        nd = a.ndim
        return pl.BlockSpec(a.shape, lambda i, l, _nd=nd: (0,) * _nd)

    in_specs = ([pl.BlockSpec((bblk, lp, e), lambda i, l: (i, 0, 0)),
                 pl.BlockSpec((bblk, 1, lp), lambda i, l: (i, 0, 0))]
                + [const_spec(w) for w in weights])
    out_specs = (pl.BlockSpec((bblk, lp, e), lambda i, l: (i, 0, 0)),
                 pl.BlockSpec((1, bblk, lp * lp), lambda i, l: (l, i, 0)))
    out_shape = (jax.ShapeDtypeStruct((b_pad, lp, e), jnp.float32),
                 jax.ShapeDtypeStruct((nl, b_pad, lp * lp), jnp.float32))

    flops = 2 * nl * b_pad * lp * (e * qkv_pad + 2 * lp * e + e * e + 2 * e * dff)
    weight_bytes = sum(int(np.prod(w.shape)) * w.dtype.itemsize for w in weights)
    bytes_accessed = int(x.size * 4 + mbias.size * 4 + weight_bytes
                         + b_pad * lp * e * 4 + nl * b_pad * lp * lp * 4)

    # Explicit scoped-VMEM budget (v5e default is only 16 MiB); stay well under v7x's 64 MiB.
    block_bytes = 2 * bblk * lp * e * 4 + bblk * lp * 4 + bblk * lp * lp * 4
    vmem_limit = int(min(48 << 20, max(8 << 20, 4 * block_bytes + 2 * weight_bytes + (2 << 20))))

    y, attn = pl.pallas_call(
        kernel,
        grid=(n_bblk, nl),
        in_specs=in_specs,
        out_specs=out_specs,
        out_shape=out_shape,
        compiler_params=pltpu.CompilerParams(
            dimension_semantics=("parallel", "arbitrary"),
            vmem_limit_bytes=vmem_limit),
        cost_estimate=pl.CostEstimate(
            flops=int(flops),
            transcendentals=int(nl * b_pad * NHEAD * lp * lp),
            bytes_accessed=bytes_accessed),
    )(x, mbias, *weights)
    return y, attn


# --------------------------------------------------------------------------
# Weight stacking / packing (host side, one-time)
# --------------------------------------------------------------------------
def stack_and_pack_params(layer_params_list, nhead):
    """Stack per-layer params on a leading layer axis and pack them for the kernel.

    - Q/K/V in-projections fused into one [E, 3E] matrix, zero-padded to a 128 multiple;
      the 1/sqrt(Dh) score scale is folded into the Q columns and Q bias.
    - The six E-sized vectors (bo, b2, g1, be1, g2, be2) are packed into one [nl, 6, E].
    - Matmul weights stored bf16 (MXU operands); biases / LayerNorm params stay f32.
    """
    nl = len(layer_params_list)
    st = {k: jnp.stack([p[k] for p in layer_params_list], axis=0)
          for k in layer_params_list[0]}
    e = st["wq"].shape[-1]
    dh = e // nhead
    scale = 1.0 / math.sqrt(dh)

    qkv_dim = 3 * e
    qkv_pad = max(128, -(-qkv_dim // 128) * 128)
    wqkv = jnp.concatenate([st["wq"] * scale, st["wk"], st["wv"]], axis=-1)   # [nl, E, 3E]
    bqkv = jnp.concatenate([st["bq"] * scale, st["bk"], st["bv"]], axis=-1)   # [nl, 1, 3E]
    wqkv = jnp.pad(wqkv, ((0, 0), (0, 0), (0, qkv_pad - qkv_dim)))
    bqkv = jnp.pad(bqkv, ((0, 0), (0, 0), (0, qkv_pad - qkv_dim)))

    vecs = jnp.concatenate([st["bo"], st["b2"], st["g1"],
                            st["be1"], st["g2"], st["be2"]], axis=1)          # [nl, 6, E]

    return dict(
        wqkv=wqkv.astype(jnp.bfloat16),
        bqkv=bqkv.astype(jnp.float32),
        wo=st["wo"].astype(jnp.bfloat16),
        w1=st["w1"].astype(jnp.bfloat16),
        b1=st["b1"].astype(jnp.float32),
        w2=st["w2"].astype(jnp.bfloat16),
        vecs=vecs.astype(jnp.float32),
    )


# --------------------------------------------------------------------------
# transformer_img forward: host-side glue (grouping by im_idx) + fused stack
# --------------------------------------------------------------------------
def transformer_img_forward(features, im_idx, enc_params, dec_params):
    E = features.shape[1]
    im_idx_np = np.asarray(im_idx)
    feats_np = np.asarray(features)

    # data-dependent grouping (mirrors the reference's python loop) on host
    b = int(im_idx_np[-1] + 1)
    counts = np.array([(im_idx_np == i).sum() for i in range(b)])
    L = int(counts.max())            # == count of mode(im_idx)

    rel = np.zeros((b, L, E), np.float32)       # batch-first [B, L, E]
    masks = np.zeros((b, L), np.uint8)
    for i in range(b):
        c = int(counts[i])
        rel[i, :c, :] = feats_np[im_idx_np == i]
        masks[i, c:] = 1

    retain = [i for i in range(b) if counts[i] > 0]
    rel = rel[retain]
    masks = masks[retain]
    B = rel.shape[0]

    # pad L to a sublane multiple; pick a fat batch block (target ~512 matmul rows) so the
    # kernel is not per-grid-step-overhead bound; keep >=2 blocks when the batch is large
    # enough (v7x megacore), and round Bblk to a multiple of 8 in that case (block legality).
    L_pad = max(8, -(-L // 8) * 8)
    rows_target = 512
    bblk_want = max(1, -(-rows_target // L_pad))
    if 2 * bblk_want <= B:
        Bblk = -(-bblk_want // 8) * 8
        B_pad = -(-B // Bblk) * Bblk
    else:
        Bblk = B                      # single fat block covering the whole batch
        B_pad = B

    x = np.zeros((B_pad, L_pad, E), np.float32)
    x[:B, :L] = rel
    mpad = np.ones((B_pad, L_pad), np.uint8)    # padded rows/cols fully masked
    mpad[:B, :L] = masks
    mbias = np.where(mpad[:, None, :] == 1,
                     np.float32(MASK_BIAS), np.float32(0.0)).astype(np.float32)

    n_enc = len(enc_params)
    packed = stack_and_pack_params(list(enc_params) + list(dec_params), NHEAD)

    y, attn_flat = encoder_stack_forward(jnp.asarray(x, jnp.float32),
                                         jnp.asarray(mbias, jnp.float32),
                                         packed, Bblk)

    nl = attn_flat.shape[0]
    attn = attn_flat.reshape(nl, B_pad, L_pad, L_pad)
    local_w = attn[:n_enc, :B, :L, :L]           # [enc_layers, B, L, L]
    global_w = attn[n_enc:, :B, :L, :L]          # [dec_layers, B, L, L]

    # flatten batch-first output and drop padded rows
    # (matches reference permute(1,0,2).view(-1,E)[mask==0])
    flat = y[:B, :L, :].reshape(-1, E)
    keep_idx = np.where(masks.reshape(-1) == 0)[0]
    global_out = flat[keep_idx]
    return global_out, global_w, local_w


# --------------------------------------------------------------------------
# Deterministic parameter init (shapes follow TransformerEncoderLayer.__init__)
# --------------------------------------------------------------------------
def init_layer_params(key, embed_dim, dim_ff):
    ks = jax.random.split(key, 10)
    s = 0.05
    n = lambda k, shp: (jax.random.normal(k, shp, jnp.float32) * s)
    return dict(
        # attention in/out projections (stored [in, out] so kernel does x @ W)
        wq=n(ks[0], (embed_dim, embed_dim)), bq=n(ks[1], (1, embed_dim)),
        wk=n(ks[2], (embed_dim, embed_dim)), bk=n(ks[3], (1, embed_dim)),
        wv=n(ks[4], (embed_dim, embed_dim)), bv=n(ks[5], (1, embed_dim)),
        wo=n(ks[6], (embed_dim, embed_dim)), bo=jnp.zeros((1, embed_dim), jnp.float32),
        # feed-forward
        w1=n(ks[7], (embed_dim, dim_ff)), b1=jnp.zeros((1, dim_ff), jnp.float32),
        w2=n(ks[8], (dim_ff, embed_dim)), b2=jnp.zeros((1, embed_dim), jnp.float32),
        # layer norms (PyTorch default init)
        g1=jnp.ones((1, embed_dim), jnp.float32), be1=jnp.zeros((1, embed_dim), jnp.float32),
        g2=jnp.ones((1, embed_dim), jnp.float32), be2=jnp.zeros((1, embed_dim), jnp.float32),
    )


if __name__ == "__main__":
    key = jax.random.PRNGKey(0)
    kf, kenc, kdec = jax.random.split(key, 3)

    # small example: 8 features spread over 3 frames
    N = 8
    im_idx = np.array([0, 0, 0, 1, 1, 2, 2, 2], dtype=np.int32)
    features = jax.random.normal(kf, (N, EMBED_DIM), jnp.float32)

    enc_params = [init_layer_params(k, EMBED_DIM, DIM_FF)
                  for k in jax.random.split(kenc, ENC_LAYERS)]
    dec_params = [init_layer_params(k, EMBED_DIM, DIM_FF)
                  for k in jax.random.split(kdec, DEC_LAYERS)]

    g_out, g_w, l_w = transformer_img_forward(features, im_idx, enc_params, dec_params)
    jax.block_until_ready((g_out, g_w, l_w))

    assert g_out.shape == (N, EMBED_DIM)
    assert l_w.shape[0] == ENC_LAYERS and g_w.shape[0] == DEC_LAYERS
    assert bool(jnp.all(jnp.isfinite(g_out)))
    # attention rows over the (unmasked) keys should sum to ~1
    row_sums = jnp.sum(l_w, axis=-1)
    assert bool(jnp.all(jnp.abs(row_sums - 1.0) < 2e-2))
    print("KERNEL_OK")
</pallas_src>

<mosaic_0001>
module attributes {stable_mosaic.version = 11 : i64} {
  func.func @kernel(%arg0: i32, %arg1: i32, %arg2: memref<3x8x32xf32, #tpu.memory_space<vmem>>, %arg3: memref<3x1x8xf32, #tpu.memory_space<vmem>>, %arg4: memref<4x32x128xbf16, #tpu.memory_space<vmem>>, %arg5: memref<4x1x128xf32, #tpu.memory_space<vmem>>, %arg6: memref<4x32x32xbf16, #tpu.memory_space<vmem>>, %arg7: memref<4x32x64xbf16, #tpu.memory_space<vmem>>, %arg8: memref<4x1x64xf32, #tpu.memory_space<vmem>>, %arg9: memref<4x64x32xbf16, #tpu.memory_space<vmem>>, %arg10: memref<4x6x32xf32, #tpu.memory_space<vmem>>, %arg11: memref<3x8x32xf32, #tpu.memory_space<vmem>>, %arg12: memref<1x3x64xf32, #tpu.memory_space<vmem>>) attributes {dimension_semantics = [#tpu.dimension_semantics<parallel>, #tpu.dimension_semantics<arbitrary>], iteration_bounds = array<i64: 1, 4>, scalar_prefetch = 0 : i64, scratch_operands = 0 : i64, tpu.core_type = #tpu.core_type<tc>, window_params = [{transform_indices = @transform_0, window_bounds = array<i64: 3, 8, 32>}, {transform_indices = @transform_1, window_bounds = array<i64: 3, 1, 8>}, {pipeline_mode = #tpu.pipeline_mode<synchronous>, transform_indices = @transform_2, window_bounds = array<i64: 4, 32, 128>}, {pipeline_mode = #tpu.pipeline_mode<synchronous>, transform_indices = @transform_3, window_bounds = array<i64: 4, 1, 128>}, {pipeline_mode = #tpu.pipeline_mode<synchronous>, transform_indices = @transform_4, window_bounds = array<i64: 4, 32, 32>}, {pipeline_mode = #tpu.pipeline_mode<synchronous>, transform_indices = @transform_5, window_bounds = array<i64: 4, 32, 64>}, {pipeline_mode = #tpu.pipeline_mode<synchronous>, transform_indices = @transform_6, window_bounds = array<i64: 4, 1, 64>}, {pipeline_mode = #tpu.pipeline_mode<synchronous>, transform_indices = @transform_7, window_bounds = array<i64: 4, 64, 32>}, {pipeline_mode = #tpu.pipeline_mode<synchronous>, transform_indices = @transform_8, window_bounds = array<i64: 4, 6, 32>}, {transform_indices = @transform_9, window_bounds = array<i64: 3, 8, 32>}, {transform_indices = @transform_10, window_bounds = array<i64: 1, 3, 64>}]} {
    %c0_i32 = arith.constant 0 : i32
    %0 = arith.cmpi eq, %arg1, %c0_i32 : i32
    %1 = arith.extui %0 : i1 to i32
    %c0_i32_0 = arith.constant 0 : i32
    %2 = arith.cmpi ne, %1, %c0_i32_0 : i32
    scf.if %2 {
      %c0_46 = arith.constant 0 : index
      %c0_47 = arith.constant 0 : index
      %c0_48 = arith.constant 0 : index
      %141 = vector.load %arg2[%c0_46, %c0_47, %c0_48] : memref<3x8x32xf32, #tpu.memory_space<vmem>>, vector<3x8x32xf32>
      %c0_49 = arith.constant 0 : index
      %c0_50 = arith.constant 0 : index
      %c0_51 = arith.constant 0 : index
      %142 = vector.load %arg11[%c0_49, %c0_50, %c0_51] : memref<3x8x32xf32, #tpu.memory_space<vmem>>, vector<3x8x32xf32>
      tpu.vector_store %arg11[%c0_49, %c0_50, %c0_51], %141 {strides = array<i32>} : memref<3x8x32xf32, #tpu.memory_space<vmem>>, vector<3x8x32xf32>,
    } else {
    }
    %3 = arith.index_cast %arg1 : i32 to index
    %c0 = arith.constant 0 : index
    %c0_1 = arith.constant 0 : index
    %4 = vector.load %arg4[%3, %c0, %c0_1] : memref<4x32x128xbf16, #tpu.memory_space<vmem>>, vector<1x32x128xbf16>
    %5 = vector.shape_cast %4 : vector<1x32x128xbf16> to vector<32x128xbf16>
    %6 = arith.index_cast %arg1 : i32 to index
    %c0_2 = arith.constant 0 : index
    %c0_3 = arith.constant 0 : index
    %7 = vector.load %arg5[%6, %c0_2, %c0_3] : memref<4x1x128xf32, #tpu.memory_space<vmem>>, vector<1x1x128xf32>
    %8 = vector.shape_cast %7 : vector<1x1x128xf32> to vector<1x128xf32>
    %9 = arith.index_cast %arg1 : i32 to index
    %c0_4 = arith.constant 0 : index
    %c0_5 = arith.constant 0 : index
    %10 = vector.load %arg6[%9, %c0_4, %c0_5] : memref<4x32x32xbf16, #tpu.memory_space<vmem>>, vector<1x32x32xbf16>
    %11 = vector.shape_cast %10 : vector<1x32x32xbf16> to vector<32x32xbf16>
    %12 = arith.index_cast %arg1 : i32 to index
    %c0_6 = arith.constant 0 : index
    %c0_7 = arith.constant 0 : index
    %13 = vector.load %arg7[%12, %c0_6, %c0_7] : memref<4x32x64xbf16, #tpu.memory_space<vmem>>, vector<1x32x64xbf16>
    %14 = vector.shape_cast %13 : vector<1x32x64xbf16> to vector<32x64xbf16>
    %15 = arith.index_cast %arg1 : i32 to index
    %c0_8 = arith.constant 0 : index
    %c0_9 = arith.constant 0 : index
    %16 = vector.load %arg8[%15, %c0_8, %c0_9] : memref<4x1x64xf32, #tpu.memory_space<vmem>>, vector<1x1x64xf32>
    %17 = vector.shape_cast %16 : vector<1x1x64xf32> to vector<1x64xf32>
    %18 = arith.index_cast %arg1 : i32 to index
    %c0_10 = arith.constant 0 : index
    %c0_11 = arith.constant 0 : index
    %19 = vector.load %arg9[%18, %c0_10, %c0_11] : memref<4x64x32xbf16, #tpu.memory_space<vmem>>, vector<1x64x32xbf16>
    %20 = vector.shape_cast %19 : vector<1x64x32xbf16> to vector<64x32xbf16>
    %21 = arith.index_cast %arg1 : i32 to index
    %c0_12 = arith.constant 0 : index
    %c0_13 = arith.constant 0 : index
    %22 = vector.load %arg10[%21, %c0_12, %c0_13] : memref<4x6x32xf32, #tpu.memory_space<vmem>>, vector<1x6x32xf32>
    %23 = vector.shape_cast %22 : vector<1x6x32xf32> to vector<6x32xf32>
    %24 = vector.extract_strided_slice %23 {offsets = [0, 0], sizes = [1, 32], strides = [1, 1]} : vector<6x32xf32> to vector<1x32xf32>
    %25 = vector.extract_strided_slice %23 {offsets = [1, 0], sizes = [1, 32], strides = [1, 1]} : vector<6x32xf32> to vector<1x32xf32>
    %26 = vector.extract_strided_slice %23 {offsets = [2, 0], sizes = [1, 32], strides = [1, 1]} : vector<6x32xf32> to vector<1x32xf32>
    %27 = vector.extract_strided_slice %23 {offsets = [3, 0], sizes = [1, 32], strides = [1, 1]} : vector<6x32xf32> to vector<1x32xf32>
    %28 = vector.extract_strided_slice %23 {offsets = [4, 0], sizes = [1, 32], strides = [1, 1]} : vector<6x32xf32> to vector<1x32xf32>
    %29 = vector.extract_strided_slice %23 {offsets = [5, 0], sizes = [1, 32], strides = [1, 1]} : vector<6x32xf32> to vector<1x32xf32>
    %c0_14 = arith.constant 0 : index
    %c0_15 = arith.constant 0 : index
    %c0_16 = arith.constant 0 : index
    %30 = vector.load %arg11[%c0_14, %c0_15, %c0_16] : memref<3x8x32xf32, #tpu.memory_space<vmem>>, vector<3x8x32xf32>
    %31 = vector.shape_cast %30 : vector<3x8x32xf32> to vector<24x32xf32>
    %32 = arith.truncf %31 : vector<24x32xf32> to vector<24x32xbf16>
    %c0_17 = arith.constant 0 : index
    %c0_18 = arith.constant 0 : index
    %c0_19 = arith.constant 0 : index
    %33 = vector.load %arg3[%c0_17, %c0_18, %c0_19] : memref<3x1x8xf32, #tpu.memory_space<vmem>>, vector<3x1x8xf32>
    %cst = arith.constant dense<0.000000e+00> : vector<24x128xf32>
    %34 = tpu.matmul %32, %5, %cst {dimension_numbers = #tpu.dot_dimension_numbers<[1], [0], [0], [1], [0, 0, 1, 1], [], []>} : vector<24x32xbf16>, vector<32x128xbf16>, vector<24x128xf32> -> vector<24x128xf32>
    %35 = vector.broadcast %8 : vector<1x128xf32> to vector<24x128xf32>
    %36 = arith.addf %34, %35 : vector<24x128xf32>
    %37 = vector.extract_strided_slice %36 {offsets = [0, 0], sizes = [24, 32], strides = [1, 1]} : vector<24x128xf32> to vector<24x32xf32>
    %38 = vector.shape_cast %37 : vector<24x32xf32> to vector<3x8x4x8xf32>
    %39 = vector.extract_strided_slice %36 {offsets = [0, 32], sizes = [24, 32], strides = [1, 1]} : vector<24x128xf32> to vector<24x32xf32>
    %40 = vector.shape_cast %39 : vector<24x32xf32> to vector<3x8x4x8xf32>
    %41 = vector.extract_strided_slice %36 {offsets = [0, 64], sizes = [24, 32], strides = [1, 1]} : vector<24x128xf32> to vector<24x32xf32>
    %42 = vector.shape_cast %41 : vector<24x32xf32> to vector<3x8x4x8xf32>
    %43 = tpu.transpose %38, [0, 2, 1, 3] : vector<3x8x4x8xf32> -> vector<3x4x8x8xf32>
    %44 = vector.shape_cast %43 : vector<3x4x8x8xf32> to vector<12x8x8xf32>
    %45 = arith.truncf %44 : vector<12x8x8xf32> to vector<12x8x8xbf16>
    %46 = tpu.transpose %40, [0, 2, 1, 3] : vector<3x8x4x8xf32> -> vector<3x4x8x8xf32>
    %47 = vector.shape_cast %46 : vector<3x4x8x8xf32> to vector<12x8x8xf32>
    %48 = arith.truncf %47 : vector<12x8x8xf32> to vector<12x8x8xbf16>
    %49 = tpu.transpose %42, [0, 2, 1, 3] : vector<3x8x4x8xf32> -> vector<3x4x8x8xf32>
    %50 = vector.shape_cast %49 : vector<3x4x8x8xf32> to vector<12x8x8xf32>
    %51 = arith.truncf %50 : vector<12x8x8xf32> to vector<12x8x8xbf16>
    %cst_20 = arith.constant dense<0.000000e+00> : vector<12x8x8xf32>
    %52 = tpu.matmul %45, %48, %cst_20 {dimension_numbers = #tpu.dot_dimension_numbers<[2], [2], [1], [1], [0, 0, 0, 1, 1, 1], [0], [0]>} : vector<12x8x8xbf16>, vector<12x8x8xbf16>, vector<12x8x8xf32> -> vector<12x8x8xf32>
    %53 = vector.shape_cast %52 : vector<12x8x8xf32> to vector<3x4x8x8xf32>
    %54 = vector.shape_cast %33 : vector<3x1x8xf32> to vector<3x1x1x8xf32>
    %55 = vector.broadcast %54 : vector<3x1x1x8xf32> to vector<3x4x8x8xf32>
    %56 = arith.addf %53, %55 : vector<3x4x8x8xf32>
    %cst_21 = arith.constant dense<0xFF800000> : vector<3x4x8xf32>
    %57 = vector.multi_reduction <maximumf>, %56, %cst_21 [3] : vector<3x4x8x8xf32> to vector<3x4x8xf32>
    %58 = vector.shape_cast %57 : vector<3x4x8xf32> to vector<3x4x8x1xf32>
    %59 = vector.broadcast %58 : vector<3x4x8x1xf32> to vector<3x4x8x8xf32>
    %60 = arith.subf %56, %59 : vector<3x4x8x8xf32>
    %61 = math.exp %60 : vector<3x4x8x8xf32>
    %cst_22 = arith.constant dense<0.000000e+00> : vector<3x4x8xf32>
    %62 = vector.multi_reduction <add>, %61, %cst_22 [3] : vector<3x4x8x8xf32> to vector<3x4x8xf32>
    %63 = vector.shape_cast %62 : vector<3x4x8xf32> to vector<3x4x8x1xf32>
    %64 = vector.broadcast %63 : vector<3x4x8x1xf32> to vector<3x4x8x8xf32>
    %65 = arith.divf %61, %64 : vector<3x4x8x8xf32>
    %cst_23 = arith.constant dense<0.000000e+00> : vector<3x8x8xf32>
    %66 = vector.multi_reduction <add>, %65, %cst_23 [1] : vector<3x4x8x8xf32> to vector<3x8x8xf32>
    %cst_24 = arith.constant 2.500000e-01 : f32
    %67 = vector.broadcast %cst_24 : f32 to vector<3x8x8xf32>
    %68 = arith.mulf %66, %67 : vector<3x8x8xf32>
    %69 = vector.shape_cast %68 : vector<3x8x8xf32> to vector<3x64xf32>
    %c0_25 = arith.constant 0 : index
    %c0_26 = arith.constant 0 : index
    %c0_27 = arith.constant 0 : index
    %70 = vector.load %arg12[%c0_25, %c0_26, %c0_27] : memref<1x3x64xf32, #tpu.memory_space<vmem>>, vector<1x3x64xf32>
    %71 = vector.shape_cast %70 : vector<1x3x64xf32> to vector<3x64xf32>
    %72 = vector.shape_cast %69 : vector<3x64xf32> to vector<1x3x64xf32>
    tpu.vector_store %arg12[%c0_25, %c0_26, %c0_27], %72 {strides = array<i32>} : memref<1x3x64xf32, #tpu.memory_space<vmem>>, vector<1x3x64xf32>,
    %73 = vector.shape_cast %65 : vector<3x4x8x8xf32> to vector<12x8x8xf32>
    %74 = arith.truncf %73 : vector<12x8x8xf32> to vector<12x8x8xbf16>
    %cst_28 = arith.constant dense<0.000000e+00> : vector<12x8x8xf32>
    %75 = tpu.matmul %74, %51, %cst_28 {dimension_numbers = #tpu.dot_dimension_numbers<[2], [1], [1], [2], [0, 0, 0, 1, 1, 2], [0], [0]>} : vector<12x8x8xbf16>, vector<12x8x8xbf16>, vector<12x8x8xf32> -> vector<12x8x8xf32>
    %76 = vector.shape_cast %75 : vector<12x8x8xf32> to vector<3x4x8x8xf32>
    %77 = tpu.transpose %76, [0, 2, 1, 3] : vector<3x4x8x8xf32> -> vector<3x8x4x8xf32>
    %78 = vector.shape_cast %77 : vector<3x8x4x8xf32> to vector<24x32xf32>
    %79 = arith.truncf %78 : vector<24x32xf32> to vector<24x32xbf16>
    %cst_29 = arith.constant dense<0.000000e+00> : vector<24x32xf32>
    %80 = tpu.matmul %79, %11, %cst_29 {dimension_numbers = #tpu.dot_dimension_numbers<[1], [0], [0], [1], [0, 0, 1, 1], [], []>} : vector<24x32xbf16>, vector<32x32xbf16>, vector<24x32xf32> -> vector<24x32xf32>
    %81 = vector.broadcast %24 : vector<1x32xf32> to vector<24x32xf32>
    %82 = arith.addf %80, %81 : vector<24x32xf32>
    %83 = arith.addf %31, %82 : vector<24x32xf32>
    %cst_30 = arith.constant dense<0.000000e+00> : vector<24xf32>
    %84 = vector.multi_reduction <add>, %83, %cst_30 [1] : vector<24x32xf32> to vector<24xf32>
    %85 = vector.shape_cast %84 : vector<24xf32> to vector<24x1xf32>
    %cst_31 = arith.constant 3.200000e+01 : f32
    %86 = vector.broadcast %cst_31 : f32 to vector<24x1xf32>
    %87 = arith.divf %85, %86 : vector<24x1xf32>
    %88 = vector.broadcast %87 : vector<24x1xf32> to vector<24x32xf32>
    %89 = arith.subf %83, %88 : vector<24x32xf32>
    %90 = arith.mulf %89, %89 : vector<24x32xf32>
    %cst_32 = arith.constant dense<0.000000e+00> : vector<24xf32>
    %91 = vector.multi_reduction <add>, %90, %cst_32 [1] : vector<24x32xf32> to vector<24xf32>
    %92 = vector.shape_cast %91 : vector<24xf32> to vector<24x1xf32>
    %cst_33 = arith.constant 3.200000e+01 : f32
    %93 = vector.broadcast %cst_33 : f32 to vector<24x1xf32>
    %94 = arith.divf %92, %93 : vector<24x1xf32>
    %95 = vector.broadcast %87 : vector<24x1xf32> to vector<24x32xf32>
    %96 = arith.subf %83, %95 : vector<24x32xf32>
    %cst_34 = arith.constant 9.99999974E-6 : f32
    %97 = vector.broadcast %cst_34 : f32 to vector<24x1xf32>
    %98 = arith.addf %94, %97 : vector<24x1xf32>
    %99 = math.rsqrt %98 : vector<24x1xf32>
    %100 = vector.broadcast %99 : vector<24x1xf32> to vector<24x32xf32>
    %101 = arith.mulf %96, %100 : vector<24x32xf32>
    %102 = vector.broadcast %26 : vector<1x32xf32> to vector<24x32xf32>
    %103 = arith.mulf %101, %102 : vector<24x32xf32>
    %104 = vector.broadcast %27 : vector<1x32xf32> to vector<24x32xf32>
    %105 = arith.addf %103, %104 : vector<24x32xf32>
    %106 = arith.truncf %105 : vector<24x32xf32> to vector<24x32xbf16>
    %cst_35 = arith.constant dense<0.000000e+00> : vector<24x64xf32>
    %107 = tpu.matmul %106, %14, %cst_35 {dimension_numbers = #tpu.dot_dimension_numbers<[1], [0], [0], [1], [0, 0, 1, 1], [], []>} : vector<24x32xbf16>, vector<32x64xbf16>, vector<24x64xf32> -> vector<24x64xf32>
    %108 = vector.broadcast %17 : vector<1x64xf32> to vector<24x64xf32>
    %109 = arith.addf %107, %108 : vector<24x64xf32>
    %cst_36 = arith.constant 0.000000e+00 : f32
    %110 = vector.broadcast %cst_36 : f32 to vector<24x64xf32>
    %111 = arith.maximumf %109, %110 : vector<24x64xf32>
    %112 = arith.truncf %111 : vector<24x64xf32> to vector<24x64xbf16>
    %cst_37 = arith.constant dense<0.000000e+00> : vector<24x32xf32>
    %113 = tpu.matmul %112, %20, %cst_37 {dimension_numbers = #tpu.dot_dimension_numbers<[1], [0], [0], [1], [0, 0, 1, 1], [], []>} : vector<24x64xbf16>, vector<64x32xbf16>, vector<24x32xf32> -> vector<24x32xf32>
    %114 = vector.broadcast %25 : vector<1x32xf32> to vector<24x32xf32>
    %115 = arith.addf %113, %114 : vector<24x32xf32>
    %116 = arith.addf %105, %115 : vector<24x32xf32>
    %cst_38 = arith.constant dense<0.000000e+00> : vector<24xf32>
    %117 = vector.multi_reduction <add>, %116, %cst_38 [1] : vector<24x32xf32> to vector<24xf32>
    %118 = vector.shape_cast %117 : vector<24xf32> to vector<24x1xf32>
    %cst_39 = arith.constant 3.200000e+01 : f32
    %119 = vector.broadcast %cst_39 : f32 to vector<24x1xf32>
    %120 = arith.divf %118, %119 : vector<24x1xf32>
    %121 = vector.broadcast %120 : vector<24x1xf32> to vector<24x32xf32>
    %122 = arith.subf %116, %121 : vector<24x32xf32>
    %123 = arith.mulf %122, %122 : vector<24x32xf32>
    %cst_40 = arith.constant dense<0.000000e+00> : vector<24xf32>
    %124 = vector.multi_reduction <add>, %123, %cst_40 [1] : vector<24x32xf32> to vector<24xf32>
    %125 = vector.shape_cast %124 : vector<24xf32> to vector<24x1xf32>
    %cst_41 = arith.constant 3.200000e+01 : f32
    %126 = vector.broadcast %cst_41 : f32 to vector<24x1xf32>
    %127 = arith.divf %125, %126 : vector<24x1xf32>
    %128 = vector.broadcast %120 : vector<24x1xf32> to vector<24x32xf32>
    %129 = arith.subf %116, %128 : vector<24x32xf32>
    %cst_42 = arith.constant 9.99999974E-6 : f32
    %130 = vector.broadcast %cst_42 : f32 to vector<24x1xf32>
    %131 = arith.addf %127, %130 : vector<24x1xf32>
    %132 = math.rsqrt %131 : vector<24x1xf32>
    %133 = vector.broadcast %132 : vector<24x1xf32> to vector<24x32xf32>
    %134 = arith.mulf %129, %133 : vector<24x32xf32>
    %135 = vector.broadcast %28 : vector<1x32xf32> to vector<24x32xf32>
    %136 = arith.mulf %134, %135 : vector<24x32xf32>
    %137 = vector.broadcast %29 : vector<1x32xf32> to vector<24x32xf32>
    %138 = arith.addf %136, %137 : vector<24x32xf32>
    %139 = vector.shape_cast %138 : vector<24x32xf32> to vector<3x8x32xf32>
    %c0_43 = arith.constant 0 : index
    %c0_44 = arith.constant 0 : index
    %c0_45 = arith.constant 0 : index
    %140 = vector.load %arg11[%c0_43, %c0_44, %c0_45] : memref<3x8x32xf32, #tpu.memory_space<vmem>>, vector<3x8x32xf32>
    tpu.vector_store %arg11[%c0_43, %c0_44, %c0_45], %139 {strides = array<i32>} : memref<3x8x32xf32, #tpu.memory_space<vmem>>, vector<3x8x32xf32>,
    return
  }
  func.func @transform_0(%arg0: i32, %arg1: i32) -> (i32, i32, i32) {
    %c0_i32 = arith.constant 0 : i32
    %c0_i32_0 = arith.constant 0 : i32
    %c0_i32_1 = arith.constant 0 : i32
    return %arg0, %c0_i32, %c0_i32_0 : i32, i32, i32
  }
  func.func @transform_1(%arg0: i32, %arg1: i32) -> (i32, i32, i32) {
    %c0_i32 = arith.constant 0 : i32
    %c0_i32_0 = arith.constant 0 : i32
    %c0_i32_1 = arith.constant 0 : i32
    return %arg0, %c0_i32, %c0_i32_0 : i32, i32, i32
  }
  func.func @transform_2(%arg0: i32, %arg1: i32) -> (i32, i32, i32) {
    %c0_i32 = arith.constant 0 : i32
    %c0_i32_0 = arith.constant 0 : i32
    %c0_i32_1 = arith.constant 0 : i32
    %c0_i32_2 = arith.constant 0 : i32
    return %c0_i32, %c0_i32_0, %c0_i32_1 : i32, i32, i32
  }
  func.func @transform_3(%arg0: i32, %arg1: i32) -> (i32, i32, i32) {
    %c0_i32 = arith.constant 0 : i32
    %c0_i32_0 = arith.constant 0 : i32
    %c0_i32_1 = arith.constant 0 : i32
    %c0_i32_2 = arith.constant 0 : i32
    return %c0_i32, %c0_i32_0, %c0_i32_1 : i32, i32, i32
  }
  func.func @transform_4(%arg0: i32, %arg1: i32) -> (i32, i32, i32) {
    %c0_i32 = arith.constant 0 : i32
    %c0_i32_0 = arith.constant 0 : i32
    %c0_i32_1 = arith.constant 0 : i32
    %c0_i32_2 = arith.constant 0 : i32
    return %c0_i32, %c0_i32_0, %c0_i32_1 : i32, i32, i32
  }
  func.func @transform_5(%arg0: i32, %arg1: i32) -> (i32, i32, i32) {
    %c0_i32 = arith.constant 0 : i32
    %c0_i32_0 = arith.constant 0 : i32
    %c0_i32_1 = arith.constant 0 : i32
    %c0_i32_2 = arith.constant 0 : i32
    return %c0_i32, %c0_i32_0, %c0_i32_1 : i32, i32, i32
  }
  func.func @transform_6(%arg0: i32, %arg1: i32) -> (i32, i32, i32) {
    %c0_i32 = arith.constant 0 : i32
    %c0_i32_0 = arith.constant 0 : i32
    %c0_i32_1 = arith.constant 0 : i32
    %c0_i32_2 = arith.constant 0 : i32
    return %c0_i32, %c0_i32_0, %c0_i32_1 : i32, i32, i32
  }
  func.func @transform_7(%arg0: i32, %arg1: i32) -> (i32, i32, i32) {
    %c0_i32 = arith.constant 0 : i32
    %c0_i32_0 = arith.constant 0 : i32
    %c0_i32_1 = arith.constant 0 : i32
    %c0_i32_2 = arith.constant 0 : i32
    return %c0_i32, %c0_i32_0, %c0_i32_1 : i32, i32, i32
  }
  func.func @transform_8(%arg0: i32, %arg1: i32) -> (i32, i32, i32) {
    %c0_i32 = arith.constant 0 : i32
    %c0_i32_0 = arith.constant 0 : i32
    %c0_i32_1 = arith.constant 0 : i32
    %c0_i32_2 = arith.constant 0 : i32
    return %c0_i32, %c0_i32_0, %c0_i32_1 : i32, i32, i32
  }
  func.func @transform_9(%arg0: i32, %arg1: i32) -> (i32, i32, i32) {
    %c0_i32 = arith.constant 0 : i32
    %c0_i32_0 = arith.constant 0 : i32
    %c0_i32_1 = arith.constant 0 : i32
    return %arg0, %c0_i32, %c0_i32_0 : i32, i32, i32
  }
  func.func @transform_10(%arg0: i32, %arg1: i32) -> (i32, i32, i32) {
    %c0_i32 = arith.constant 0 : i32
    %c0_i32_0 = arith.constant 0 : i32
    return %arg1, %arg0, %c0_i32 : i32, i32, i32
  }
}

</mosaic_0001>

<bundles_post_ra>
// kernel: tpu_custom_call.1
= control target key start
LH: loop header
LB: loop body
LE: loop exit
PB: predicated region body
PF: predicated region fallthrough
CT: control target
= control target key end

     0   :  { %16 = vsyncpa [#allocation3], 0  ;;  %s3760_s13 = smov 0   ;;  %s3762_s14 = smov 0   ;;  %s4949_s0 = inlined_call_operand.vmem [shape: f32[3,8,32], index: 0, kind: input, shape index: {}]   ;;  %s4950_s1 = inlined_call_operand.vmem [shape: f32[3,1,8], index: 1, kind: input, shape index: {}]   ;;  %s4951_s2 = inlined_call_operand.vmem [shape: bf16[4,32,128], index: 2, kind: input, shape index: {}]   ;;  %s4952_s3 = inlined_call_operand.vmem [shape: f32[4,1,128], index: 3, kind: input, shape index: {}]   ;;  %s4953_s4 = inlined_call_operand.vmem [shape: bf16[4,32,32], index: 4, kind: input, shape index: {}]   ;;  %s4954_s5 = inlined_call_operand.vmem [shape: bf16[4,32,64], index: 5, kind: input, shape index: {}]   ;;  %s4955_s6 = inlined_call_operand.vmem [shape: f32[4,1,64], index: 6, kind: input, shape index: {}]   ;;  %s4956_s7 = inlined_call_operand.vmem [shape: bf16[4,64,32], index: 7, kind: input, shape index: {}]   ;;  %s4957_s8 = inlined_call_operand.vmem [shape: f32[4,6,32], index: 8, kind: input, shape index: {}]   ;;  %s4958_s9 = inlined_call_operand.hbm [shape: f32[3,8,32], index: 9, kind: output, shape index: {0}]   ;;  %s4959_s10 = inlined_call_operand.vmem [shape: f32[4,3,64], index: 10, kind: output, shape index: {1}]  }
   0x1   :  { %s3764_s15 = smov 0  }
   0x2 LB: > { %s3334_s16 = sadd.s32 4294967295, %s3686_s15   ;;  %s31_s17 = sadd.s32 1, %s3682_s14  ;;  %s3686_s15 = sphi %s3764_s15, %s22_s15   ;;  %s3682_s14 = sphi %s3762_s14, %s4971_s14   ;;  %s3678_s13 = sphi %s3760_s13, %s4970_s13  }
   0x3   : > { %p32_p0 = scmp.ge.s32.totalorder %s31_s17, 4  ;;  %p3339_p1 = scmp.ge.s32.totalorder %s3686_s15, 1 }
   0x4   : > { %p341_p2 = scmp.lt.s32.totalorder %s3686_s15, 5 }
   0x5   : > { %s4973_s17 = smov (%p32_p0, %s31_s17), 0 }
   0x6   : > { %p342_p3 = pnand %p3339_p1, %p341_p2 }
   0x7   : > { %p397_p4 = scmp.lt.s32.totalorder (!%p342_p3), %s3678_s13, 3  ;;  %p3341_p5 = scmp.ne.s32.totalorder (!%p342_p3), %s3678_s13, 0 }
   0x8   : > { %345 = sbr.rel (%p342_p3) target bundleno = 2259 (0x8d3), region = 56 }
   0xd   : > { %s398_s18 = scalar_select %p397_p4, %s3678_s13, 3 }
   0xe   : > { %408 = sbr.rel (%p3341_p5) target bundleno = 23 (0x17), region = 60 }
   0xf   : > { %s3340_s19 = sshll.u32 %s398_s18, 2 }
  0x10   : > { %s3786_s22 = scalar_lea.vmem %s4959_s10, %s3340_s19 }
  0x13   : > { %v409_v0 = vld [vmem:[%s4949_s0] sm:$0xff]  ;;  %vm412_vm0 = vcmask 261120   ;;  %v410_v1 = vld [vmem:[%s4949_s0 + $0x8] sm:$0xff]  ;;  %v411_v2 = vld [vmem:[%s4949_s0 + $0x10] sm:$0xff] }
  0x14   : > { %413 = vst.msk [vmem:[#allocation2] sm:$0xff] %vm412_vm0, %v409_v0 }
  0x15   : > { %414 = vst.msk [vmem:[#allocation2 + $0x8] sm:$0xff] %vm412_vm0, %v410_v1 }
  0x16   : > { %415 = vst.msk [vmem:[#allocation2 + $0x10] sm:$0xff] %vm412_vm0, %v411_v2 }
  0x17 PF: > { %s3799_s29 = sshll.u32 %s3678_s13, 4  ;;  %s423_s12 = scalar_lea.vmem %s4952_s3, %s3678_s13  ;;  %vm475_vm1 = vcmask 261120   ;;  %v3691_v21 = vmov 1983009808   ;;  %vm531_vm2 = vcmask 1047556   ;;  %vm1629_vm3 = vcmask 64512  }
  0x18   : > { %s418_s20 = scalar_lea.vmem %s4951_s2, %s3799_s29  ;;  %v3562_v10 = vld [vmem:[%s423_s12] ss:$0 sm:$0xff]  ;;  %s3688_s21 = smov 104   ;;  %v536_v22 = vunpack.c.l.s4 %v3691_v21  ;;  %v3693_v37 = vmov 1934713408   ;;  %vm2302_vm4 = vcmask 1043456  }
  0x19   : > { %v3426_v3 = vld [vmem:[%s418_s20 + $0x8] sm:$0xff]  ;;  %v3425_v5 = vld [vmem:[%s418_s20] sm:$0xff]  ;;  %s3689_s23 = smov 120   ;;  %s3690_s24 = smov 112   ;;  %v560_v38 = vunpack.c.l.s4 %v3693_v37 }
  0x1a   : > { %488 = vmatpush.bf16.msra.mxu0 %v3426_v3  ;;  %3438 = vmatpush.bf16.msra.mxu1 %v3426_v3  ;;  %v3825_v25 = vunpack.c.0.s8 %v536_v22  ;;  %s3692_s25 = smov 96   ;;  %s3694_s26 = smov 64  }
  0x1b   : > { %v452_v4 = vld [vmem:[#allocation2] sm:$0xff]  ;;  %v3843_v46 = vunpack.c.0.s8 %v560_v38  ;;  %s3695_s19 = smov 24   ;;  %s3696_s20 = smov 16  }
  0x1c   : > { %v453_v6 = vld [vmem:[#allocation2 + $0x8] sm:$0xff]  ;;  %s437_s18 = scalar_lea.vmem %s4955_s6, %s3678_s13  ;;  %s3701_s11 = smov 48  }
  0x1d   : > { %v454_v7 = vld [vmem:[#allocation2 + $0x10] sm:$0xff]  ;;  %v455_v8 = vpack.c.bf16 %v453_v6, %v452_v4  ;;  %s3702_s12 = smov 56   ;;  %p3444_p6 = scmp.eq.s32.totalorder %s3334_s16, 3 }
  0x1e   : > { %v456_v9 = vpack.c.bf16 %v454_v7, %v454_v7  ;;  %489 = vmatpush.bf16.msra.mxu0 %v3425_v5  ;;  %3439 = vmatpush.bf16.msra.mxu1 %v3425_v5 }
  0x21   : > { %3356 = vmatmul.msk.bf16.vlgmr.msra.gmra.mxu0 %vm475_vm1, %v455_v8  ;;  %3357 = vmatmul.msk.bf16.vlgmr.msra.gmra.mxu1 %vm475_vm1, %v456_v9 }
  0x9e   : > { %v491_v11 = vpop.f32.mrf.mxu0  ;;  %v496_v12 = vpop.f32.mrf.mxu1 }
  0x9f   : > { %v3811_v13 = vadd.f32 %v3562_v10, %v491_v11  ;;  %v3820_v17 = vadd.f32 %v3562_v10, %v496_v12 }
  0xa1   : > { %521 = vrot.lane.b32.xlu1 %v3811_v13, %s3688_s21  ;;  %503 = vrot.lane.b32.xlu0 %v3811_v13, %s3689_s23  ;;  %v533_v43 = vrot.slane %v3811_v13, 4 }
  0xa6   : > { %v493_v14 = vpop.f32.mrf.mxu0  ;;  %v498_v15 = vpop.f32.mrf.mxu1 }
  0xa7   : > { %v494_v16 = vadd.f32 %v3562_v10, %v493_v14 }
  0xa9   : > { %514 = vrot.lane.b32.xlu2 %v494_v16, %s3690_s24  ;;  %505 = vrot.lane.b32.xlu1 %v494_v16, %s3689_s23  ;;  %v589_v24 = vrot.slane %v494_v16, 4 }
  0xaa   : > { %512 = vrot.lane.b32.xlu0 %v3811_v13, %s3690_s24 }
  0xb1   : > { %523 = vrot.lane.b32.xlu2 %v494_v16, %s3688_s21 }
  0xb9   : > { %507 = vrot.lane.b32.xlu2 %v3820_v17, %s3689_s23 }
 0x103   : > { %v515_v18 = vpop.permute.xlu2 %514 }
 0x104   : > { %v587_v23 = vrot.slane %v515_v18, 4  ;;  %v590_v26 = vsel %vm531_vm2, %v515_v18, %v589_v24 }
 0x105   : > { %v598_v36 = vperm.slane %v590_v26, %v3825_v25 }
 0x106   : > { %v588_v29 = vsel %vm531_vm2, %v587_v23, %v494_v16 }
 0x107   : > { %v594_v35 = vperm.slane %v588_v29, %v3825_v25  ;;  %v625_v45 = vrot.slane %v598_v36, 4 }
 0x109   : > { %v613_v44 = vrot.slane %v594_v35, 4 }
 0x10b   : > { %v524_v19 = vpop.permute.xlu2 %523 }
 0x10c   : > { %v3823_v20 = vpack.i.bf16 %v524_v19, %v515_v18  ;;  %v599_v40 = vrot.slane %v524_v19, 4 }
 0x113   : > { %v522_v27 = vpop.permute.xlu1 %521  ;;  %v504_v28 = vpop.permute.xlu0 %503 }
 0x114   : > { %v543_v30 = vrot.slane %v522_v27, 4  ;;  %v545_v31 = vrot.slane %v504_v28, 4  ;;  %v3830_v32 = vpack.i.bf16 %v504_v28, %v3811_v13  ;;  %v3838_v39 = vpop.permute.xlu2 %507 }
 0x115   : > { %v3850_v52 = vpack.i.bf16 %v3838_v39, %v3820_v17 }
 0x116   : > { %v544_v33 = vsel %vm531_vm2, %v543_v30, %v504_v28  ;;  %v546_v34 = vsel %vm531_vm2, %v522_v27, %v545_v31  ;;  %3488 = vrot.lane.b32.xlu0 %v3830_v32, %s3692_s25 }
 0x117   : > { %v550_v41 = vperm.slane %v544_v33, %v3825_v25  ;;  %v554_v42 = vperm.slane %v546_v34, %v3825_v25 }
 0x119   : > { %v555_v57 = vrot.slane %v550_v41, 4  ;;  %v567_v58 = vrot.slane %v554_v42, 4 }
 0x11b   : > { %v506_v47 = vpop.permute.xlu1 %505 }
 0x11c   : > { %v600_v48 = vsel %vm531_vm2, %v599_v40, %v506_v47  ;;  %v601_v49 = vrot.slane %v506_v47, 4  ;;  %v513_v50 = vpop.permute.xlu0 %512  ;;  %v3846_v51 = vpack.i.bf16 %v506_v47, %v494_v16 }
 0x11d   : > { %v606_v53 = vperm.slane %v600_v48, %v3825_v25  ;;  %v530_v54 = vrot.slane %v513_v50, 4  ;;  %v534_v55 = vsel %vm531_vm2, %v513_v50, %v533_v43  ;;  %v3854_v56 = vpack.i.bf16 %v522_v27, %v513_v50 }
 0x11e   : > { %v602_v59 = vsel %vm531_vm2, %v524_v19, %v601_v49  ;;  %v542_v60 = vperm.slane %v534_v55, %v3825_v25  ;;  %3498 = vrot.lane.b32.xlu2 %v3846_v51, %s3692_s25  ;;  %516 = vrot.lane.b32.xlu0 %v3820_v17, %s3690_s24 }
 0x11f   : > { %v610_v61 = vperm.slane %v602_v59, %v3825_v25  ;;  %v611_v62 = vrot.slane %v606_v53, 4  ;;  %v614_v63 = vsel %vm531_vm2, %v606_v53, %v613_v44  ;;  %v532_v0 = vsel %vm531_vm2, %v530_v54, %v3811_v13  ;;  %3493 = vrot.lane.b32.xlu1 %v3854_v56, %s3692_s25 }
 0x120   : > { %v622_v1 = vperm.slane %v614_v63, %v3843_v46  ;;  %v538_v2 = vperm.slane %v532_v0, %v3825_v25  ;;  %v568_v3 = vsel %vm531_vm2, %v567_v58, %v542_v60  ;;  %v569_v4 = vrot.slane %v542_v60, 4 }
 0x121   : > { %v612_v5 = vsel %vm531_vm2, %v611_v62, %v594_v35  ;;  %v623_v6 = vrot.slane %v610_v61, 4  ;;  %v626_v7 = vsel %vm531_vm2, %v610_v61, %v625_v45  ;;  %v574_v8 = vperm.slane %v568_v3, %v3843_v46 }
 0x122   : > { %v618_v9 = vperm.slane %v612_v5, %v3843_v46  ;;  %v634_v10 = vperm.slane %v626_v7, %v3843_v46  ;;  %v637_v11 = vrot.slane %v622_v1, 4  ;;  %v556_v12 = vsel %vm531_vm2, %v555_v57, %v538_v2 }
 0x123   : > { %v624_v13 = vsel %vm531_vm2, %v623_v6, %v598_v36  ;;  %v557_v14 = vrot.slane %v538_v2, 4  ;;  %v562_v15 = vperm.slane %v556_v12, %v3843_v46  ;;  %v570_v16 = vsel %vm531_vm2, %v554_v42, %v569_v4 }
 0x124   : > { %v630_v18 = vperm.slane %v624_v13, %v3843_v46  ;;  %v635_v19 = vrot.slane %v618_v9, 4  ;;  %v638_v21 = vsel %vm531_vm2, 0.0, %v637_v11  ;;  %v641_v22 = vrot.slane %v634_v10, 4 }
 0x125   : > { %v1161_v23 = vsel %vm531_vm2, %v637_v11, %v618_v9  ;;  %v1166_v24 = vrot.slane %v638_v21, 4  ;;  %v558_v26 = vsel %vm531_vm2, %v550_v41, %v557_v14  ;;  %v578_v27 = vperm.slane %v570_v16, %v3843_v46 }
 0x126   : > { %v636_v28 = vsel %vm531_vm2, 0.0, %v635_v19  ;;  %v639_v29 = vrot.slane %v630_v18, 4  ;;  %v642_v30 = vsel %vm531_vm2, 0.0, %v641_v22  ;;  %v1165_v31 = vperm.slane %v1161_v23, %v3825_v25  ;;  %3503 = vrot.lane.b32.xlu0 %v3823_v20, %s3692_s25 }
 0x127   : > { %v1172_v33 = vsel %vm531_vm2, %v641_v22, %v630_v18  ;;  %v1177_v34 = vrot.slane %v642_v30, 4  ;;  %v566_v35 = vperm.slane %v558_v26, %v3843_v46  ;;  %v579_v36 = vrot.slane %v562_v15, 4  ;;  %525 = vrot.lane.b32.xlu1 %v3820_v17, %s3688_s21  ;;  %s3697_s21 = smov 8  }
 0x128   : > { %v640_v37 = vsel %vm531_vm2, 0.0, %v639_v29  ;;  %v583_v38 = vrot.slane %v574_v8, 4  ;;  %v585_v40 = vrot.slane %v578_v27, 4  ;;  %v1167_v41 = vsel %vm531_vm2, %v1166_v24, %v636_v28 }
 0x129   : > { %v581_v42 = vrot.slane %v566_v35, 4  ;;  %v580_v43 = vsel %vm531_vm2, 0.0, %v579_v36  ;;  %v1171_v44 = vperm.slane %v1167_v41, %v3825_v25  ;;  %v1176_v45 = vperm.slane %v1172_v33, %v3825_v25 }
 0x12a   : > { %v584_v47 = vsel %vm531_vm2, 0.0, %v583_v38  ;;  %v586_v48 = vsel %vm531_vm2, 0.0, %v585_v40  ;;  %v1118_v49 = vsel %vm531_vm2, %v585_v40, %v574_v8  ;;  %v1178_v50 = vsel %vm531_vm2, %v1177_v34, %v640_v37 }
 0x12b   : > { %v1122_v53 = vperm.slane %v1118_v49, %v3825_v25  ;;  %v1123_v54 = vrot.slane %v586_v48, 4  ;;  %v582_v55 = vsel %vm531_vm2, 0.0, %v581_v42  ;;  %v1107_v57 = vsel %vm531_vm2, %v581_v42, %v562_v15 }
 0x12c   : > { %v1111_v58 = vperm.slane %v1107_v57, %v3825_v25  ;;  %v1112_v59 = vrot.slane %v582_v55, 4  ;;  %v1182_v60 = vperm.slane %v1178_v50, %v3825_v25  ;;  %v1185_v61 = vrot.slane %v1165_v31, 4 }
 0x12d   : > { %v1124_v62 = vsel %vm531_vm2, %v1123_v54, %v584_v47  ;;  %v1143_v63 = vrot.slane %v1122_v53, 4  ;;  %v1197_v0 = vrot.slane %v1176_v45, 4  ;;  %v1183_v1 = vrot.slane %v1171_v44, 4 }
 0x12e   : > { %v1113_v2 = vsel %vm531_vm2, %v1112_v59, %v580_v43  ;;  %v1128_v3 = vperm.slane %v1124_v62, %v3825_v25  ;;  %v1131_v4 = vrot.slane %v1111_v58, 4  ;;  %v1186_v5 = vsel %vm531_vm2, %v1171_v44, %v1185_v61 }
 0x12f   : > { %3508 = vrot.lane.b32.xlu1 %v3850_v52, %s3692_s25  ;;  %v1117_v6 = vperm.slane %v1113_v2, %v3825_v25  ;;  %v1194_v7 = vperm.slane %v1186_v5, %v3843_v46  ;;  %v1198_v8 = vsel %vm531_vm2, %v1182_v60, %v1197_v0  ;;  %v1184_v9 = vsel %vm531_vm2, %v1183_v1, %v1165_v31 }
 0x130   : > { %v1141_v10 = vrot.slane %v1128_v3, 4  ;;  %v1144_v11 = vsel %vm531_vm2, %v1128_v3, %v1143_v63  ;;  %v1206_v12 = vperm.slane %v1198_v8, %v3843_v46  ;;  %v1190_v13 = vperm.slane %v1184_v9, %v3843_v46 }
 0x131   : > { %v1129_v14 = vrot.slane %v1117_v6, 4  ;;  %v1132_v15 = vsel %vm531_vm2, %v1117_v6, %v1131_v4  ;;  %v1152_v16 = vperm.slane %v1144_v11, %v3843_v46  ;;  %v1213_v18 = vrot.slane %v1194_v7, 4 }
 0x132   : > { %v1140_v19 = vperm.slane %v1132_v15, %v3843_v46  ;;  %v1142_v21 = vsel %vm531_vm2, %v1141_v10, %v1122_v53  ;;  %v1211_v22 = vrot.slane %v1206_v12, 4  ;;  %v1195_v23 = vrot.slane %v1182_v60, 4 }
 0x133   : > { %v1157_v24 = vrot.slane %v1152_v16, 4  ;;  %v1130_v26 = vsel %vm531_vm2, %v1129_v14, %v1111_v58  ;;  %v1148_v27 = vperm.slane %v1142_v21, %v3843_v46  ;;  %v1209_v28 = vrot.slane %v1190_v13, 4 }
 0x134   : > { %v1159_v29 = vrot.slane %v1140_v19, 4  ;;  %v1136_v30 = vperm.slane %v1130_v26, %v3843_v46  ;;  %v3929_v31 = vsel %vm531_vm2, %v1211_v22, %v1194_v7  ;;  %v1196_v33 = vsel %vm531_vm2, %v1195_v23, %v1176_v45 }
 0x135   : > { %v3933_v34 = vsel %vm531_vm2, %v1157_v24, %v1140_v19  ;;  %v1153_v35 = vrot.slane %v1148_v27, 4  ;;  %v1202_v36 = vperm.slane %v1196_v33, %v3843_v46  ;;  %v3940_v40 = vsel %vm531_vm2, %v1206_v12, %v1213_v18 }
 0x136   : > { %v1155_v37 = vrot.slane %v1136_v30, 4  ;;  %v3937_v38 = vsel %vm531_vm2, %v1152_v16, %v1159_v29  ;;  %v645_v54 = vrot.slane %v3820_v17, 4  ;;  %v657_v12 = vrot.slane %v3838_v39, 4 }
 0x137   : > { %3518 = vrot.lane.b32.xlu1 %v3830_v32, %s3694_s26  ;;  %v3945_v41 = vsel %vm531_vm2, %v1153_v35, %v1136_v30  ;;  %v3948_v42 = vsel %vm531_vm2, %v1202_v36, %v1209_v28  ;;  %v1207_v43 = vrot.slane %v1202_v36, 4 }
 0x138   : > { %v3951_v44 = vsel %vm531_vm2, %v1148_v27, %v1155_v37  ;;  %v1269_v36 = vpack.c.bf16 %v3945_v41, %v3945_v41 }
 0x139   : > { %v3954_v45 = vsel %vm531_vm2, %v1207_v43, %v1190_v13 }
 0x178   : > { %v3964_v1 = vpop.permute.xlu2 %3498 }
 0x179   : > { %v3501_v13 = vunpack.i.h.bf16 %v3964_v1  ;;  %v3500_v15 = vunpack.i.l.bf16 %v3964_v1 }
 0x17b   : > { %v805_v30 = vrot.slane %v3501_v13, 4 }
 0x188   : > { %v3489_v47 = vpop.permute.xlu0 %3488 }
 0x189   : > { %v3491_v48 = vunpack.i.h.bf16 %v3489_v47  ;;  %v3490_v49 = vunpack.i.l.bf16 %v3489_v47 }
 0x18b   : > { %v749_v53 = vrot.slane %v3491_v48, 4  ;;  %v737_v55 = vrot.slane %v3490_v49, 4 }
 0x190   : > { %v3956_v50 = vpop.permute.xlu0 %516 }
 0x191   : > { %v3494_v32 = vpop.permute.xlu1 %3493  ;;  %v643_v59 = vrot.slane %v3956_v50, 4  ;;  %v646_v60 = vsel %vm531_vm2, %v3956_v50, %v645_v54 }
 0x192   : > { %v3496_v57 = vunpack.i.h.bf16 %v3494_v32  ;;  %v3495_v58 = vunpack.i.l.bf16 %v3494_v32  ;;  %v654_v7 = vperm.slane %v646_v60, %v3825_v25 }
 0x193   : > { %v644_v6 = vsel %vm531_vm2, %v643_v59, %v3820_v17  ;;  %v1271_v17 = vpack.c.bf16 %v3933_v34, %v3933_v34 }
 0x194   : > { %v747_v61 = vrot.slane %v3496_v57, 4  ;;  %v735_v62 = vrot.slane %v3495_v58, 4  ;;  %v738_v63 = vsel %vm531_vm2, %v3495_v58, %v737_v55  ;;  %v750_v0 = vsel %vm531_vm2, %v3496_v57, %v749_v53 }
 0x195   : > { %v746_v2 = vperm.slane %v738_v63, %v3825_v25  ;;  %v758_v3 = vperm.slane %v750_v0, %v3825_v25  ;;  %v650_v22 = vperm.slane %v644_v6, %v3825_v25  ;;  %v681_v27 = vrot.slane %v654_v7, 4 }
 0x196   : > { %v736_v4 = vsel %vm531_vm2, %v735_v62, %v3490_v49  ;;  %v748_v5 = vsel %vm531_vm2, %v747_v61, %v3491_v48  ;;  %v793_v49 = vrot.slane %v3500_v15, 4 }
 0x197   : > { %v742_v8 = vperm.slane %v736_v4, %v3825_v25  ;;  %v754_v9 = vperm.slane %v748_v5, %v3825_v25  ;;  %v771_v10 = vrot.slane %v758_v3, 4  ;;  %v773_v11 = vrot.slane %v746_v2, 4 }
 0x198   : > { %v3504_v14 = vpop.permute.xlu0 %3503  ;;  %v669_v54 = vrot.slane %v650_v22, 4 }
 0x199   : > { %v759_v16 = vrot.slane %v754_v9, 4  ;;  %v774_v18 = vsel %vm531_vm2, %v758_v3, %v773_v11  ;;  %v3979_v19 = vpop.permute.xlu1 %525  ;;  %v761_v21 = vrot.slane %v742_v8, 4  ;;  %v772_v26 = vsel %vm531_vm2, %v771_v10, %v746_v2 }
 0x19a   : > { %v655_v23 = vrot.slane %v3979_v19, 4  ;;  %v658_v24 = vsel %vm531_vm2, %v3979_v19, %v657_v12  ;;  %v3506_v29 = vunpack.i.h.bf16 %v3504_v14  ;;  %v782_v35 = vperm.slane %v774_v18, %v3843_v46 }
 0x19b   : > { %v666_v28 = vperm.slane %v658_v24, %v3825_v25  ;;  %v760_v33 = vsel %vm531_vm2, %v759_v16, %v742_v8  ;;  %v762_v53 = vsel %vm531_vm2, %v754_v9, %v761_v21  ;;  %v3998_v32 = vperm.slane %v772_v26, %v3843_v46 }
 0x19c   : > { %v656_v37 = vsel %vm531_vm2, %v655_v23, %v3838_v39  ;;  %v803_v48 = vrot.slane %v3506_v29, 4  ;;  %v4001_v55 = vperm.slane %v760_v33, %v3843_v46  ;;  %v4006_v59 = vrot.slane %v782_v35, 4 }
 0x19d   : > { %v679_v43 = vrot.slane %v666_v28, 4  ;;  %v682_v47 = vsel %vm531_vm2, %v666_v28, %v681_v27  ;;  %v662_v57 = vperm.slane %v656_v37, %v3825_v25  ;;  %v806_v62 = vsel %vm531_vm2, %v3506_v29, %v805_v30 }
 0x19e   : > { %v690_v39 = vperm.slane %v682_v47, %v3843_v46  ;;  %v804_v61 = vsel %vm531_vm2, %v803_v48, %v3501_v13  ;;  %v814_v5 = vperm.slane %v806_v62, %v3825_v25  ;;  %v3505_v6 = vunpack.i.l.bf16 %v3504_v14 }
 0x19f   : > { %v680_v58 = vsel %vm531_vm2, %v679_v43, %v654_v7  ;;  %v667_v63 = vrot.slane %v662_v57, 4  ;;  %v670_v0 = vsel %vm531_vm2, %v662_v57, %v669_v54  ;;  %v810_v2 = vperm.slane %v804_v61, %v3825_v25 }
 0x1a0   : > { %v686_v60 = vperm.slane %v680_v58, %v3843_v46  ;;  %v697_v1 = vrot.slane %v690_v39, 4  ;;  %v678_v3 = vperm.slane %v670_v0, %v3843_v46  ;;  %v770_v7 = vperm.slane %v762_v53, %v3843_v46 }
 0x1a1   : > { %v668_v8 = vsel %vm531_vm2, %v667_v63, %v650_v22  ;;  %v787_v11 = vrot.slane %v3998_v32, 4  ;;  %v791_v21 = vrot.slane %v3505_v6, 4  ;;  %v794_v23 = vsel %vm531_vm2, %v3505_v6, %v793_v49 }
 0x1a2   : > { %v695_v4 = vrot.slane %v686_v60, 4  ;;  %v698_v9 = vsel %vm531_vm2, 0.0, %v697_v1  ;;  %v1226_v10 = vsel %vm531_vm2, %v697_v1, %v686_v60  ;;  %v674_v12 = vperm.slane %v668_v8, %v3843_v46 }
 0x1a3   : > { %v693_v13 = vrot.slane %v678_v3, 4  ;;  %v1231_v18 = vrot.slane %v698_v9, 4  ;;  %v1270_v14 = vpack.c.bf16 %v3951_v44, %v3951_v44  ;;  %v790_v22 = vsel %vm531_vm2, 0.0, %v4006_v59 }
 0x1a4   : > { %v696_v16 = vsel %vm531_vm2, 0.0, %v695_v4  ;;  %v815_v26 = vrot.slane %v810_v2, 4  ;;  %v827_v27 = vrot.slane %v814_v5, 4  ;;  %v783_v28 = vrot.slane %v4001_v55, 4 }
 0x1a5   : > { %v1215_v24 = vsel %vm531_vm2, %v693_v13, %v674_v12  ;;  %v785_v29 = vrot.slane %v770_v7, 4  ;;  %v1232_v30 = vsel %vm531_vm2, %v1231_v18, %v696_v16  ;;  %v792_v33 = vsel %vm531_vm2, %v791_v21, %v3500_v15 }
 0x1a6   : > { %v788_v35 = vsel %vm531_vm2, 0.0, %v787_v11  ;;  %v4033_v37 = vperm.slane %v1226_v10, %v3825_v25  ;;  %v798_v43 = vperm.slane %v792_v33, %v3825_v25  ;;  %v802_v47 = vperm.slane %v794_v23, %v3825_v25 }
 0x1a7   : > { %v1297_v48 = vrot.slane %v790_v22, 4  ;;  %v691_v49 = vrot.slane %v674_v12, 4  ;;  %v4038_v53 = vsel %vm531_vm2, 0.0, %v693_v13  ;;  %v4042_v54 = vpack.i.bf16 %v3979_v19, %v3956_v50 }
 0x1a8   : > { %v4045_v15 = vperm.slane %v1232_v30, %v3825_v25  ;;  %v816_v57 = vsel %vm531_vm2, %v815_v26, %v798_v43  ;;  %v817_v58 = vrot.slane %v798_v43, 4  ;;  %v828_v39 = vsel %vm531_vm2, %v827_v27, %v802_v47 }
 0x1a9   : > { %v786_v60 = vsel %vm531_vm2, 0.0, %v785_v29  ;;  %v822_v61 = vperm.slane %v816_v57, %v3843_v46  ;;  %v829_v62 = vrot.slane %v802_v47, 4  ;;  %v834_v63 = vperm.slane %v828_v39, %v3843_v46  ;;  %3513 = vrot.lane.b32.xlu2 %v4042_v54, %s3692_s25  ;;  %s426_s25 = scalar_lea.vmem %s4953_s4, %s3799_s29 }
 0x1aa   : > { %v4055_v50 = vperm.slane %v1215_v24, %v3825_v25  ;;  %v1220_v19 = vrot.slane %v4038_v53, 4  ;;  %v1251_v0 = vrot.slane %v4033_v37, 4  ;;  %v818_v1 = vsel %vm531_vm2, %v810_v2, %v817_v58 }
 0x1ab   : > { %v692_v3 = vsel %vm531_vm2, 0.0, %v691_v49  ;;  %v826_v4 = vperm.slane %v818_v1, %v3843_v46  ;;  %v830_v6 = vsel %vm531_vm2, %v814_v5, %v829_v62  ;;  %v843_v7 = vrot.slane %v834_v63, 4 }
 0x1ac   : > { %v1249_v8 = vrot.slane %v4045_v15, 4  ;;  %v838_v9 = vperm.slane %v830_v6, %v3843_v46  ;;  %v784_v10 = vsel %vm531_vm2, 0.0, %v783_v28  ;;  %v1281_v11 = vsel %vm531_vm2, %v785_v29, %v4001_v55 }
 0x1ad   : > { %v839_v12 = vrot.slane %v822_v61, 4  ;;  %v841_v13 = vrot.slane %v826_v4, 4  ;;  %v1285_v2 = vperm.slane %v1281_v11, %v3825_v25  ;;  %v1286_v16 = vrot.slane %v786_v60, 4 }
 0x1ae   : > { %v844_v18 = vsel %vm531_vm2, 0.0, %v843_v7  ;;  %v845_v21 = vrot.slane %v838_v9, 4  ;;  %v1292_v5 = vsel %vm531_vm2, %v4006_v59, %v3998_v32  ;;  %v1298_v23 = vsel %vm531_vm2, %v1297_v48, %v788_v35 }
 0x1af   : > { %v842_v22 = vsel %vm531_vm2, 0.0, %v841_v13  ;;  %v1287_v24 = vsel %vm531_vm2, %v1286_v16, %v784_v10  ;;  %v1296_v55 = vperm.slane %v1292_v5, %v3825_v25  ;;  %v1302_v26 = vperm.slane %v1298_v23, %v3825_v25 }
 0x1b0   : > { %v846_v27 = vsel %vm531_vm2, 0.0, %v845_v21  ;;  %v1340_v28 = vrot.slane %v842_v22, 4  ;;  %v1346_v29 = vsel %vm531_vm2, %v845_v21, %v834_v63  ;;  %v1291_v30 = vperm.slane %v1287_v24, %v3825_v25 }
 0x1b1   : > { %v1351_v33 = vrot.slane %v846_v27, 4  ;;  %v1305_v32 = vrot.slane %v1285_v2, 4  ;;  %v1317_v59 = vrot.slane %v1296_v55, 4  ;;  %v1315_v35 = vrot.slane %v1302_v26, 4 }
 0x1b2   : > { %v1303_v43 = vrot.slane %v1291_v30, 4  ;;  %v840_v47 = vsel %vm531_vm2, 0.0, %v839_v12  ;;  %v1335_v48 = vsel %vm531_vm2, %v841_v13, %v822_v61  ;;  %v1350_v49 = vperm.slane %v1346_v29, %v3825_v25 }
 0x1b3   : > { %v1306_v53 = vsel %vm531_vm2, %v1291_v30, %v1305_v32  ;;  %v1318_v57 = vsel %vm531_vm2, %v1302_v26, %v1317_v59  ;;  %v1316_v58 = vsel %vm531_vm2, %v1315_v35, %v1296_v55  ;;  %v1339_v39 = vperm.slane %v1335_v48, %v3825_v25 }
 0x1b4   : > { %v1314_v60 = vperm.slane %v1306_v53, %v3843_v46  ;;  %v1326_v62 = vperm.slane %v1318_v57, %v3843_v46  ;;  %v1304_v63 = vsel %vm531_vm2, %v1303_v43, %v1285_v2  ;;  %v1322_v1 = vperm.slane %v1316_v58, %v3843_v46 }
 0x1b5   : > { %v1310_v61 = vperm.slane %v1304_v63, %v3843_v46  ;;  %v1341_v4 = vsel %vm531_vm2, %v1340_v28, %v840_v47  ;;  %v1352_v6 = vsel %vm531_vm2, %v1351_v33, %v844_v18  ;;  %v1359_v7 = vrot.slane %v1339_v39, 4 }
 0x1b6   : > { %v1331_v9 = vrot.slane %v1326_v62, 4  ;;  %v1333_v10 = vrot.slane %v1314_v60, 4  ;;  %v1327_v11 = vrot.slane %v1322_v1, 4  ;;  %v1345_v12 = vperm.slane %v1341_v4, %v3825_v25 }
 0x1b7   : > { %v1329_v13 = vrot.slane %v1310_v61, 4  ;;  %v1356_v16 = vperm.slane %v1352_v6, %v3825_v25  ;;  %v1371_v21 = vrot.slane %v1350_v49, 4  ;;  %v1221_v2 = vsel %vm531_vm2, %v1220_v19, %v692_v3 }
 0x1b8   : > { %v1332_v5 = vsel %vm531_vm2, %v1331_v9, %v1314_v60  ;;  %v1328_v23 = vsel %vm531_vm2, %v1327_v11, %v1310_v61  ;;  %v1334_v22 = vsel %vm531_vm2, %v1326_v62, %v1333_v10  ;;  %v1360_v18 = vsel %vm531_vm2, %v1345_v12, %v1359_v7 }
 0x1b9   : > { %v1445_v24 = vpack.c.bf16 %v1332_v5, %v1332_v5  ;;  %v1443_v55 = vpack.c.bf16 %v1328_v23, %v1328_v23  ;;  %v1446_v26 = vpack.c.bf16 %v1334_v22, %v1334_v22  ;;  %v1330_v27 = vsel %vm531_vm2, %v1322_v1, %v1329_v13 }
 0x1ba   : > { %v1444_v28 = vpack.c.bf16 %v1330_v27, %v1330_v27  ;;  %v1368_v29 = vperm.slane %v1360_v18, %v3843_v46  ;;  %v1372_v30 = vsel %vm531_vm2, %v1356_v16, %v1371_v21  ;;  %v1357_v33 = vrot.slane %v1345_v12, 4 }
 0x1bb   : > { %v1672_v19 = vsel %vm1629_vm3, %v1445_v24, 0  ;;  %v1634_v3 = vsel %vm1629_vm3, %v1443_v55, 0  ;;  %v1691_v32 = vsel %vm1629_vm3, %v1446_v26, 0  ;;  %v1380_v59 = vperm.slane %v1372_v30, %v3843_v46 }
 0x1bc   : > { %1681 = vmatpush.bf16.xpose.msra.mxu3 %v1672_v19  ;;  %1643 = vmatpush.bf16.xpose.msrb.mxu1 %v1634_v3  ;;  %v1653_v35 = vsel %vm1629_vm3, %v1444_v28, 0  ;;  %v1387_v43 = vrot.slane %v1368_v29, 4  ;;  %v1358_v47 = vsel %vm531_vm2, %v1357_v33, %v1339_v39  ;;  %v1369_v48 = vrot.slane %v1356_v16, 4 }
 0x1bd   : > { %1662 = vmatpush.bf16.xpose.msra.mxu2 %v1653_v35  ;;  %v1385_v53 = vrot.slane %v1380_v59, 4  ;;  %v1364_v57 = vperm.slane %v1358_v47, %v3843_v46  ;;  %v1225_v58 = vperm.slane %v1221_v2, %v3825_v25  ;;  %v1239_v60 = vrot.slane %v4055_v50, 4 }
 0x1be   : > { %v1370_v62 = vsel %vm531_vm2, %v1369_v48, %v1350_v49  ;;  %v1388_v63 = vsel %vm531_vm2, %v1380_v59, %v1387_v43  ;;  %v1252_v1 = vsel %vm531_vm2, %v4045_v15, %v1251_v0  ;;  %v1250_v39 = vsel %vm531_vm2, %v1249_v8, %v4033_v37 }
 0x1bf   : > { %v1386_v61 = vsel %vm531_vm2, %v1385_v53, %v1368_v29  ;;  %v1376_v4 = vperm.slane %v1370_v62, %v3843_v46  ;;  %v1450_v6 = vpack.c.bf16 %v1388_v63, %v1388_v63  ;;  %v1383_v7 = vrot.slane %v1364_v57, 4  ;;  %v3509_v29 = vpop.permute.xlu1 %3508 }
 0x1c0   : > { %v1449_v9 = vpack.c.bf16 %v1386_v61, %v1386_v61  ;;  %v1240_v49 = vsel %vm531_vm2, %v1225_v58, %v1239_v60  ;;  %v1260_v10 = vperm.slane %v1252_v1, %v3843_v46  ;;  %v1237_v11 = vrot.slane %v1225_v58, 4 }
 0x1c1   : > { %v1381_v12 = vrot.slane %v1376_v4, 4  ;;  %v1767_v0 = vsel %vm1629_vm3, %v1450_v6, 0  ;;  %v1384_v13 = vsel %vm531_vm2, %v1376_v4, %v1383_v7  ;;  %v1248_v15 = vperm.slane %v1240_v49, %v3843_v46 }
 0x1c2   : > { %v1748_v37 = vsel %vm1629_vm3, %v1449_v9, 0  ;;  %v1448_v8 = vpack.c.bf16 %v1384_v13, %v1384_v13  ;;  %v1265_v16 = vrot.slane %v1260_v10, 4  ;;  %v1238_v21 = vsel %vm531_vm2, %v1237_v11, %v4055_v50 }
 0x1c3   : > { %3360 = vmatmul.msk.bf16.vlgmr.msra.gmra.mxu3 %vm1629_vm3, %v1271_v17  ;;  %1757 = vmatpush.bf16.xpose.msrb.mxu0 %v1748_v37  ;;  %v1382_v2 = vsel %vm531_vm2, %v1381_v12, %v1364_v57  ;;  %v1244_v5 = vperm.slane %v1238_v21, %v3843_v46  ;;  %v1256_v23 = vperm.slane %v1250_v39, %v3843_v46  ;;  %v1267_v22 = vrot.slane %v1248_v15, 4 }
 0x1c4   : > { %1700 = vmatpush.bf16.xpose.msra.mxu1 %v1691_v32  ;;  %v1447_v18 = vpack.c.bf16 %v1382_v2, %v1382_v2  ;;  %3359 = vmatmul.msk.bf16.vlgmr.msra.gmra.mxu2 %vm1629_vm3, %v1270_v14  ;;  %v1729_v34 = vsel %vm1629_vm3, %v1448_v8, 0  ;;  %v4151_v17 = vsel %vm531_vm2, %v1265_v16, %v1248_v15  ;;  %v1275_v14 = vpack.c.bf16 %v3929_v31, %v3929_v31 }
 0x1c5   : > { %3358 = vmatmul.msk.bf16.vlgmr.msrb.gmra.mxu1 %vm1629_vm3, %v1269_v36  ;;  %1738 = vmatpush.bf16.xpose.msrb.mxu3 %v1729_v34  ;;  %v1261_v50 = vrot.slane %v1256_v23, 4  ;;  %v4154_v24 = vsel %vm531_vm2, %v1260_v10, %v1267_v22  ;;  %v1263_v41 = vrot.slane %v1244_v5, 4  ;;  %v1274_v26 = vpack.c.bf16 %v3948_v42, %v3948_v42 }
 0x1c6   : > { %v1710_v36 = vsel %vm1629_vm3, %v1447_v18, 0  ;;  %v1272_v27 = vpack.c.bf16 %v3937_v38, %v3937_v38  ;;  %v1273_v28 = vpack.c.bf16 %v3954_v45, %v3954_v45  ;;  %v1276_v31 = vpack.c.bf16 %v3940_v40, %v3940_v40 }
 0x1c7   : > { %1719 = vmatpush.bf16.xpose.msrb.mxu2 %v1710_v36  ;;  %v4158_v55 = vsel %vm531_vm2, %v1261_v50, %v1244_v5  ;;  %v4161_v44 = vsel %vm531_vm2, %v1256_v23, %v1263_v41  ;;  %v3511_v30 = vunpack.i.h.bf16 %v3509_v29  ;;  %v3510_v42 = vunpack.i.l.bf16 %v3509_v29 }
 0x1c9   : > { %v861_v19 = vrot.slane %v3511_v30, 4  ;;  %v849_v38 = vrot.slane %v3510_v42, 4 }
 0x1ca   : > { %3364 = vmatmul.msk.bf16.vlgmr.msrb.gmra.mxu0 %vm1629_vm3, %v1275_v14 }
 0x1cc   : > { %1776 = vmatpush.bf16.xpose.msrb.mxu1 %v1767_v0 }
 0x1d3   : > { %3363 = vmatmul.msk.bf16.vlgmr.msrb.gmra.mxu3 %vm1629_vm3, %v1274_v26 }
 0x1d4   : > { %3362 = vmatmul.msk.bf16.vlgmr.msrb.gmra.mxu2 %vm1629_vm3, %v1273_v28 }
 0x1d5   : > { %3361 = vmatmul.msk.bf16.vlgmr.msra.gmra.mxu1 %vm1629_vm3, %v1272_v27 }
 0x1e5   : > { %3365 = vmatmul.msk.bf16.vlgmr.msrb.gmra.mxu1 %vm1629_vm3, %v1276_v31 }
 0x203   : > { %v3514_v33 = vpop.permute.xlu2 %3513 }
 0x204   : > { %v3516_v3 = vunpack.i.h.bf16 %v3514_v33  ;;  %v3515_v32 = vunpack.i.l.bf16 %v3514_v33 }
 0x206   : > { %v859_v45 = vrot.slane %v3516_v3, 4  ;;  %v862_v59 = vsel %vm531_vm2, %v3516_v3, %v861_v19  ;;  %v847_v35 = vrot.slane %v3515_v32, 4  ;;  %v850_v43 = vsel %vm531_vm2, %v3515_v32, %v849_v38 }
 0x207   : > { %v870_v47 = vperm.slane %v862_v59, %v3825_v25  ;;  %v858_v40 = vperm.slane %v850_v43, %v3825_v25 }
 0x208   : > { %v860_v48 = vsel %vm531_vm2, %v859_v45, %v3511_v30  ;;  %v848_v53 = vsel %vm531_vm2, %v847_v35, %v3510_v42 }
 0x209   : > { %v866_v57 = vperm.slane %v860_v48, %v3825_v25  ;;  %v883_v58 = vrot.slane %v870_v47, 4  ;;  %v854_v60 = vperm.slane %v848_v53, %v3825_v25  ;;  %v885_v62 = vrot.slane %v858_v40, 4 }
 0x20b   : > { %v871_v63 = vrot.slane %v866_v57, 4  ;;  %v873_v1 = vrot.slane %v854_v60, 4  ;;  %v884_v39 = vsel %vm531_vm2, %v883_v58, %v858_v40  ;;  %v886_v61 = vsel %vm531_vm2, %v870_v47, %v885_v62 }
 0x20c   : > { %v890_v4 = vperm.slane %v884_v39, %v3843_v46  ;;  %v894_v6 = vperm.slane %v886_v61, %v3843_v46  ;;  %v1279_v61 = vpack.c.bf16 %v4151_v17, %v4151_v17  ;;  %v3563_v17 = vld [vmem:[%s4950_s1] ss:$0 sm:$0xff] }
 0x20d   : > { %v872_v7 = vsel %vm531_vm2, %v871_v63, %v854_v60  ;;  %v874_v9 = vsel %vm531_vm2, %v866_v57, %v873_v1 }
 0x20e   : > { %v878_v49 = vperm.slane %v872_v7, %v3843_v46  ;;  %v882_v10 = vperm.slane %v874_v9, %v3843_v46  ;;  %v899_v11 = vrot.slane %v890_v4, 4  ;;  %v901_v12 = vrot.slane %v894_v6, 4 }
 0x20f   : > { %v1280_v6 = vpack.c.bf16 %v4154_v24, %v4154_v24  ;;  %v1278_v7 = vpack.c.bf16 %v4161_v44, %v4161_v44  ;;  %v3564_v44 = vld [vmem:[%s4950_s1 + $0x1] ss:$0 sm:$0xff] }
 0x210   : > { %v895_v0 = vrot.slane %v878_v49, 4  ;;  %v897_v13 = vrot.slane %v882_v10, 4  ;;  %v902_v15 = vsel %vm531_vm2, 0.0, %v901_v12  ;;  %v1400_v37 = vsel %vm531_vm2, %v901_v12, %v890_v4 }
 0x211   : > { %v1405_v8 = vrot.slane %v902_v15, 4  ;;  %v900_v21 = vsel %vm531_vm2, 0.0, %v899_v11  ;;  %v1404_v2 = vperm.slane %v1400_v37, %v3825_v25  ;;  %v1277_v4 = vpack.c.bf16 %v4158_v55, %v4158_v55 }
 0x212   : > { %v898_v16 = vsel %vm531_vm2, 0.0, %v897_v13  ;;  %v1389_v5 = vsel %vm531_vm2, %v897_v13, %v878_v49  ;;  %v896_v34 = vsel %vm531_vm2, 0.0, %v895_v0 }
 0x213   : > { %v1394_v23 = vrot.slane %v898_v16, 4  ;;  %v1393_v22 = vperm.slane %v1389_v5, %v3825_v25  ;;  %v1406_v18 = vsel %vm531_vm2, %v1405_v8, %v900_v21  ;;  %v1425_v41 = vrot.slane %v1404_v2, 4 }
 0x214   : > { %v1410_v50 = vperm.slane %v1406_v18, %v3825_v25 }
 0x215   : > { %v1395_v36 = vsel %vm531_vm2, %v1394_v23, %v896_v34  ;;  %v1413_v14 = vrot.slane %v1393_v22, 4 }
 0x216   : > { %v1399_v26 = vperm.slane %v1395_v36, %v3825_v25  ;;  %v1426_v27 = vsel %vm531_vm2, %v1410_v50, %v1425_v41  ;;  %v1423_v28 = vrot.slane %v1410_v50, 4 }
 0x217   : > { %v1434_v31 = vperm.slane %v1426_v27, %v3843_v46 }
 0x218   : > { %v1414_v29 = vsel %vm531_vm2, %v1399_v26, %v1413_v14  ;;  %v1411_v30 = vrot.slane %v1399_v26, 4  ;;  %v1424_v42 = vsel %vm531_vm2, %v1423_v28, %v1404_v2 }
 0x219   : > { %v1422_v33 = vperm.slane %v1414_v29, %v3843_v46  ;;  %v1439_v19 = vrot.slane %v1434_v31, 4  ;;  %v1430_v38 = vperm.slane %v1424_v42, %v3843_v46  ;;  %v3565_v42 = vld [vmem:[%s4950_s1 + $0x2] ss:$0 sm:$0xff] }
 0x21a   : > { %v1412_v3 = vsel %vm531_vm2, %v1411_v30, %v1393_v22 }
 0x21b   : > { %v1440_v32 = vsel %vm531_vm2, %v1439_v19, %v1422_v33  ;;  %v1418_v45 = vperm.slane %v1412_v3, %v3843_v46  ;;  %v1435_v59 = vrot.slane %v1430_v38, 4  ;;  %v1441_v35 = vrot.slane %v1422_v33, 4 }
 0x21c   : > { %v1453_v43 = vpack.c.bf16 %v1440_v32, %v1440_v32 }
 0x21d   : > { %v1436_v47 = vsel %vm531_vm2, %v1435_v59, %v1418_v45  ;;  %v1442_v40 = vsel %vm531_vm2, %v1434_v31, %v1441_v35  ;;  %v1437_v48 = vrot.slane %v1418_v45, 4 }
 0x21e   : > { %v1824_v53 = vsel %vm1629_vm3, %v1453_v43, 0  ;;  %v1451_v57 = vpack.c.bf16 %v1436_v47, %v1436_v47  ;;  %v1454_v58 = vpack.c.bf16 %v1442_v40, %v1442_v40 }
 0x21f   : > { %1833 = vmatpush.bf16.xpose.msra.mxu0 %v1824_v53  ;;  %v1438_v60 = vsel %vm531_vm2, %v1430_v38, %v1437_v48 }
 0x220   : > { %v1786_v62 = vsel %vm1629_vm3, %v1451_v57, 0  ;;  %v1843_v63 = vsel %vm1629_vm3, %v1454_v58, 0  ;;  %v1452_v1 = vpack.c.bf16 %v1438_v60, %v1438_v60  ;;  %v3519_v58 = vpop.permute.xlu1 %3518 }
 0x221   : > { %1795 = vmatpush.bf16.xpose.msra.mxu2 %v1786_v62  ;;  %1852 = vmatpush.bf16.xpose.msra.mxu1 %v1843_v63 }
 0x222   : > { %v1805_v39 = vsel %vm1629_vm3, %v1452_v1, 0 }
 0x223   : > { %1814 = vmatpush.bf16.xpose.msra.mxu3 %v1805_v39 }
 0x226   : > { %3368 = vmatmul.msk.bf16.vlgmr.msra.gmra.mxu0 %vm1629_vm3, %v1279_v61 }
 0x228   : > { %3366 = vmatmul.msk.bf16.vlgmr.msra.gmra.mxu2 %vm1629_vm3, %v1277_v4  ;;  %3369 = vmatmul.msk.bf16.vlgmr.msra.gmra.mxu1 %vm1629_vm3, %v1280_v6 }
 0x22a   : > { %3367 = vmatmul.msk.bf16.vlgmr.msra.gmra.mxu3 %vm1629_vm3, %v1278_v7 }
 0x242   : > { %v1645_v9 = vpop.f32.mrf.mxu1 }
 0x243   : > { %v1867_v49 = vadd.f32 %v3563_v17, %v1645_v9 }
 0x245   : > { %v1879_v55 = vsel %vm1629_vm3, %v1867_v49, -inf }
 0x246   : > { %1880 = vmax.xlane.f32.xlu0 %v1879_v55  ;;  %v1683_v10 = vpop.f32.mrf.mxu3 }
 0x247   : > { %v4238_v24 = vadd.f32 %v3563_v17, %v1683_v10  ;;  %v1759_v11 = vpop.f32.mrf.mxu0  ;;  %v1664_v12 = vpop.f32.mrf.mxu2 }
 0x248   : > { %v4240_v0 = vadd.f32 %v3563_v17, %v1664_v12  ;;  %v4249_v8 = vadd.f32 %v3564_v44, %v1759_v11 }
 0x249   : > { %v1885_v13 = vsel %vm1629_vm3, %v4238_v24, -inf }
 0x24a   : > { %v1647_v15 = vpop.f32.mrf.mxu1  ;;  %1886 = vmax.xlane.f32.xlu2 %v1885_v13  ;;  %v1882_v37 = vsel %vm1629_vm3, %v4240_v0, -inf  ;;  %v1897_v5 = vsel %vm1629_vm3, %v4249_v8, -inf }
 0x24b   : > { %1883 = vmax.xlane.f32.xlu1 %v1882_v37  ;;  %v3521_v15 = vunpack.i.h.bf16 %v3519_v58 }
 0x24e   : > { %v1685_v16 = vpop.f32.mrf.mxu3 }
 0x24f   : > { %v1761_v21 = vpop.f32.mrf.mxu0  ;;  %v1666_v2 = vpop.f32.mrf.mxu2  ;;  %v3520_v16 = vunpack.i.l.bf16 %v3519_v58 }
 0x250   : > { %v953_v2 = vrot.slane %v3521_v15, 4 }
 0x252   : > { %v1702_v23 = vpop.f32.mrf.mxu1  ;;  %1898 = vmax.xlane.f32.xlu2 %v1897_v5 }
 0x253   : > { %v4253_v22 = vadd.f32 %v3563_v17, %v1702_v23 }
 0x255   : > { %v1888_v14 = vsel %vm1629_vm3, %v4253_v22, -inf }
 0x256   : > { %v1740_v18 = vpop.f32.mrf.mxu3 }
 0x257   : > { %v4255_v34 = vadd.f32 %v3564_v44, %v1740_v18  ;;  %v1721_v50 = vpop.f32.mrf.mxu2  ;;  %v941_v18 = vrot.slane %v3520_v16, 4 }
 0x258   : > { %v4257_v41 = vadd.f32 %v3564_v44, %v1721_v50 }
 0x259   : > { %v1894_v36 = vsel %vm1629_vm3, %v4255_v34, -inf }
 0x25a   : > { %3528 = vrot.lane.b32.xlu0 %v3846_v51, %s3694_s26  ;;  %v1704_v26 = vpop.f32.mrf.mxu1  ;;  %1895 = vmax.xlane.f32.xlu1 %v1894_v36  ;;  %v1891_v43 = vsel %vm1629_vm3, %v4257_v41, -inf }
 0x25b   : > { %1889 = vmax.xlane.f32.xlu2 %v1888_v14 }
 0x25e   : > { %v1742_v27 = vpop.f32.mrf.mxu3 }
 0x25f   : > { %v1723_v28 = vpop.f32.mrf.mxu2 }
 0x262   : > { %v1778_v31 = vpop.f32.mrf.mxu1 }
 0x263   : > { %v4265_v29 = vadd.f32 %v3564_v44, %v1778_v31 }
 0x265   : > { %v1900_v48 = vsel %vm1629_vm3, %v4265_v29, -inf }
 0x26a   : > { %v1780_v30 = vpop.f32.mrf.mxu1 }
 0x273   : > { %3523 = vrot.lane.b32.xlu2 %v3854_v56, %s3694_s26 }
 0x2a3   : > { %v1835_v51 = vpop.f32.mrf.mxu0 }
 0x2a4   : > { %v4272_v33 = vadd.f32 %v3565_v42, %v1835_v51 }
 0x2a5   : > { %v1854_v19 = vpop.f32.mrf.mxu1 }
 0x2a6   : > { %v4274_v38 = vadd.f32 %v3565_v42, %v1854_v19  ;;  %v1909_v3 = vsel %vm1629_vm3, %v4272_v33, -inf }
 0x2a7   : > { %1910 = vmax.xlane.f32.xlu0 %v1909_v3 }
 0x2a8   : > { %v1912_v32 = vsel %vm1629_vm3, %v4274_v38, -inf }
 0x2a9   : > { %1913 = vmax.xlane.f32.xlu2 %v1912_v32 }
 0x2ab   : > { %v1797_v45 = vpop.f32.mrf.mxu2  ;;  %v1837_v56 = vpop.f32.mrf.mxu0 }
 0x2ac   : > { %v4289_v4 = vadd.f32 %v3565_v42, %v1797_v45 }
 0x2ad   : > { %v1816_v59 = vpop.f32.mrf.mxu3  ;;  %v1856_v35 = vpop.f32.mrf.mxu1 }
 0x2ae   : > { %v4284_v60 = vadd.f32 %v3565_v42, %v1816_v59  ;;  %v1903_v55 = vsel %vm1629_vm3, %v4289_v4, -inf }
 0x2af   : > { %1892 = vmax.xlane.f32.xlu0 %v1891_v43 }
 0x2b0   : > { %v1906_v39 = vsel %vm1629_vm3, %v4284_v60, -inf }
 0x2b3   : > { %v1799_v47 = vpop.f32.mrf.mxu2 }
 0x2b5   : > { %v1818_v40 = vpop.f32.mrf.mxu3 }
 0x2b7   : > { %1901 = vmax.xlane.f32.xlu0 %v1900_v48 }
 0x2b9   : > { %v1881_v53 = vpop.xlane.xlu0 %1880 }
 0x2ba   : > { %v1915_v57 = vsub.f32 %v1867_v49, %v1881_v53 }
 0x2bc   : > { %v1927_v62 = vmul.f32 1.442695, %v1915_v57 }
 0x2bd   : > { %v1887_v63 = vpop.xlane.xlu2 %1886 }
 0x2be   : > { %3567 = vpow2.f32 %v1927_v62  ;;  %v1917_v1 = vsub.f32 %v4238_v24, %v1887_v63  ;;  %v1884_v6 = vpop.xlane.xlu1 %1883 }
 0x2bf   : > { %1907 = vmax.xlane.f32.xlu0 %v1906_v39  ;;  %v1916_v9 = vsub.f32 %v4240_v0, %v1884_v6 }
 0x2c0   : > { %v1931_v61 = vmul.f32 1.442695, %v1917_v1 }
 0x2c1   : > { %v1929_v10 = vmul.f32 1.442695, %v1916_v9 }
 0x2c2   : > { %3569 = vpow2.f32 %v1931_v61 }
 0x2c3   : > { %3571 = vpow2.f32 %v1929_v10 }
 0x2c4   : > { %v4291_v7 = vpop.eup %3567 }
 0x2c5   : > { %v1951_v17 = vsel %vm1629_vm3, %v4291_v7, 0.0  ;;  %v4296_v49 = vpop.xlane.xlu2 %1898 }
 0x2c6   : > { %1952 = vadd.xlane.f32.xlu1 %v1951_v17 }
 0x2c7   : > { %1904 = vmax.xlane.f32.xlu0 %v1903_v55 }
 0x2c8   : > { %v4300_v24 = vpop.eup %3569 }
 0x2c9   : > { %v1957_v13 = vsel %vm1629_vm3, %v4300_v24, 0.0  ;;  %v4306_v21 = vpop.eup %3571 }
 0x2cd   : > { %v1896_v12 = vpop.xlane.xlu1 %1895 }
 0x2ce   : > { %v1890_v11 = vpop.xlane.xlu2 %1889  ;;  %v1920_v37 = vsub.f32 %v4255_v34, %v1896_v12 }
 0x2cf   : > { %v1918_v44 = vsub.f32 %v4253_v22, %v1890_v11  ;;  %1958 = vadd.xlane.f32.xlu0 %v1957_v13  ;;  %v1954_v22 = vsel %vm1629_vm3, %v4306_v21, 0.0 }
 0x2d0   : > { %v1937_v5 = vmul.f32 1.442695, %v1920_v37 }
 0x2d1   : > { %v1933_v0 = vmul.f32 1.442695, %v1918_v44 }
 0x2d3   : > { %3573 = vpow2.f32 %v1933_v0 }
 0x2d4   : > { %3575 = vpow2.f32 %v1937_v5 }
 0x2d6   : > { %v3524_v23 = vpop.permute.xlu2 %3523 }
 0x2d7   : > { %v3526_v50 = vunpack.i.h.bf16 %v3524_v23  ;;  %v3525_v36 = vunpack.i.l.bf16 %v3524_v23  ;;  %1955 = vadd.xlane.f32.xlu0 %v1954_v22 }
 0x2d9   : > { %v951_v14 = vrot.slane %v3526_v50, 4  ;;  %v954_v26 = vsel %vm531_vm2, %v3526_v50, %v953_v2  ;;  %v939_v27 = vrot.slane %v3525_v36, 4  ;;  %v942_v34 = vsel %vm531_vm2, %v3525_v36, %v941_v18  ;;  %v4312_v28 = vpop.eup %3573 }
 0x2da   : > { %v962_v31 = vperm.slane %v954_v26, %v3825_v25  ;;  %v950_v30 = vperm.slane %v942_v34, %v3825_v25  ;;  %v1960_v19 = vsel %vm1629_vm3, %v4312_v28, 0.0  ;;  %v4326_v53 = vpop.eup %3575 }
 0x2db   : > { %v952_v42 = vsel %vm531_vm2, %v951_v14, %v3521_v15  ;;  %v940_v51 = vsel %vm531_vm2, %v939_v27, %v3520_v16  ;;  %1961 = vadd.xlane.f32.xlu1 %v1960_v19  ;;  %v1966_v9 = vsel %vm1629_vm3, %v4326_v53, 0.0 }
 0x2dc   : > { %v958_v3 = vperm.slane %v952_v42, %v3825_v25  ;;  %v975_v32 = vrot.slane %v962_v31, 4  ;;  %v946_v45 = vperm.slane %v940_v51, %v3825_v25  ;;  %v977_v56 = vrot.slane %v950_v30, 4 }
 0x2de   : > { %v963_v59 = vrot.slane %v958_v3, 4  ;;  %v965_v35 = vrot.slane %v946_v45, 4  ;;  %v976_v43 = vsel %vm531_vm2, %v975_v32, %v950_v30  ;;  %v978_v47 = vsel %vm531_vm2, %v962_v31, %v977_v56 }
 0x2df   : > { %v982_v40 = vperm.slane %v976_v43, %v3843_v46  ;;  %v986_v48 = vperm.slane %v978_v47, %v3843_v46 }
 0x2e0   : > { %v964_v57 = vsel %vm531_vm2, %v963_v59, %v946_v45  ;;  %v966_v58 = vsel %vm531_vm2, %v958_v3, %v965_v35 }
 0x2e1   : > { %v970_v62 = vperm.slane %v964_v57, %v3843_v46  ;;  %v974_v63 = vperm.slane %v966_v58, %v3843_v46  ;;  %v991_v1 = vrot.slane %v982_v40, 4  ;;  %v993_v39 = vrot.slane %v986_v48, 4 }
 0x2e3   : > { %v987_v61 = vrot.slane %v970_v62, 4  ;;  %v989_v6 = vrot.slane %v974_v63, 4  ;;  %v994_v17 = vsel %vm531_vm2, 0.0, %v993_v39  ;;  %v1466_v55 = vsel %vm531_vm2, %v993_v39, %v982_v40  ;;  %1967 = vadd.xlane.f32.xlu1 %v1966_v9 }
 0x2e4   : > { %v1471_v10 = vrot.slane %v994_v17, 4  ;;  %v992_v12 = vsel %vm531_vm2, 0.0, %v991_v1  ;;  %v1470_v44 = vperm.slane %v1466_v55, %v3825_v25  ;;  %v1921_v1 = vsub.f32 %v4249_v8, %v4296_v49 }
 0x2e5   : > { %v990_v11 = vsel %vm531_vm2, 0.0, %v989_v6  ;;  %v1455_v13 = vsel %vm531_vm2, %v989_v6, %v970_v62  ;;  %v988_v16 = vsel %vm531_vm2, 0.0, %v987_v61  ;;  %v4370_v6 = vpop.permute.xlu0 %3528 }
 0x2e6   : > { %v1460_v0 = vrot.slane %v990_v11, 4  ;;  %v1459_v15 = vperm.slane %v1455_v13, %v3825_v25  ;;  %v1472_v37 = vsel %vm531_vm2, %v1471_v10, %v992_v12  ;;  %v1491_v5 = vrot.slane %v1470_v44, 4 }
 0x2e7   : > { %v1476_v2 = vperm.slane %v1472_v37, %v3825_v25  ;;  %v1939_v39 = vmul.f32 1.442695, %v1921_v1 }
 0x2e8   : > { %v1461_v23 = vsel %vm531_vm2, %v1460_v0, %v988_v16  ;;  %v1479_v18 = vrot.slane %v1459_v15, 4 }
 0x2e9   : > { %v1465_v50 = vperm.slane %v1461_v23, %v3825_v25  ;;  %v1492_v36 = vsel %vm531_vm2, %v1476_v2, %v1491_v5  ;;  %v1489_v22 = vrot.slane %v1476_v2, 4  ;;  %3577 = vpow2.f32 %v1939_v39 }
 0x2ea   : > { %v1500_v14 = vperm.slane %v1492_v36, %v3843_v46 }
 0x2eb   : > { %v1480_v26 = vsel %vm531_vm2, %v1465_v50, %v1479_v18  ;;  %v1477_v27 = vrot.slane %v1465_v50, 4  ;;  %v1490_v34 = vsel %vm531_vm2, %v1489_v22, %v1470_v44  ;;  %3533 = vrot.lane.b32.xlu0 %v3823_v20, %s3694_s26 }
 0x2ec   : > { %v1488_v31 = vperm.slane %v1480_v26, %v3843_v46  ;;  %v1505_v30 = vrot.slane %v1500_v14, 4  ;;  %v1496_v42 = vperm.slane %v1490_v34, %v3843_v46 }
 0x2ed   : > { %v1478_v51 = vsel %vm531_vm2, %v1477_v27, %v1459_v15 }
 0x2ee   : > { %v1506_v19 = vsel %vm531_vm2, %v1505_v30, %v1488_v31  ;;  %v1484_v3 = vperm.slane %v1478_v51, %v3843_v46  ;;  %v1501_v32 = vrot.slane %v1496_v42, 4  ;;  %v1507_v45 = vrot.slane %v1488_v31, 4 }
 0x2ef   : > { %v1619_v56 = vpack.c.bf16 %v1506_v19, %v1506_v19  ;;  %v4368_v61 = vpop.eup %3577 }
 0x2f0   : > { %v1502_v59 = vsel %vm531_vm2, %v1501_v32, %v1484_v3  ;;  %v1508_v35 = vsel %vm531_vm2, %v1500_v14, %v1507_v45  ;;  %v1503_v20 = vrot.slane %v1484_v3, 4  ;;  %v1969_v17 = vsel %vm1629_vm3, %v4368_v61, 0.0 }
 0x2f1   : > { %v2342_v43 = vsel %vm2302_vm4, %v1619_v56, 0  ;;  %v1617_v47 = vpack.c.bf16 %v1502_v59, %v1502_v59  ;;  %v1620_v40 = vpack.c.bf16 %v1508_v35, %v1508_v35 }
 0x2f2   : > { %2351 = vmatpush.bf16.msrb.mxu0 %v2342_v43  ;;  %v1504_v48 = vsel %vm531_vm2, %v1496_v42, %v1503_v20 }
 0x2f3   : > { %v2304_v57 = vsel %vm2302_vm4, %v1617_v47, 0  ;;  %v2361_v58 = vsel %vm2302_vm4, %v1620_v40, 0  ;;  %v1618_v62 = vpack.c.bf16 %v1504_v48, %v1504_v48 }
 0x2f4   : > { %2313 = vmatpush.bf16.msrb.mxu2 %v2304_v57  ;;  %2370 = vmatpush.bf16.msrb.mxu1 %v2361_v58 }
 0x2f5   : > { %v2323_v63 = vsel %vm2302_vm4, %v1618_v62, 0 }
 0x2f6   : > { %2332 = vmatpush.bf16.msrb.mxu3 %v2323_v63 }
 0x2fc   : > { %3538 = vrot.lane.b32.xlu1 %v3850_v52, %s3694_s26 }
 0x315   : > { %1970 = vadd.xlane.f32.xlu0 %v1969_v17 }
 0x31a   : > { %v1911_v9 = vpop.xlane.xlu0 %1910 }
 0x31b   : > { %v1925_v55 = vsub.f32 %v4272_v33, %v1911_v9 }
 0x31c   : > { %v1914_v10 = vpop.xlane.xlu2 %1913 }
 0x31d   : > { %v1947_v11 = vmul.f32 1.442695, %v1925_v55  ;;  %v1926_v52 = vsub.f32 %v4274_v38, %v1914_v10 }
 0x31f   : > { %3579 = vpow2.f32 %v1947_v11  ;;  %v1949_v12 = vmul.f32 1.442695, %v1926_v52 }
 0x321   : > { %3581 = vpow2.f32 %v1949_v12 }
 0x322   : > { %v1893_v8 = vpop.xlane.xlu0 %1892 }
 0x323   : > { %v1919_v49 = vsub.f32 %v4257_v41, %v1893_v8 }
 0x325   : > { %v4377_v44 = vpop.eup %3579  ;;  %v1935_v13 = vmul.f32 1.442695, %v1919_v49 }
 0x326   : > { %v1981_v0 = vsel %vm1629_vm3, %v4377_v44, 0.0 }
 0x327   : > { %3583 = vpow2.f32 %v1935_v13  ;;  %1982 = vadd.xlane.f32.xlu0 %v1981_v0  ;;  %v4381_v33 = vpop.eup %3581  ;;  %v3531_v0 = vunpack.i.h.bf16 %v4370_v6 }
 0x328   : > { %v1984_v2 = vsel %vm1629_vm3, %v4381_v33, 0.0 }
 0x32a   : > { %v1902_v15 = vpop.xlane.xlu0 %1901 }
 0x32b   : > { %v1922_v37 = vsub.f32 %v4265_v29, %v1902_v15 }
 0x32d   : > { %v4384_v38 = vpop.eup %3583  ;;  %v1941_v16 = vmul.f32 1.442695, %v1922_v37 }
 0x32e   : > { %v1963_v41 = vsel %vm1629_vm3, %v4384_v38, 0.0 }
 0x32f   : > { %3585 = vpow2.f32 %v1941_v16  ;;  %1964 = vadd.xlane.f32.xlu2 %v1963_v41  ;;  %1985 = vadd.xlane.f32.xlu0 %v1984_v2 }
 0x332   : > { %v4390_v5 = vpop.xlane.xlu0 %1907 }
 0x335   : > { %v4392_v23 = vpop.eup %3585 }
 0x336   : > { %v1972_v18 = vsel %vm1629_vm3, %v4392_v23, 0.0 }
 0x337   : > { %1973 = vadd.xlane.f32.xlu2 %v1972_v18  ;;  %v3530_v18 = vunpack.i.l.bf16 %v4370_v6 }
 0x339   : > { %v1953_v29 = vpop.xlane.xlu1 %1952 }
 0x33a   : > { %3587 = vrcp.f32 %v1953_v29  ;;  %v1905_v50 = vpop.xlane.xlu0 %1904  ;;  %v1998_v31 = vand.u32 2147483648, %v1953_v29  ;;  %v1996_v42 = vand.u32 2147483647, %v1953_v29  ;;  %vm1992_vm6 = vweird.f32 %v1953_v29 }
 0x33b   : > { %v1923_v36 = vsub.f32 %v4289_v4, %v1905_v50 }
 0x33c   : > { %v1999_v4 = vor.u32 1.1754944e-38, %v1998_v31  ;;  %vm1997_vm8 = vcmp.eq.f32.partialorder %v1996_v42, 8.507059e+37 }
 0x33d   : > { %v1943_v22 = vmul.f32 1.442695, %v1923_v36 }
 0x33f   : > { %3589 = vpow2.f32 %v1943_v22  ;;  %v1009_v22 = vrot.slane %v3531_v0, 4 }
 0x340   : > { %v3588_v14 = vpop.eup %3587 }
 0x341   : > { %v1988_v26 = vmul.f32 %v3588_v14, %v1953_v29  ;;  %vm1993_vm5 = vweird.f32 %v3588_v14 }
 0x342   : > { %v1959_v34 = vpop.xlane.xlu0 %1958  ;;  %vm1994_vm7 = vmor %vm1992_vm6, %vm1993_vm5 }
 0x343   : > { %v1989_v27 = vsub.f32 1.0, %v1988_v26  ;;  %3591 = vrcp.f32 %v1959_v34  ;;  %v2028_v40 = vand.u32 2147483648, %v1959_v34  ;;  %v2026_v57 = vand.u32 2147483647, %v1959_v34 }
 0x344   : > { %vm2022_vm10 = vweird.f32 %v1959_v34 }
 0x345   : > { %v1990_v30 = vmul.f32 %v3588_v14, %v1989_v27  ;;  %v4397_v51 = vpop.eup %3589  ;;  %vm2027_vm12 = vcmp.eq.f32.partialorder %v2026_v57, 8.507059e+37 }
 0x346   : > { %v1975_v3 = vsel %vm1629_vm3, %v4397_v51, 0.0 }
 0x347   : > { %v1991_v19 = vadd.f32 %v3588_v14, %v1990_v30  ;;  %1976 = vadd.xlane.f32.xlu1 %v1975_v3  ;;  %v997_v3 = vrot.slane %v3530_v18, 4 }
 0x349   : > { %v1995_v32 = vsel %vm1994_vm7, %v3588_v14, %v1991_v19  ;;  %v3592_v45 = vpop.eup %3591 }
 0x34a   : > { %v2000_v56 = vsel %vm1997_vm8, %v1999_v4, %v1995_v32  ;;  %v2018_v35 = vmul.f32 %v3592_v45, %v1959_v34  ;;  %v1956_v20 = vpop.xlane.xlu0 %1955  ;;  %vm2023_vm9 = vweird.f32 %v3592_v45 }
 0x34b   : > { %v2001_v59 = vmul.f32 %v4291_v7, %v2000_v56  ;;  %3593 = vrcp.f32 %v1956_v20  ;;  %vm2024_vm11 = vmor %vm2022_vm10, %vm2023_vm9  ;;  %v2029_v7 = vor.u32 1.1754944e-38, %v2028_v40  ;;  %v2011_v11 = vand.u32 2147483647, %v1956_v20 }
 0x34c   : > { %v2019_v43 = vsub.f32 1.0, %v2018_v35  ;;  %v2013_v52 = vand.u32 2147483648, %v1956_v20  ;;  %vm2007_vm14 = vweird.f32 %v1956_v20 }
 0x34d   : > { %v2287_v47 = vpack.c.bf16 %v2001_v59, %v2001_v59  ;;  %vm2012_vm0 = vcmp.eq.f32.partialorder %v2011_v11, 8.507059e+37  ;;  %v2167_v27 = vsel %vm1629_vm3, %v2001_v59, 0.0 }
 0x34e   : > { %v2020_v48 = vmul.f32 %v3592_v45, %v2019_v43  ;;  %v1962_v58 = vpop.xlane.xlu1 %1961  ;;  %v2014_v15 = vor.u32 1.1754944e-38, %v2013_v52 }
 0x34f   : > { %3370 = vmatmul.msk.bf16.vlgmr.msrb.gmra.mxu2 %vm1629_vm3, %v2287_v47  ;;  %3595 = vrcp.f32 %v1962_v58  ;;  %3543 = vrot.lane.b32.xlu2 %v4042_v54, %s3694_s26  ;;  %v2043_v37 = vand.u32 2147483648, %v1962_v58  ;;  %v2041_v2 = vand.u32 2147483647, %v1962_v58  ;;  %vm2037_vm6 = vweird.f32 %v1962_v58  ;;  %s3346_s26 = sshll.u32 %s3678_s13, 3 }
 0x350   : > { %v2021_v62 = vadd.f32 %v3592_v45, %v2020_v48  ;;  %s450_s30 = scalar_lea.vmem %s4957_s8, %s3346_s26 }
 0x351   : > { %v3594_v63 = vpop.eup %3593  ;;  %v2044_v14 = vor.u32 1.1754944e-38, %v2043_v37  ;;  %vm2042_vm8 = vcmp.eq.f32.partialorder %v2041_v2, 8.507059e+37 }
 0x352   : > { %v2025_v1 = vsel %vm2024_vm11, %v3592_v45, %v2021_v62  ;;  %v2003_v39 = vmul.f32 %v3594_v63, %v1956_v20  ;;  %vm2008_vm13 = vweird.f32 %v3594_v63 }
 0x353   : > { %v2030_v17 = vsel %vm2027_vm12, %v2029_v7, %v2025_v1  ;;  %vm2009_vm15 = vmor %vm2007_vm14, %vm2008_vm13 }
 0x354   : > { %v2031_v9 = vmul.f32 %v4300_v24, %v2030_v17  ;;  %v2004_v55 = vsub.f32 1.0, %v2003_v39 }
 0x355   : > { %v3596_v10 = vpop.eup %3595 }
 0x356   : > { %v2005_v12 = vmul.f32 %v3594_v63, %v2004_v55  ;;  %v2033_v8 = vmul.f32 %v3596_v10, %v1962_v58  ;;  %v2289_v13 = vpack.c.bf16 %v2031_v9, %v2031_v9  ;;  %v4407_v16 = vpop.xlane.xlu1 %1967  ;;  %vm2038_vm5 = vweird.f32 %v3596_v10 }
 0x357   : > { %3597 = vrcp.f32 %v4407_v16  ;;  %vm2039_vm7 = vmor %vm2037_vm6, %vm2038_vm5  ;;  %vm2067_vm10 = vweird.f32 %v4407_v16 }
 0x358   : > { %v2006_v49 = vadd.f32 %v3594_v63, %v2005_v12  ;;  %v2034_v54 = vsub.f32 1.0, %v2033_v8  ;;  %3372 = vmatmul.msk.bf16.vlgmr.msrb.gmra.mxu0 %vm1629_vm3, %v2289_v13 }
 0x35a   : > { %v2010_v24 = vsel %vm2009_vm15, %v3594_v63, %v2006_v49  ;;  %v2035_v41 = vmul.f32 %v3596_v10, %v2034_v54 }
 0x35b   : > { %v2015_v29 = vsel %vm2012_vm0, %v2014_v15, %v2010_v24 }
 0x35c   : > { %v2016_v50 = vmul.f32 %v4306_v21, %v2015_v29  ;;  %v2036_v36 = vadd.f32 %v3596_v10, %v2035_v41  ;;  %v2170_v21 = vsel %vm1629_vm3, %v2031_v9, 0.0  ;;  %v1924_v9 = vsub.f32 %v4284_v60, %v4390_v5 }
 0x35d   : > { %v3534_v26 = vpop.permute.xlu0 %3533  ;;  %v4418_v59 = vpop.eup %3597 }
 0x35e   : > { %v2168_v34 = vsel %vm1629_vm3, %v2016_v50, 0.0  ;;  %v2040_v31 = vsel %vm2039_vm7, %v3596_v10, %v2036_v36  ;;  %v3536_v6 = vunpack.i.h.bf16 %v3534_v26  ;;  %v3535_v19 = vunpack.i.l.bf16 %v3534_v26 }
 0x35f   : > { %v2169_v30 = vadd.f32 %v2168_v34, %v2167_v27  ;;  %v2045_v42 = vsel %vm2042_vm8, %v2044_v14, %v2040_v31  ;;  %v2288_v32 = vpack.c.bf16 %v2016_v50, %v2016_v50  ;;  %v2063_v1 = vmul.f32 %v4418_v59, %v4407_v16 }
 0x360   : > { %v2046_v4 = vmul.f32 %v4312_v28, %v2045_v42  ;;  %v1007_v56 = vrot.slane %v3536_v6, 4  ;;  %v1010_v35 = vsel %vm531_vm2, %v3536_v6, %v1009_v22  ;;  %v995_v20 = vrot.slane %v3535_v19, 4 }
 0x361   : > { %v2171_v45 = vadd.f32 %v2170_v21, %v2169_v30  ;;  %v1018_v47 = vperm.slane %v1010_v35, %v3825_v25  ;;  %v998_v40 = vsel %vm531_vm2, %v3535_v19, %v997_v3  ;;  %3371 = vmatmul.msk.bf16.vlgmr.msrb.gmra.mxu3 %vm1629_vm3, %v2288_v32  ;;  %v2064_v13 = vsub.f32 1.0, %v2063_v1 }
 0x362   : > { %v2172_v43 = vsel %vm1629_vm3, %v2046_v4, 0.0  ;;  %v1008_v28 = vsel %vm531_vm2, %v1007_v56, %v3531_v0  ;;  %v996_v57 = vsel %vm531_vm2, %v995_v20, %v3530_v18  ;;  %v1006_v58 = vperm.slane %v998_v40, %v3825_v25 }
 0x363   : > { %v4424_v48 = vadd.f32 %v2172_v43, %v2171_v45  ;;  %v1014_v62 = vperm.slane %v1008_v28, %v3825_v25  ;;  %v1031_v63 = vrot.slane %v1018_v47, 4  ;;  %v1002_v7 = vperm.slane %v996_v57, %v3825_v25 }
 0x364   : > { %v1033_v39 = vrot.slane %v1006_v58, 4  ;;  %v2290_v17 = vpack.c.bf16 %v2046_v4, %v2046_v4  ;;  %v1945_v5 = vmul.f32 1.442695, %v1924_v9  ;;  %v2065_v29 = vmul.f32 %v4418_v59, %v2064_v13 }
 0x365   : > { %v1019_v55 = vrot.slane %v1014_v62, 4  ;;  %v1021_v10 = vrot.slane %v1002_v7, 4  ;;  %v1032_v11 = vsel %vm531_vm2, %v1031_v63, %v1006_v58  ;;  %vm2068_vm9 = vweird.f32 %v4418_v59 }
 0x366   : > { %v1034_v52 = vsel %vm531_vm2, %v1018_v47, %v1033_v39  ;;  %v1038_v12 = vperm.slane %v1032_v11, %v3843_v46  ;;  %3373 = vmatmul.msk.bf16.vlgmr.msrb.gmra.mxu1 %vm1629_vm3, %v2290_v17  ;;  %3599 = vpow2.f32 %v1945_v5  ;;  %v2066_v3 = vadd.f32 %v4418_v59, %v2065_v29  ;;  %vm2069_vm11 = vmor %vm2067_vm10, %vm2068_vm9 }
 0x367   : > { %v1020_v8 = vsel %vm531_vm2, %v1019_v55, %v1002_v7  ;;  %v1022_v49 = vsel %vm531_vm2, %v1014_v62, %v1021_v10  ;;  %v1042_v54 = vperm.slane %v1034_v52, %v3843_v46  ;;  %v2073_v32 = vand.u32 2147483648, %v4407_v16 }
 0x368   : > { %v1026_v0 = vperm.slane %v1020_v8, %v3843_v46  ;;  %v1030_v60 = vperm.slane %v1022_v49, %v3843_v46  ;;  %v1047_v15 = vrot.slane %v1038_v12, 4  ;;  %v2071_v35 = vand.u32 2147483647, %v4407_v16 }
 0x369   : > { %v1049_v37 = vrot.slane %v1042_v54, 4  ;;  %v2070_v58 = vsel %vm2069_vm11, %v4418_v59, %v2066_v3  ;;  %v2074_v16 = vor.u32 1.1754944e-38, %v2073_v32 }
 0x36a   : > { %v1043_v24 = vrot.slane %v1026_v0, 4  ;;  %v1045_v41 = vrot.slane %v1030_v60, 4  ;;  %v1048_v14 = vsel %vm531_vm2, 0.0, %v1047_v15  ;;  %vm2072_vm12 = vcmp.eq.f32.partialorder %v2071_v35, 8.507059e+37 }
 0x36b   : > { %v1050_v2 = vsel %vm531_vm2, 0.0, %v1049_v37  ;;  %v1520_v18 = vsel %vm531_vm2, %v1049_v37, %v1038_v12  ;;  %v2075_v10 = vsel %vm2072_vm12, %v2074_v16, %v2070_v58 }
 0x36c   : > { %v1046_v50 = vsel %vm531_vm2, 0.0, %v1045_v41  ;;  %v1524_v36 = vperm.slane %v1520_v18, %v3825_v25  ;;  %v1525_v22 = vrot.slane %v1050_v2, 4  ;;  %v1509_v27 = vsel %vm531_vm2, %v1045_v41, %v1026_v0  ;;  %v4465_v40 = vpop.eup %3599 }
 0x36d   : > { %v1514_v26 = vrot.slane %v1046_v50, 4  ;;  %v1044_v34 = vsel %vm531_vm2, 0.0, %v1043_v24  ;;  %v1513_v31 = vperm.slane %v1509_v27, %v3825_v25  ;;  %v1978_v17 = vsel %vm1629_vm3, %v4465_v40, 0.0 }
 0x36e   : > { %v1526_v30 = vsel %vm531_vm2, %v1525_v22, %v1048_v14  ;;  %v1545_v19 = vrot.slane %v1524_v36, 4  ;;  %v2076_v0 = vmul.f32 %v4326_v53, %v2075_v10  ;;  %v3539_v3 = vpop.permute.xlu1 %3538 }
 0x36f   : > { %v1515_v42 = vsel %vm531_vm2, %v1514_v26, %v1044_v34  ;;  %v1530_v6 = vperm.slane %v1526_v30, %v3825_v25  ;;  %v1533_v4 = vrot.slane %v1513_v31, 4 }
 0x370   : > { %v1519_v21 = vperm.slane %v1515_v42, %v3825_v25  ;;  %v2292_v24 = vpack.c.bf16 %v2076_v0, %v2076_v0 }
 0x371   : > { %v1546_v45 = vsel %vm531_vm2, %v1530_v6, %v1545_v19  ;;  %v1543_v56 = vrot.slane %v1530_v6, 4 }
 0x372   : > { %v1534_v20 = vsel %vm531_vm2, %v1519_v21, %v1533_v4  ;;  %v1554_v43 = vperm.slane %v1546_v45, %v3843_v46  ;;  %v1531_v47 = vrot.slane %v1519_v21, 4  ;;  %v3541_v45 = vunpack.i.h.bf16 %v3539_v3 }
 0x373   : > { %v1542_v28 = vperm.slane %v1534_v20, %v3843_v46  ;;  %v1544_v57 = vsel %vm531_vm2, %v1543_v56, %v1524_v36  ;;  %v3540_v56 = vunpack.i.l.bf16 %v3539_v3 }
 0x374   : > { %v1559_v62 = vrot.slane %v1554_v43, 4  ;;  %v1532_v63 = vsel %vm531_vm2, %v1531_v47, %v1513_v31  ;;  %v1550_v7 = vperm.slane %v1544_v57, %v3843_v46  ;;  %v2175_v57 = vsel %vm1629_vm3, %v2076_v0, 0.0 }
 0x375   : > { %v1538_v1 = vperm.slane %v1532_v63, %v3843_v46  ;;  %v1561_v39 = vrot.slane %v1542_v28, 4  ;;  %v1065_v63 = vrot.slane %v3541_v45, 4 }
 0x376   : > { %v1560_v9 = vsel %vm531_vm2, %v1559_v62, %v1542_v28  ;;  %v1555_v55 = vrot.slane %v1550_v7, 4 }
 0x377   : > { %v1623_v11 = vpack.c.bf16 %v1560_v9, %v1560_v9  ;;  %v1562_v59 = vsel %vm531_vm2, %v1554_v43, %v1561_v39  ;;  %v1557_v52 = vrot.slane %v1538_v1, 4 }
 0x378   : > { %1979 = vadd.xlane.f32.xlu2 %v1978_v17  ;;  %v1556_v12 = vsel %vm531_vm2, %v1555_v55, %v1538_v1  ;;  %v1624_v8 = vpack.c.bf16 %v1562_v59, %v1562_v59 }
 0x379   : > { %v2418_v49 = vsel %vm2302_vm4, %v1623_v11, 0  ;;  %v1621_v54 = vpack.c.bf16 %v1556_v12, %v1556_v12  ;;  %v1558_v13 = vsel %vm531_vm2, %v1550_v7, %v1557_v52  ;;  %v1053_v7 = vrot.slane %v3540_v56, 4 }
 0x37a   : > { %2427 = vmatpush.bf16.msra.mxu0 %v2418_v49  ;;  %v2437_v60 = vsel %vm2302_vm4, %v1624_v8, 0  ;;  %v1622_v5 = vpack.c.bf16 %v1558_v13, %v1558_v13 }
 0x37b   : > { %v2380_v15 = vsel %vm2302_vm4, %v1621_v54, 0  ;;  %2446 = vmatpush.bf16.msra.mxu1 %v2437_v60 }
 0x37c   : > { %2389 = vmatpush.bf16.msra.mxu2 %v2380_v15  ;;  %v2399_v37 = vsel %vm2302_vm4, %v1622_v5, 0 }
 0x37d   : > { %2408 = vmatpush.bf16.msra.mxu3 %v2399_v37 }
 0x380   : > { %3375 = vmatmul.msk.bf16.vlgmr.msra.gmra.mxu3 %vm1629_vm3, %v2292_v24 }
 0x388   : > { %v1971_v41 = vpop.xlane.xlu0 %1970 }
 0x389   : > { %3601 = vrcp.f32 %v1971_v41  ;;  %v2088_v53 = vand.u32 2147483648, %v1971_v41  ;;  %v2086_v36 = vand.u32 2147483647, %v1971_v41  ;;  %vm2082_vm14 = vweird.f32 %v1971_v41 }
 0x38b   : > { %v2089_v14 = vor.u32 1.1754944e-38, %v2088_v53  ;;  %vm2087_vm0 = vcmp.eq.f32.partialorder %v2086_v36, 8.507059e+37 }
 0x38f   : > { %v3602_v2 = vpop.eup %3601 }
 0x390   : > { %v2078_v18 = vmul.f32 %v3602_v2, %v1971_v41  ;;  %vm2083_vm13 = vweird.f32 %v3602_v2 }
 0x391   : > { %vm2084_vm15 = vmor %vm2082_vm14, %vm2083_vm13 }
 0x392   : > { %v2079_v29 = vsub.f32 1.0, %v2078_v18 }
 0x394   : > { %v2080_v50 = vmul.f32 %v3602_v2, %v2079_v29 }
 0x396   : > { %v2081_v22 = vadd.f32 %v3602_v2, %v2080_v50 }
 0x398   : > { %v2085_v26 = vsel %vm2084_vm15, %v3602_v2, %v2081_v22 }
 0x399   : > { %v2090_v27 = vsel %vm2087_vm0, %v2089_v14, %v2085_v26 }
 0x39a   : > { %v2091_v34 = vmul.f32 %v4368_v61, %v2090_v27  ;;  %v4486_v31 = vpop.xlane.xlu0 %1982 }
 0x39b   : > { %3603 = vrcp.f32 %v4486_v31  ;;  %v2148_v47 = vand.u32 2147483648, %v4486_v31  ;;  %v2146_v39 = vand.u32 2147483647, %v4486_v31  ;;  %vm2142_vm13 = vweird.f32 %v4486_v31 }
 0x39c   : > { %v2293_v30 = vpack.c.bf16 %v2091_v34, %v2091_v34  ;;  %v2177_v1 = vsel %vm1629_vm3, %v2091_v34, 0.0 }
 0x39d   : > { %v4506_v11 = vor.u32 1.1754944e-38, %v2148_v47  ;;  %vm4539_vm0 = vcmp.eq.f32.partialorder %v2146_v39, 8.507059e+37 }
 0x39e   : > { %3376 = vmatmul.msk.bf16.vlgmr.msra.gmra.mxu0 %vm1629_vm3, %v2293_v30 }
 0x3a1   : > { %v4493_v19 = vpop.eup %3603 }
 0x3a2   : > { %v4490_v42 = vpop.xlane.xlu0 %1985  ;;  %v1965_v6 = vpop.xlane.xlu2 %1964  ;;  %v2138_v61 = vmul.f32 %v4493_v19, %v4486_v31  ;;  %vm2143_vm11 = vweird.f32 %v4493_v19 }
 0x3a3   : > { %3605 = vrcp.f32 %v4490_v42  ;;  %v2056_v58 = vand.u32 2147483647, %v1965_v6  ;;  %v2058_v62 = vand.u32 2147483648, %v1965_v6  ;;  %vm2052_vm6 = vweird.f32 %v1965_v6 }
 0x3a4   : > { %3607 = vrcp.f32 %v1965_v6  ;;  %v2139_v43 = vsub.f32 1.0, %v2138_v61  ;;  %vm2157_vm15 = vweird.f32 %v4490_v42 }
 0x3a5   : > { %vm2057_vm8 = vcmp.eq.f32.partialorder %v2056_v58, 8.507059e+37  ;;  %v2059_v52 = vor.u32 1.1754944e-38, %v2058_v62 }
 0x3a6   : > { %v2140_v10 = vmul.f32 %v4493_v19, %v2139_v43 }
 0x3a9   : > { %v4495_v21 = vpop.eup %3605 }
 0x3aa   : > { %v3608_v4 = vpop.eup %3607  ;;  %v1974_v32 = vpop.xlane.xlu2 %1973  ;;  %v2153_v20 = vmul.f32 %v4495_v21, %v4490_v42 }
 0x3ab   : > { %v2048_v35 = vmul.f32 %v3608_v4, %v1965_v6  ;;  %3609 = vrcp.f32 %v1974_v32  ;;  %vm2053_vm5 = vweird.f32 %v3608_v4  ;;  %v2101_v9 = vand.u32 2147483647, %v1974_v32 }
 0x3ac   : > { %v2154_v17 = vsub.f32 1.0, %v2153_v20  ;;  %vm2054_vm7 = vmor %vm2052_vm6, %vm2053_vm5  ;;  %vm2097_vm9 = vweird.f32 %v1974_v32  ;;  %v2103_v54 = vand.u32 2147483648, %v1974_v32  ;;  %vm2158_vm5 = vweird.f32 %v4495_v21 }
 0x3ad   : > { %v2049_v28 = vsub.f32 1.0, %v2048_v35  ;;  %vm4509_vm10 = vcmp.eq.f32.partialorder %v2101_v9, 8.507059e+37  ;;  %vm4558_vm6 = vmor %vm2142_vm13, %vm2143_vm11 }
 0x3ae   : > { %v2155_v60 = vmul.f32 %v4495_v21, %v2154_v17  ;;  %v2104_v6 = vor.u32 1.1754944e-38, %v2103_v54 }
 0x3af   : > { %v2050_v16 = vmul.f32 %v3608_v4, %v2049_v28 }
 0x3b0   : > { %v2156_v39 = vadd.f32 %v4495_v21, %v2155_v60 }
 0x3b1   : > { %v3610_v55 = vpop.eup %3609  ;;  %v2051_v59 = vadd.f32 %v3608_v4, %v2050_v16  ;;  %v2161_v16 = vand.u32 2147483647, %v4490_v42 }
 0x3b2   : > { %v2093_v12 = vmul.f32 %v3610_v55, %v1974_v32  ;;  %v3544_v8 = vpop.permute.xlu2 %3543  ;;  %vm2098_vm12 = vweird.f32 %v3610_v55 }
 0x3b3   : > { %v2055_v49 = vsel %vm2054_vm7, %v3608_v4, %v2051_v59  ;;  %v3546_v13 = vunpack.i.h.bf16 %v3544_v8  ;;  %v3545_v0 = vunpack.i.l.bf16 %v3544_v8  ;;  %vm2099_vm14 = vmor %vm2097_vm9, %vm2098_vm12  ;;  %vm4562_vm7 = vcmp.eq.f32.partialorder %v2161_v16, 8.507059e+37 }
 0x3b4   : > { %v2060_v5 = vsel %vm2057_vm8, %v2059_v52, %v2055_v49  ;;  %v2094_v15 = vsub.f32 1.0, %v2093_v12  ;;  %vm4579_vm8 = vmor %vm2157_vm15, %vm2158_vm5  ;;  %vm2276_vm5 = vcmask 195584  }
 0x3b5   : > { %v2061_v24 = vmul.f32 %v4384_v38, %v2060_v5  ;;  %v1063_v41 = vrot.slane %v3546_v13, 4  ;;  %v1066_v2 = vsel %vm531_vm2, %v3546_v13, %v1065_v63  ;;  %v1051_v18 = vrot.slane %v3545_v0, 4 }
 0x3b6   : > { %v2095_v29 = vmul.f32 %v3610_v55, %v2094_v15  ;;  %v1074_v53 = vperm.slane %v1066_v2, %v3825_v25  ;;  %v1054_v50 = vsel %vm531_vm2, %v3545_v0, %v1053_v7 }
 0x3b7   : > { %v2174_v36 = vsel %vm1629_vm3, %v2061_v24, 0.0  ;;  %v1064_v22 = vsel %vm531_vm2, %v1063_v41, %v3541_v45  ;;  %v1052_v14 = vsel %vm531_vm2, %v1051_v18, %v3540_v56  ;;  %v1062_v38 = vperm.slane %v1054_v50, %v3825_v25 }
 0x3b8   : > { %v2176_v26 = vadd.f32 %v2175_v57, %v2174_v36  ;;  %v2096_v27 = vadd.f32 %v3610_v55, %v2095_v29  ;;  %v1070_v34 = vperm.slane %v1064_v22, %v3825_v25  ;;  %v1087_v30 = vrot.slane %v1074_v53, 4 }
 0x3b9   : > { %v1058_v3 = vperm.slane %v1052_v14, %v3825_v25  ;;  %v1089_v61 = vrot.slane %v1062_v38, 4  ;;  %v2291_v4 = vpack.c.bf16 %v2061_v24, %v2061_v24  ;;  %v2160_v22 = vsel %vm4579_vm8, %v4495_v21, %v2156_v39 }
 0x3ba   : > { %v2100_v45 = vsel %vm2099_vm14, %v3610_v55, %v2096_v27  ;;  %v1075_v56 = vrot.slane %v1070_v34, 4  ;;  %v1088_v35 = vsel %vm531_vm2, %v1087_v30, %v1062_v38  ;;  %v4528_v20 = vpop.xlane.xlu1 %1976  ;;  %v2178_v43 = vadd.f32 %v2177_v1, %v2176_v26 }
 0x3bb   : > { %v2105_v47 = vsel %vm4509_vm10, %v2104_v6, %v2100_v45  ;;  %v1077_v28 = vrot.slane %v1058_v3, 4  ;;  %v1090_v32 = vsel %vm531_vm2, %v1074_v53, %v1089_v61  ;;  %v1094_v57 = vperm.slane %v1088_v35, %v3843_v46  ;;  %3374 = vmatmul.msk.bf16.vlgmr.msra.gmra.mxu2 %vm1629_vm3, %v2291_v4 }
 0x3bc   : > { %v2106_v58 = vmul.f32 %v4392_v23, %v2105_v47  ;;  %v1076_v62 = vsel %vm531_vm2, %v1075_v56, %v1058_v3  ;;  %v1098_v63 = vperm.slane %v1090_v32, %v3843_v46  ;;  %3611 = vrcp.f32 %v4528_v20 }
 0x3bd   : > { %v2163_v1 = vand.u32 2147483648, %v4490_v42  ;;  %v1078_v17 = vsel %vm531_vm2, %v1070_v34, %v1077_v28  ;;  %v1082_v9 = vperm.slane %v1076_v62, %v3843_v46  ;;  %v2141_v23 = vadd.f32 %v4493_v19, %v2140_v10 }
 0x3be   : > { %v1086_v55 = vperm.slane %v1078_v17, %v3843_v46  ;;  %v1105_v59 = vrot.slane %v1098_v63, 4  ;;  %v2179_v52 = vsel %vm1629_vm3, %v2106_v58, 0.0  ;;  %v1103_v12 = vrot.slane %v1094_v57, 4 }
 0x3bf   : > { %v2294_v8 = vpack.c.bf16 %v2106_v58, %v2106_v58  ;;  %v1099_v49 = vrot.slane %v1082_v9, 4  ;;  %v2164_v5 = vor.u32 1.1754944e-38, %v2163_v1  ;;  %v2145_v41 = vsel %vm4558_vm6, %v4493_v19, %v2141_v23 }
 0x3c0   : > { %v1101_v54 = vrot.slane %v1086_v55, 4  ;;  %v1106_v13 = vsel %vm531_vm2, 0.0, %v1105_v59  ;;  %v1574_v0 = vsel %vm531_vm2, %v1105_v59, %v1094_v57  ;;  %v4573_v18 = vadd.f32 %v2179_v52, %v2178_v43 }
 0x3c1   : > { %v1578_v15 = vperm.slane %v1574_v0, %v3825_v25  ;;  %v1579_v37 = vrot.slane %v1106_v13, 4  ;;  %3377 = vmatmul.msk.bf16.vlgmr.msra.gmra.mxu1 %vm1629_vm3, %v2294_v8  ;;  %v1104_v53 = vsel %vm531_vm2, 0.0, %v1103_v12  ;;  %v1100_v14 = vsel %vm531_vm2, 0.0, %v1099_v49 }
 0x3c2   : > { %v3612_v24 = vpop.eup %3611  ;;  %v1102_v31 = vsel %vm531_vm2, 0.0, %v1101_v54  ;;  %v1563_v2 = vsel %vm531_vm2, %v1101_v54, %v1082_v9  ;;  %v2150_v6 = vsel %vm4539_vm0, %v4506_v11, %v2145_v41  ;;  %v2116_v3 = vand.u32 2147483647, %v4528_v20 }
 0x3c3   : > { %v1568_v50 = vrot.slane %v1102_v31, 4  ;;  %v2108_v36 = vmul.f32 %v3612_v24, %v4528_v20  ;;  %v1567_v19 = vperm.slane %v1563_v2, %v3825_v25  ;;  %v1580_v38 = vsel %vm531_vm2, %v1579_v37, %v1104_v53 }
 0x3c4   : > { %v1599_v42 = vrot.slane %v1578_v15, 4  ;;  %v1584_v34 = vperm.slane %v1580_v38, %v3825_v25  ;;  %v2118_v61 = vand.u32 2147483648, %v4528_v20  ;;  %vm2113_vm9 = vweird.f32 %v3612_v24 }
 0x3c5   : > { %v2109_v26 = vsub.f32 1.0, %v2108_v36  ;;  %v1569_v27 = vsel %vm531_vm2, %v1568_v50, %v1100_v14  ;;  %v1587_v30 = vrot.slane %v1567_v19, 4  ;;  %v2165_v35 = vsel %vm4562_vm7, %v2164_v5, %v2160_v22 }
 0x3c6   : > { %v1573_v21 = vperm.slane %v1569_v27, %v3825_v25  ;;  %v1600_v45 = vsel %vm531_vm2, %v1584_v34, %v1599_v42  ;;  %v1597_v56 = vrot.slane %v1584_v34, 4  ;;  %vm2112_vm10 = vweird.f32 %v4528_v20 }
 0x3c7   : > { %v2110_v4 = vmul.f32 %v3612_v24, %v2109_v26  ;;  %v1608_v47 = vperm.slane %v1600_v45, %v3843_v46  ;;  %vm2114_vm11 = vmor %vm2112_vm10, %vm2113_vm9  ;;  %v2119_v58 = vor.u32 1.1754944e-38, %v2118_v61  ;;  %vm2117_vm12 = vcmp.eq.f32.partialorder %v2116_v3, 8.507059e+37 }
 0x3c8   : > { %v1588_v43 = vsel %vm531_vm2, %v1573_v21, %v1587_v30  ;;  %v1585_v28 = vrot.slane %v1573_v21, 4  ;;  %v1598_v57 = vsel %vm531_vm2, %v1597_v56, %v1578_v15  ;;  %v4612_v55 = vmul.f32 %v4377_v44, %v2150_v6 }
 0x3c9   : > { %v2111_v11 = vadd.f32 %v3612_v24, %v2110_v4  ;;  %v1596_v32 = vperm.slane %v1588_v43, %v3843_v46  ;;  %v1613_v62 = vrot.slane %v1608_v47, 4  ;;  %v1604_v7 = vperm.slane %v1598_v57, %v3843_v46 }
 0x3ca   : > { %v1586_v63 = vsel %vm531_vm2, %v1585_v28, %v1567_v19  ;;  %v4616_v12 = vmul.f32 %v4381_v33, %v2165_v35  ;;  %v2297_v33 = vpack.c.bf16 %v4612_v55, %v4612_v55  ;;  %vm2274_vm0 = vcmask 130048  }
 0x3cb   : > { %v2115_v16 = vsel %vm2114_vm11, %v3612_v24, %v2111_v11  ;;  %v1592_v1 = vperm.slane %v1586_v63, %v3843_v46  ;;  %v1615_v17 = vrot.slane %v1596_v32, 4  ;;  %v1614_v23 = vsel %vm531_vm2, %v1613_v62, %v1596_v32 }
 0x3cc   : > { %v2120_v9 = vsel %vm2117_vm12, %v2119_v58, %v2115_v16  ;;  %v1609_v20 = vrot.slane %v1604_v7, 4  ;;  %v1627_v59 = vpack.c.bf16 %v1614_v23, %v1614_v23  ;;  %v2298_v37 = vpack.c.bf16 %v4616_v12, %v4616_v12 }
 0x3cd   : > { %v1616_v39 = vsel %vm531_vm2, %v1608_v47, %v1615_v17  ;;  %v1611_v52 = vrot.slane %v1592_v1, 4  ;;  %v4620_v54 = vmul.f32 %v4397_v51, %v2120_v9 }
 0x3ce   : > { %v1610_v8 = vsel %vm531_vm2, %v1609_v20, %v1592_v1  ;;  %v1628_v49 = vpack.c.bf16 %v1616_v39, %v1616_v39  ;;  %v2494_v13 = vsel %vm2302_vm4, %v1627_v59, 0 }
 0x3cf   : > { %v1625_v0 = vpack.c.bf16 %v1610_v8, %v1610_v8  ;;  %v1612_v10 = vsel %vm531_vm2, %v1604_v7, %v1611_v52  ;;  %2503 = vmatpush.bf16.msrb.mxu0 %v2494_v13  ;;  %v2295_v24 = vpack.c.bf16 %v4620_v54, %v4620_v54 }
 0x3d0   : > { %v2513_v44 = vsel %vm2302_vm4, %v1628_v49, 0  ;;  %v1626_v60 = vpack.c.bf16 %v1612_v10, %v1612_v10 }
 0x3d1   : > { %v2456_v15 = vsel %vm2302_vm4, %v1625_v0, 0  ;;  %2522 = vmatpush.bf16.msrb.mxu1 %v2513_v44 }
 0x3d2   : > { %v2315_v5 = vpop.f32.mrf.mxu2  ;;  %2465 = vmatpush.bf16.msrb.mxu2 %v2456_v15  ;;  %v2475_v51 = vsel %vm2302_vm4, %v1626_v60, 0  ;;  %3380 = vmatmul.msk.bf16.vlgmr.msrb.gmra.mxu0 %vm1629_vm3, %v2297_v33 }
 0x3d3   : > { %2484 = vmatpush.bf16.msrb.mxu3 %v2475_v51  ;;  %v2530_v41 = vrot.slane %v2315_v5, 4 }
 0x3d4   : > { %3381 = vmatmul.msk.bf16.vlgmr.msrb.gmra.mxu1 %vm1629_vm3, %v2298_v37 }
 0x3d5   : > { %3378 = vmatmul.msk.bf16.vlgmr.msrb.gmra.mxu2 %vm1629_vm3, %v2295_v24  ;;  %v2353_v31 = vpop.f32.mrf.mxu0 }
 0x3d6   : > { %v2528_v2 = vrot.slane %v2353_v31, 4  ;;  %v2531_v29 = vsel %vm531_vm2, %v2353_v31, %v2530_v41 }
 0x3d7   : > { %v2539_v14 = vperm.slane %v2531_v29, %v3825_v25 }
 0x3d8   : > { %v2529_v50 = vsel %vm531_vm2, %v2528_v2, %v2315_v5 }
 0x3d9   : > { %v2535_v19 = vperm.slane %v2529_v50, %v3825_v25  ;;  %v2566_v3 = vrot.slane %v2539_v14, 4 }
 0x3da   : > { %v2317_v53 = vpop.f32.mrf.mxu2 }
 0x3db   : > { %v2554_v34 = vrot.slane %v2535_v19, 4 }
 0x3dd   : > { %v2355_v36 = vpop.f32.mrf.mxu0 }
 0x3e3   : > { %v2372_v22 = vpop.f32.mrf.mxu1 }
 0x3e4   : > { %v2540_v38 = vrot.slane %v2372_v22, 4  ;;  %v2334_v42 = vpop.f32.mrf.mxu3 }
 0x3e5   : > { %v2542_v26 = vrot.slane %v2334_v42, 4 }
 0x3e6   : > { %v2541_v27 = vsel %vm531_vm2, %v2540_v38, %v2334_v42 }
 0x3e7   : > { %v2543_v30 = vsel %vm531_vm2, %v2372_v22, %v2542_v26  ;;  %v2547_v6 = vperm.slane %v2541_v27, %v3825_v25 }
 0x3e8   : > { %v2551_v61 = vperm.slane %v2543_v30, %v3825_v25 }
 0x3e9   : > { %v2552_v21 = vrot.slane %v2547_v6, 4  ;;  %v2555_v4 = vsel %vm531_vm2, %v2547_v6, %v2554_v34 }
 0x3ea   : > { %v2563_v45 = vperm.slane %v2555_v4, %v3843_v46  ;;  %v2564_v56 = vrot.slane %v2551_v61, 4  ;;  %v2567_v35 = vsel %vm531_vm2, %v2551_v61, %v2566_v3 }
 0x3eb   : > { %v1980_v43 = vpop.xlane.xlu2 %1979  ;;  %v2553_v47 = vsel %vm531_vm2, %v2552_v21, %v2535_v19  ;;  %v2575_v28 = vperm.slane %v2567_v35, %v3843_v46  ;;  %v2374_v11 = vpop.f32.mrf.mxu1 }
 0x3ec   : > { %3613 = vrcp.f32 %v1980_v43  ;;  %v2559_v32 = vperm.slane %v2553_v47, %v3843_v46  ;;  %v2565_v57 = vsel %vm531_vm2, %v2564_v56, %v2539_v14  ;;  %v2578_v58 = vrot.slane %v2563_v45, 4  ;;  %v2336_v62 = vpop.f32.mrf.mxu3 }
 0x3ed   : > { %v2571_v63 = vperm.slane %v2565_v57, %v3843_v46  ;;  %v2582_v7 = vrot.slane %v2575_v28, 4  ;;  %v2131_v24 = vand.u32 2147483647, %v1980_v43  ;;  %v2133_v2 = vand.u32 2147483648, %v1980_v43 }
 0x3ee   : > { %v2576_v16 = vrot.slane %v2559_v32, 4  ;;  %v2579_v1 = vsel %vm531_vm2, 0.0, %v2578_v58  ;;  %v2696_v17 = vsel %vm531_vm2, %v2578_v58, %v2559_v32  ;;  %vm2127_vm13 = vweird.f32 %v1980_v43 }
 0x3ef   : > { %v2580_v9 = vrot.slane %v2571_v63, 4  ;;  %v2583_v23 = vsel %vm531_vm2, 0.0, %v2582_v7  ;;  %v2700_v20 = vperm.slane %v2696_v17, %v3825_v25  ;;  %v2701_v59 = vrot.slane %v2579_v1, 4 }
 0x3f0   : > { %v2577_v39 = vsel %vm531_vm2, 0.0, %v2576_v16  ;;  %v2707_v52 = vsel %vm531_vm2, %v2582_v7, %v2571_v63  ;;  %v2712_v8 = vrot.slane %v2583_v23, 4  ;;  %v2134_v30 = vor.u32 1.1754944e-38, %v2133_v2 }
 0x3f1   : > { %v2702_v13 = vsel %vm531_vm2, %v2701_v59, %v2577_v39  ;;  %v2720_v0 = vrot.slane %v2700_v20, 4  ;;  %v2581_v10 = vsel %vm531_vm2, 0.0, %v2580_v9  ;;  %v2711_v44 = vperm.slane %v2707_v52, %v3825_v25 }
 0x3f2   : > { %v3614_v49 = vpop.eup %3613  ;;  %v2706_v60 = vperm.slane %v2702_v13, %v3825_v25  ;;  %v2713_v15 = vsel %vm531_vm2, %v2712_v8, %v2581_v10  ;;  %vm2132_vm15 = vcmp.eq.f32.partialorder %v2131_v24, 8.507059e+37  ;;  %v2181_v47 = vsel %vm1629_vm3, %v4620_v54, 0.0 }
 0x3f3   : > { %v2123_v5 = vmul.f32 %v3614_v49, %v1980_v43  ;;  %v2717_v33 = vperm.slane %v2713_v15, %v3825_v25  ;;  %v2732_v51 = vrot.slane %v2711_v44, 4  ;;  %vm2128_vm4 = vweird.f32 %v3614_v49 }
 0x3f4   : > { %v2721_v41 = vsel %vm531_vm2, %v2706_v60, %v2720_v0  ;;  %v2718_v31 = vrot.slane %v2706_v60, 4  ;;  %vm2129_vm14 = vmor %vm2127_vm13, %vm2128_vm4  ;;  %v2184_v57 = vsel %vm1629_vm3, %v4612_v55, 0.0  ;;  %v2186_v62 = vsel %vm1629_vm3, %v4616_v12, 0.0 }
 0x3f5   : > { %v2124_v37 = vsub.f32 1.0, %v2123_v5  ;;  %v2729_v29 = vperm.slane %v2721_v41, %v3843_v46  ;;  %v2733_v53 = vsel %vm531_vm2, %v2717_v33, %v2732_v51  ;;  %v2730_v50 = vrot.slane %v2717_v33, 4 }
 0x3f6   : > { %v2741_v19 = vperm.slane %v2733_v53, %v3843_v46  ;;  %v2719_v22 = vsel %vm531_vm2, %v2718_v31, %v2700_v20 }
 0x3f7   : > { %v2125_v36 = vmul.f32 %v3614_v49, %v2124_v37  ;;  %v2748_v14 = vrot.slane %v2729_v29, 4  ;;  %v2725_v38 = vperm.slane %v2719_v22, %v3843_v46  ;;  %v2731_v42 = vsel %vm531_vm2, %v2730_v50, %v2711_v44 }
 0x3f8   : > { %v2746_v27 = vrot.slane %v2741_v19, 4  ;;  %v2737_v34 = vperm.slane %v2731_v42, %v3843_v46 }
 0x3f9   : > { %v2126_v26 = vadd.f32 %v3614_v49, %v2125_v36  ;;  %v4673_v6 = vsel %vm531_vm2, %v2741_v19, %v2748_v14  ;;  %v2744_v3 = vrot.slane %v2725_v38, 4 }
 0x3fa   : > { %v4676_v21 = vsel %vm531_vm2, %v2746_v27, %v2729_v29  ;;  %v2742_v4 = vrot.slane %v2737_v34, 4 }
 0x3fb   : > { %v2130_v61 = vsel %vm2129_vm14, %v3614_v49, %v2126_v26  ;;  %v4679_v56 = vsel %vm531_vm2, %v2737_v34, %v2744_v3 }
 0x3fc   : > { %v2135_v45 = vsel %vm2132_vm15, %v2134_v30, %v2130_v61  ;;  %v4683_v43 = vsel %vm531_vm2, %v2742_v4, %v2725_v38  ;;  %vm3097_vm15 = vcmask 523264  }
 0x3fd   : > { %v2136_v35 = vmul.f32 %v4465_v40, %v2135_v45 }
 0x3ff   : > { %v2182_v28 = vsel %vm1629_vm3, %v2136_v35, 0.0  ;;  %v2296_v11 = vpack.c.bf16 %v2136_v35, %v2136_v35 }
 0x400   : > { %v2183_v32 = vadd.f32 %v2182_v28, %v2181_v47 }
 0x401   : > { %3379 = vmatmul.msk.bf16.vlgmr.msrb.gmra.mxu3 %vm1629_vm3, %v2296_v11 }
 0x402   : > { %v2185_v58 = vadd.f32 %v2184_v57, %v2183_v32 }
 0x403   : > { %v2410_v63 = vpop.f32.mrf.mxu3 }
 0x404   : > { %v4693_v40 = vadd.f32 %v2186_v62, %v2185_v58  ;;  %v2598_v54 = vrot.slane %v2410_v63, 4 }
 0x40b   : > { %v2412_v7 = vpop.f32.mrf.mxu3 }
 0x41b   : > { %v2429_v16 = vpop.f32.mrf.mxu0 }
 0x41c   : > { %v2584_v17 = vrot.slane %v2429_v16, 4 }
 0x423   : > { %v2431_v1 = vpop.f32.mrf.mxu0 }
 0x43e   : > { %v2391_v9 = vpop.f32.mrf.mxu2  ;;  %v2448_v23 = vpop.f32.mrf.mxu1 }
 0x43f   : > { %v2585_v20 = vsel %vm531_vm2, %v2584_v17, %v2391_v9  ;;  %v2586_v59 = vrot.slane %v2391_v9, 4  ;;  %v2596_v55 = vrot.slane %v2448_v23, 4  ;;  %v2599_v39 = vsel %vm531_vm2, %v2448_v23, %v2598_v54 }
 0x440   : > { %v2591_v52 = vperm.slane %v2585_v20, %v3825_v25  ;;  %v2607_v12 = vperm.slane %v2599_v39, %v3825_v25 }
 0x441   : > { %v2587_v8 = vsel %vm531_vm2, %v2429_v16, %v2586_v59  ;;  %v2597_v49 = vsel %vm531_vm2, %v2596_v55, %v2410_v63 }
 0x442   : > { %v2595_v13 = vperm.slane %v2587_v8, %v3825_v25  ;;  %v2610_v0 = vrot.slane %v2591_v52, 4  ;;  %v2603_v10 = vperm.slane %v2597_v49, %v3825_v25  ;;  %v2620_v44 = vrot.slane %v2607_v12, 4 }
 0x444   : > { %v2622_v60 = vrot.slane %v2595_v13, 4  ;;  %v2608_v5 = vrot.slane %v2603_v10, 4  ;;  %v2611_v15 = vsel %vm531_vm2, %v2603_v10, %v2610_v0  ;;  %v2621_v33 = vsel %vm531_vm2, %v2620_v44, %v2595_v13 }
 0x445   : > { %v2619_v51 = vperm.slane %v2611_v15, %v3843_v46  ;;  %v2627_v37 = vperm.slane %v2621_v33, %v3843_v46 }
 0x446   : > { %v2609_v24 = vsel %vm531_vm2, %v2608_v5, %v2591_v52  ;;  %v2623_v41 = vsel %vm531_vm2, %v2607_v12, %v2622_v60  ;;  %v2393_v31 = vpop.f32.mrf.mxu2  ;;  %v2450_v2 = vpop.f32.mrf.mxu1 }
 0x447   : > { %v2615_v29 = vperm.slane %v2609_v24, %v3843_v46  ;;  %v2631_v53 = vperm.slane %v2623_v41, %v3843_v46  ;;  %v2634_v50 = vrot.slane %v2619_v51, 4  ;;  %v2636_v22 = vrot.slane %v2627_v37, 4 }
 0x449   : > { %v2632_v36 = vrot.slane %v2615_v29, 4  ;;  %v2635_v19 = vsel %vm531_vm2, 0.0, %v2634_v50  ;;  %v2638_v14 = vrot.slane %v2631_v53, 4  ;;  %v2750_v38 = vsel %vm531_vm2, %v2634_v50, %v2615_v29 }
 0x44a   : > { %v2755_v42 = vrot.slane %v2635_v19, 4  ;;  %v2754_v34 = vperm.slane %v2750_v38, %v3825_v25  ;;  %v2637_v45 = vsel %vm531_vm2, 0.0, %v2636_v22 }
 0x44b   : > { %v2633_v26 = vsel %vm531_vm2, 0.0, %v2632_v36  ;;  %v2639_v27 = vsel %vm531_vm2, 0.0, %v2638_v14  ;;  %v2761_v30 = vsel %vm531_vm2, %v2638_v14, %v2627_v37 }
 0x44c   : > { %v2765_v3 = vperm.slane %v2761_v30, %v3825_v25  ;;  %v2766_v61 = vrot.slane %v2639_v27, 4  ;;  %v2756_v4 = vsel %vm531_vm2, %v2755_v42, %v2633_v26  ;;  %v2774_v47 = vrot.slane %v2754_v34, 4 }
 0x44d   : > { %v2760_v35 = vperm.slane %v2756_v4, %v3825_v25 }
 0x44e   : > { %v2767_v28 = vsel %vm531_vm2, %v2766_v61, %v2637_v45  ;;  %v2786_v11 = vrot.slane %v2765_v3, 4 }
 0x44f   : > { %v2771_v32 = vperm.slane %v2767_v28, %v3825_v25  ;;  %v2775_v57 = vsel %vm531_vm2, %v2760_v35, %v2774_v47  ;;  %v2772_v58 = vrot.slane %v2760_v35, 4  ;;  %v2505_v62 = vpop.f32.mrf.mxu0 }
 0x450   : > { %v2783_v63 = vperm.slane %v2775_v57, %v3843_v46  ;;  %v2640_v33 = vrot.slane %v2505_v62, 4 }
 0x451   : > { %v2524_v7 = vpop.f32.mrf.mxu1  ;;  %v2787_v16 = vsel %vm531_vm2, %v2771_v32, %v2786_v11  ;;  %v2773_v1 = vsel %vm531_vm2, %v2772_v58, %v2754_v34  ;;  %v2784_v54 = vrot.slane %v2771_v32, 4 }
 0x452   : > { %v2795_v17 = vperm.slane %v2787_v16, %v3843_v46  ;;  %v2802_v9 = vrot.slane %v2783_v63, 4  ;;  %v2779_v23 = vperm.slane %v2773_v1, %v3843_v46  ;;  %v2652_v24 = vrot.slane %v2524_v7, 4 }
 0x453   : > { %v2785_v20 = vsel %vm531_vm2, %v2784_v54, %v2765_v3 }
 0x454   : > { %v2803_v59 = vsel %vm531_vm2, %v2795_v17, %v2802_v9  ;;  %v2800_v55 = vrot.slane %v2795_v17, 4  ;;  %v2791_v39 = vperm.slane %v2785_v20, %v3843_v46  ;;  %v2798_v52 = vrot.slane %v2779_v23, 4 }
 0x455   : > { %v3557_v12 = vpack.i.bf16 %v2803_v59, %v4673_v6 }
 0x456   : > { %v2801_v8 = vsel %vm531_vm2, %v2800_v55, %v2783_v63  ;;  %v2796_v49 = vrot.slane %v2791_v39, 4  ;;  %v2799_v13 = vsel %vm531_vm2, %v2791_v39, %v2798_v52 }
 0x457   : > { %3558 = vrot.lane.b32.xlu2 %v3557_v12, %s3695_s19  ;;  %v3552_v0 = vpack.i.bf16 %v2801_v8, %v4676_v21  ;;  %v3547_v10 = vpack.i.bf16 %v2799_v13, %v4679_v56  ;;  %v2507_v60 = vpop.f32.mrf.mxu0 }
 0x458   : > { %v2467_v44 = vpop.f32.mrf.mxu2  ;;  %v4739_v5 = vsel %vm531_vm2, %v2796_v49, %v2779_v23 }
 0x459   : > { %3553 = vrot.lane.b32.xlu1 %v3552_v0, %s3696_s20  ;;  %3548 = vrot.lane.b32.xlu0 %v3547_v10, %s3697_s21  ;;  %v2526_v6 = vpop.f32.mrf.mxu1  ;;  %v2642_v51 = vrot.slane %v2467_v44, 4  ;;  %v2641_v37 = vsel %vm531_vm2, %v2640_v33, %v2467_v44 }
 0x45a   : > { %v2647_v56 = vperm.slane %v2641_v37, %v3825_v25 }
 0x45b   : > { %v2643_v21 = vsel %vm531_vm2, %v2505_v62, %v2642_v51 }
 0x45c   : > { %v2651_v41 = vperm.slane %v2643_v21, %v3825_v25  ;;  %v2666_v53 = vrot.slane %v2647_v56, 4 }
 0x45e   : > { %v2678_v19 = vrot.slane %v2651_v41, 4 }
 0x460   : > { %v2469_v15 = vpop.f32.mrf.mxu2 }
 0x484   : > { %v2486_v31 = vpop.f32.mrf.mxu3 }
 0x485   : > { %v2653_v2 = vsel %vm531_vm2, %v2652_v24, %v2486_v31  ;;  %v2654_v29 = vrot.slane %v2486_v31, 4  ;;  %v3429_v31 = vld [vmem:[%s426_s25 + $0x8] sm:$0xff] }
 0x486   : > { %v2659_v50 = vperm.slane %v2653_v2, %v3825_v25  ;;  %2930 = vmatpush.bf16.msra.mxu2 %v3429_v31  ;;  %v3428_v2 = vld [vmem:[%s426_s25] sm:$0xff]  ;;  %s432_s25 = scalar_lea.vmem %s4954_s5, %s3799_s29  ;;  %s3433_s29 = sshll.u32 %s3678_s13, 5 }
 0x487   : > { %v2655_v36 = vsel %vm531_vm2, %v2524_v7, %v2654_v29  ;;  %s441_s27 = scalar_lea.vmem %s4956_s7, %s3433_s29  ;;  %s3699_s13 = smov 32  }
 0x488   : > { %v2663_v22 = vperm.slane %v2655_v36, %v3825_v25  ;;  %v2664_v14 = vrot.slane %v2659_v50, 4  ;;  %v2667_v38 = vsel %vm531_vm2, %v2659_v50, %v2666_v53  ;;  %s3219_s29 = sshll.u32 %s4958_s9, 4  ;;  %s3220_s29 = int_to_ptr.hbm [resolvable:$true] %s3219_s29 }
 0x489   : > { %v2675_v42 = vperm.slane %v2667_v38, %v3843_v46 }
 0x48a   : > { %v2665_v26 = vsel %vm531_vm2, %v2664_v14, %v2647_v56  ;;  %v2676_v27 = vrot.slane %v2663_v22, 4  ;;  %v2679_v34 = vsel %vm531_vm2, %v2663_v22, %v2678_v19  ;;  %2931 = vmatpush.bf16.msra.mxu2 %v3428_v2  ;;  %v4820_v2 = vmul.f32 0.25, %v4693_v40 }
 0x48b   : > { %v2671_v30 = vperm.slane %v2665_v26, %v3843_v46  ;;  %v2687_v3 = vperm.slane %v2679_v34, %v3843_v46  ;;  %v2690_v61 = vrot.slane %v2675_v42, 4 }
 0x48c   : > { %v2677_v4 = vsel %vm531_vm2, %v2676_v27, %v2651_v41  ;;  %v2488_v45 = vpop.f32.mrf.mxu3 }
 0x48d   : > { %v2683_v35 = vperm.slane %v2677_v4, %v3843_v46  ;;  %v2688_v47 = vrot.slane %v2671_v30, 4  ;;  %v2691_v28 = vsel %vm531_vm2, 0.0, %v2690_v61  ;;  %v2694_v11 = vrot.slane %v2687_v3, 4 }
 0x48e   : > { %v2804_v32 = vsel %vm531_vm2, %v2690_v61, %v2671_v30  ;;  %v2809_v57 = vrot.slane %v2691_v28, 4 }
 0x48f   : > { %v2689_v58 = vsel %vm531_vm2, 0.0, %v2688_v47  ;;  %v2692_v62 = vrot.slane %v2683_v35, 4  ;;  %v2695_v63 = vsel %vm531_vm2, 0.0, %v2694_v11  ;;  %v2808_v7 = vperm.slane %v2804_v32, %v3825_v25  ;;  %v4807_v32 = vld [vmem:[%s450_s30] sm:$0x3f] }
 0x490   : > { %v2820_v16 = vrot.slane %v2695_v63, 4  ;;  %v2810_v1 = vsel %vm531_vm2, %v2809_v57, %v2689_v58  ;;  %v2815_v54 = vsel %vm531_vm2, %v2694_v11, %v2683_v35  ;;  %v2905_v57 = vperm.slane %v4807_v32, 0  ;;  %v3629_v63 = vld [vmem:[#allocation2] sm:$0xff] }
 0x491   : > { %v2693_v17 = vsel %vm531_vm2, 0.0, %v2692_v62  ;;  %v2814_v9 = vperm.slane %v2810_v1, %v3825_v25  ;;  %v2819_v23 = vperm.slane %v2815_v54, %v3825_v25  ;;  %v2828_v20 = vrot.slane %v2808_v7, 4 }
 0x492   : > { %v2821_v59 = vsel %vm531_vm2, %v2820_v16, %v2693_v17  ;;  %v3630_v17 = vld [vmem:[#allocation2 + $0x8] sm:$0xff] }
 0x493   : > { %v2825_v55 = vperm.slane %v2821_v59, %v3825_v25  ;;  %v2840_v39 = vrot.slane %v2819_v23, 4  ;;  %v2826_v52 = vrot.slane %v2814_v9, 4  ;;  %v2829_v12 = vsel %vm531_vm2, %v2814_v9, %v2828_v20 }
 0x494   : > { %v2837_v44 = vperm.slane %v2829_v12, %v3843_v46 }
 0x495   : > { %v2841_v8 = vsel %vm531_vm2, %v2825_v55, %v2840_v39  ;;  %v2838_v49 = vrot.slane %v2825_v55, 4  ;;  %v2827_v0 = vsel %vm531_vm2, %v2826_v52, %v2808_v7  ;;  %v3631_v55 = vld [vmem:[#allocation2 + $0x10] sm:$0xff] }
 0x496   : > { %v2849_v13 = vperm.slane %v2841_v8, %v3843_v46  ;;  %v2833_v33 = vperm.slane %v2827_v0, %v3843_v46  ;;  %v2856_v24 = vrot.slane %v2837_v44, 4  ;;  %v3698_v8 = vmov 32.0  }
 0x497   : > { %v2839_v10 = vsel %vm531_vm2, %v2838_v49, %v2819_v23  ;;  %3615 = vrcp.f32 %v3698_v8 }
 0x498   : > { %v2854_v60 = vrot.slane %v2849_v13, 4  ;;  %v2845_v6 = vperm.slane %v2839_v10, %v3843_v46  ;;  %v2852_v21 = vrot.slane %v2833_v33, 4  ;;  %v2857_v41 = vsel %vm531_vm2, %v2849_v13, %v2856_v24 }
 0x49a   : > { %v2855_v15 = vsel %vm531_vm2, %v2854_v60, %v2837_v44  ;;  %v2850_v51 = vrot.slane %v2845_v6, 4  ;;  %v2853_v56 = vsel %vm531_vm2, %v2845_v6, %v2852_v21 }
 0x49b   : > { %2877 = vrot.lane.b32.xlu0 %v2855_v15, %s3696_s20 }
 0x49c   : > { %v2851_v37 = vsel %vm531_vm2, %v2850_v51, %v2833_v33 }
 0x49d   : > { %v3616_v49 = vpop.eup %3615 }
 0x49e   : > { %v2955_v13 = vmul.f32 32.0, %v3616_v49  ;;  %vm2959_vm6 = vweird.f32 %v3616_v49 }
 0x4a0   : > { %v2956_v0 = vsub.f32 1.0, %v2955_v13 }
 0x4a2   : > { %v2957_v10 = vmul.f32 %v3616_v49, %v2956_v0 }
 0x4a3   : > { %2865 = vrot.lane.b32.xlu0 %v2853_v56, %s3697_s21 }
 0x4a4   : > { %v2958_v44 = vadd.f32 %v3616_v49, %v2957_v10 }
 0x4a6   : > { %v4813_v60 = vsel %vm2959_vm6, %v3616_v49, %v2958_v44 }
 0x4ab   : > { %2889 = vrot.lane.b32.xlu0 %v2857_v41, %s3695_s19 }
 0x4b1   : > { %v3559_v29 = vpop.permute.xlu2 %3558 }
 0x4b2   : > { %v3561_v38 = vunpack.i.h.bf16 %v3559_v29  ;;  %v3560_v42 = vunpack.i.l.bf16 %v3559_v29 }
 0x4cb   : > { %v3554_v53 = vpop.permute.xlu1 %3553  ;;  %v3549_v50 = vpop.permute.xlu0 %3548 }
 0x4cc   : > { %v3551_v36 = vunpack.i.h.bf16 %v3549_v50  ;;  %v3550_v19 = vunpack.i.l.bf16 %v3549_v50  ;;  %v3556_v22 = vunpack.i.h.bf16 %v3554_v53  ;;  %v3555_v14 = vunpack.i.l.bf16 %v3554_v53 }
 0x4cd   : > { %v2191_v50 = vrot.slane %v4820_v2, 4 }
 0x4ce   : > { %v2894_v26 = vsel %vm1629_vm3, %v4683_v43, %v3550_v19  ;;  %v2895_v27 = vsel %vm1629_vm3, %v4739_v5, %v3551_v36  ;;  %v4825_v36 = vmul.f32 0.25, %v4424_v48 }
 0x4cf   : > { %v2897_v34 = vsel %vm2274_vm0, %v2894_v26, %v3555_v14  ;;  %v2898_v30 = vsel %vm2274_vm0, %v2895_v27, %v3556_v22 }
 0x4d0   : > { %v2900_v3 = vsel %vm2276_vm5, %v2897_v34, %v3560_v42  ;;  %v2901_v61 = vsel %vm2276_vm5, %v2898_v30, %v3561_v38  ;;  %v2192_v14 = vsel %vm531_vm2, %v2191_v50, %v4825_v36  ;;  %v4838_v42 = vmul.f32 0.25, %v4573_v18  ;;  %v3437_v50 = vld [vmem:[%s441_s27 + $0x18] sm:$0xff] }
 0x4d1   : > { %v2903_v4 = vpack.c.bf16 %v2901_v61, %v2900_v3  ;;  %v4835_v38 = vperm.slane %v2192_v14, %v3825_v25  ;;  %3108 = vmatpush.bf16.msra.mxu0 %v3437_v50  ;;  %v3435_v14 = vld [vmem:[%s441_s27 + $0x8] sm:$0xff] }
 0x4d2   : > { %v4843_v26 = vperm.slane %v4838_v42, %v3825_v25 }
 0x4d3   : > { %3390 = vmatmul.msk.bf16.vlgmr.msra.gmra.mxu2 %vm475_vm1, %v2903_v4  ;;  %v2215_v48 = vrot.slane %v4835_v38, 4 }
 0x4d5   : > { %v2216_v27 = vsel %vm531_vm2, %v4843_v26, %v2215_v48  ;;  %v3566_v48 = vld [vmem:[%s437_s18] ss:$0 sm:$0xff]  ;;  %s3703_s18 = smov [#allocation2]  }
 0x4d6   : > { %v4848_v34 = vperm.slane %v2216_v27, %v3843_v46  ;;  %s3217_s23 = sshll.u32 %s3703_s18, 4  ;;  %s3218_s23 = int_to_ptr.vmem [resolvable:$true] %s3217_s23 }
 0x4d8   : > { %v2239_v30 = vrot.slane %v4848_v34, 4 }
 0x4da   : > { %v2240_v18 = vsel %vm531_vm2, 0.0, %v2239_v30 }
 0x50d   : > { %v2878_v45 = vpop.permute.xlu0 %2877 }
 0x515   : > { %v2866_v35 = vpop.permute.xlu0 %2865 }
 0x516   : > { %v2896_v47 = vsel %vm1629_vm3, %v2851_v37, %v2866_v35  ;;  %v3431_v35 = vld [vmem:[%s432_s25] sm:$0xff] }
 0x517   : > { %v2899_v28 = vsel %vm2274_vm0, %v2896_v47, %v2878_v45  ;;  %v3432_v45 = vld [vmem:[%s432_s25 + $0x8] sm:$0xff] }
 0x518   : > { %3055 = vmatpush.bf16.msra.mxu3 %v3432_v45 }
 0x51c   : > { %3056 = vmatpush.bf16.msra.mxu3 %v3431_v35 }
 0x51d   : > { %v2890_v43 = vpop.permute.xlu0 %2889 }
 0x51e   : > { %v2902_v5 = vsel %vm2276_vm5, %v2899_v28, %v2890_v43 }
 0x51f   : > { %v2904_v11 = vpack.c.bf16 %v2902_v5, %v2902_v5 }
 0x521   : > { %3391 = vmatmul.msk.bf16.gmra.mxu2 %vm475_vm1, %v2904_v11 }
 0x556   : > { %v2933_v58 = vpop.f32.mrf.mxu2 }
 0x557   : > { %v2934_v62 = vadd.f32 %v2933_v58, %v2905_v57 }
 0x559   : > { %v2942_v7 = vadd.f32 %v3629_v63, %v2934_v62 }
 0x55b   : > { %v2945_v16 = vsel %vm475_vm1, %v2942_v7, 0.0 }
 0x55c   : > { %2946 = vadd.xlane.f32.xlu1 %v2945_v16 }
 0x55e   : > { %v2935_v1 = vpop.f32.mrf.mxu2 }
 0x55f   : > { %v2936_v54 = vadd.f32 %v2935_v1, %v2905_v57 }
 0x561   : > { %v2943_v9 = vadd.f32 %v3630_v17, %v2936_v54 }
 0x563   : > { %v2948_v23 = vsel %vm475_vm1, %v2943_v9, 0.0 }
 0x564   : > { %2949 = vadd.xlane.f32.xlu2 %v2948_v23  ;;  %v3018_v23 = vperm.slane %v4807_v32, 2 }
 0x5a4   : > { %v2938_v20 = vpop.f32.mrf.mxu2 }
 0x5a5   : > { %v2939_v59 = vadd.f32 %v2938_v20, %v2905_v57 }
 0x5a7   : > { %v2944_v39 = vadd.f32 %v3631_v55, %v2939_v59 }
 0x5a9   : > { %v2951_v52 = vsel %vm475_vm1, %v2944_v39, 0.0 }
 0x5aa   : > { %2952 = vadd.xlane.f32.xlu0 %v2951_v52 }
 0x5ac   : > { %v2940_v12 = vpop.f32.mrf.mxu2 }
 0x5cf   : > { %v2947_v6 = vpop.xlane.xlu1 %2946 }
 0x5d0   : > { %v2961_v15 = vmul.f32 %v4813_v60, %v2947_v6 }
 0x5d2   : > { %v2964_v33 = vsub.f32 %v2942_v7, %v2961_v15 }
 0x5d4   : > { %v2967_v51 = vmul.f32 %v2964_v33, %v2964_v33 }
 0x5d6   : > { %v2970_v37 = vsel %vm475_vm1, %v2967_v51, 0.0 }
 0x5d7   : > { %v2950_v21 = vpop.xlane.xlu2 %2949  ;;  %2971 = vadd.xlane.f32.xlu1 %v2970_v37 }
 0x5d8   : > { %v2962_v56 = vmul.f32 %v4813_v60, %v2950_v21 }
 0x5da   : > { %v2965_v24 = vsub.f32 %v2943_v9, %v2962_v56 }
 0x5dc   : > { %v2968_v41 = vmul.f32 %v2965_v24, %v2965_v24 }
 0x5de   : > { %v2973_v31 = vsel %vm475_vm1, %v2968_v41, 0.0 }
 0x5df   : > { %2974 = vadd.xlane.f32.xlu2 %v2973_v31 }
 0x61d   : > { %v2953_v29 = vpop.xlane.xlu0 %2952 }
 0x61e   : > { %v2963_v53 = vmul.f32 %v4813_v60, %v2953_v29 }
 0x620   : > { %v4827_v19 = vsub.f32 %v2944_v39, %v2963_v53  ;;  %v3022_v39 = vperm.slane %v4807_v32, 3 }
 0x622   : > { %v2969_v22 = vmul.f32 %v4827_v19, %v4827_v19 }
 0x624   : > { %v2976_v40 = vsel %vm475_vm1, %v2969_v22, 0.0  ;;  %v3436_v22 = vld [vmem:[%s441_s27 + $0x10] sm:$0xff] }
 0x625   : > { %2977 = vadd.xlane.f32.xlu0 %v2976_v40  ;;  %3109 = vmatpush.bf16.msra.mxu0 %v3436_v22  ;;  %v3434_v40 = vld [vmem:[%s441_s27] sm:$0xff] }
 0x629   : > { %3110 = vmatpush.bf16.msra.mxu0 %v3435_v14 }
 0x62d   : > { %3111 = vmatpush.bf16.msra.mxu0 %v3434_v40 }
 0x639   : > { %2254 = vrot.lane.b32.xlu0 %v2240_v18, %s3695_s19  ;;  %s3704_s19 = smov 128  }
 0x64a   : > { %v2972_v3 = vpop.xlane.xlu1 %2971 }
 0x64b   : > { %v2979_v61 = vmul.f32 %v2972_v3, %v4813_v60 }
 0x64d   : > { %v2982_v4 = vadd.f32 1e-05, %v2979_v61 }
 0x64f   : > { %3617 = vrsqrt.f32 %v2982_v4  ;;  %vm2991_vm8 = vweird.f32 %v2982_v4 }
 0x652   : > { %v2975_v47 = vpop.xlane.xlu2 %2974 }
 0x653   : > { %v2980_v43 = vmul.f32 %v2975_v47, %v4813_v60 }
 0x655   : > { %v3618_v28 = vpop.eup %3617  ;;  %v2983_v5 = vadd.f32 1e-05, %v2980_v43 }
 0x656   : > { %v2986_v11 = vmul.f32 %v3618_v28, %v2982_v4  ;;  %vm2992_vm7 = vweird.f32 %v3618_v28 }
 0x657   : > { %3619 = vrsqrt.f32 %v2983_v5  ;;  %vm2993_vm9 = vmor %vm2991_vm8, %vm2992_vm7  ;;  %vm3001_vm11 = vweird.f32 %v2983_v5 }
 0x658   : > { %v2987_v57 = vmul.f32 %v3618_v28, %v2986_v11 }
 0x65a   : > { %v2988_v58 = vmul.f32 0.5, %v2987_v57 }
 0x65c   : > { %v2989_v62 = vsub.f32 1.5, %v2988_v58 }
 0x65d   : > { %v3620_v63 = vpop.eup %3619 }
 0x65e   : > { %v2990_v7 = vmul.f32 %v3618_v28, %v2989_v62  ;;  %v2996_v16 = vmul.f32 %v3620_v63, %v2983_v5  ;;  %vm3002_vm10 = vweird.f32 %v3620_v63  ;;  %v3072_v5 = vperm.slane %v4807_v32, 1 }
 0x65f   : > { %vm3003_vm12 = vmor %vm3001_vm11, %vm3002_vm10  ;;  %vm2279_vm11 = vcmask 326656  }
 0x660   : > { %v2997_v1 = vmul.f32 %v3620_v63, %v2996_v16  ;;  %v2994_v54 = vsel %vm2993_vm9, %v3618_v28, %v2990_v7 }
 0x661   : > { %v3015_v20 = vmul.f32 %v2994_v54, %v2964_v33  ;;  %v2213_v54 = vrot.slane %v4843_v26, 4 }
 0x662   : > { %v2998_v17 = vmul.f32 0.5, %v2997_v1 }
 0x663   : > { %v3019_v52 = vmul.f32 %v3018_v23, %v3015_v20 }
 0x664   : > { %v2999_v9 = vsub.f32 1.5, %v2998_v17  ;;  %v2214_v17 = vsel %vm531_vm2, %v2213_v54, %v4835_v38  ;;  %v2203_v38 = vrot.slane %v4838_v42, 4 }
 0x665   : > { %v3023_v49 = vadd.f32 %v3022_v39, %v3019_v52 }
 0x666   : > { %v3000_v59 = vmul.f32 %v3620_v63, %v2999_v9  ;;  %v4885_v9 = vperm.slane %v2214_v17, %v3843_v46 }
 0x668   : > { %v3004_v55 = vsel %vm3003_vm12, %v3620_v63, %v3000_v59  ;;  %vm2281_vm12 = vcmask 392192  }
 0x669   : > { %v3016_v12 = vmul.f32 %v3004_v55, %v2965_v24 }
 0x66b   : > { %v3020_v8 = vmul.f32 %v3018_v23, %v3016_v12  ;;  %v2193_v12 = vrot.slane %v4825_v36, 4 }
 0x66d   : > { %v3024_v13 = vadd.f32 %v3022_v39, %v3020_v8  ;;  %v2204_v8 = vsel %vm531_vm2, 0.0, %v2203_v38 }
 0x66f   : > { %v3026_v0 = vpack.c.bf16 %v3024_v13, %v3023_v49 }
 0x671   : > { %3400 = vmatmul.msk.bf16.vlgmr.msra.gmra.mxu3 %vm475_vm1, %v3026_v0 }
 0x698   : > { %v2978_v10 = vpop.xlane.xlu0 %2977 }
 0x699   : > { %v2981_v44 = vmul.f32 %v2978_v10, %v4813_v60 }
 0x69b   : > { %v2984_v6 = vadd.f32 1e-05, %v2981_v44 }
 0x69d   : > { %3621 = vrsqrt.f32 %v2984_v6  ;;  %vm3011_vm13 = vweird.f32 %v2984_v6 }
 0x6a3   : > { %v3622_v15 = vpop.eup %3621 }
 0x6a4   : > { %v3006_v33 = vmul.f32 %v3622_v15, %v2984_v6  ;;  %vm3012_vm4 = vweird.f32 %v3622_v15 }
 0x6a5   : > { %vm3013_vm14 = vmor %vm3011_vm13, %vm3012_vm4  ;;  %vm2283_vm4 = vcmask 457728   ;;  %vm2285_vm13 = vcmask 518144  }
 0x6a6   : > { %v3007_v51 = vmul.f32 %v3622_v15, %v3006_v33 }
 0x6a8   : > { %v3008_v37 = vmul.f32 0.5, %v3007_v51 }
 0x6aa   : > { %v3009_v21 = vsub.f32 1.5, %v3008_v37 }
 0x6ac   : > { %v3010_v56 = vmul.f32 %v3622_v15, %v3009_v21 }
 0x6ae   : > { %v3014_v24 = vsel %vm3013_vm14, %v3622_v15, %v3010_v56 }
 0x6af   : > { %v3017_v41 = vmul.f32 %v3014_v24, %v4827_v19 }
 0x6b1   : > { %v3021_v31 = vmul.f32 %v3018_v23, %v3017_v41  ;;  %v2237_v23 = vrot.slane %v4885_v9, 4 }
 0x6b3   : > { %v3025_v29 = vadd.f32 %v3022_v39, %v3021_v31  ;;  %v2238_v20 = vsel %vm531_vm2, 0.0, %v2237_v23 }
 0x6b5   : > { %v3027_v53 = vpack.c.bf16 %v3025_v29, %v3025_v29 }
 0x6b7   : > { %3401 = vmatmul.msk.bf16.gmra.mxu3 %vm475_vm1, %v3027_v53  ;;  %v4909_v53 = vpop.permute.xlu0 %2254 }
 0x6f4   : > { %v3058_v19 = vpop.f32.mrf.mxu3 }
 0x6f5   : > { %v3059_v27 = vadd.f32 %v3566_v48, %v3058_v19 }
 0x6f7   : > { %v3067_v3 = vmax.f32 %v3059_v27, 0.0 }
 0x6fc   : > { %v3060_v30 = vpop.f32.mrf.mxu3 }
 0x6fd   : > { %v3061_v18 = vadd.f32 %v3566_v48, %v3060_v30 }
 0x6ff   : > { %v3068_v61 = vmax.f32 %v3061_v18, 0.0 }
 0x701   : > { %v3070_v4 = vpack.c.bf16 %v3068_v61, %v3067_v3 }
 0x703   : > { %3418 = vmatmul.msk.bf16.vlgmr.msra.gmra.mxu0 %vm3097_vm15, %v3070_v4 }
 0x73a   : > { %v3063_v45 = vpop.f32.mrf.mxu3 }
 0x73b   : > { %v3064_v35 = vadd.f32 %v3566_v48, %v3063_v45 }
 0x73d   : > { %v3069_v47 = vmax.f32 %v3064_v35, 0.0 }
 0x73f   : > { %v3071_v43 = vpack.c.bf16 %v3069_v47, %v3069_v47 }
 0x741   : > { %3419 = vmatmul.msk.bf16.gmra.mxu0 %vm3097_vm15, %v3071_v43 }
 0x742   : > { %v3065_v28 = vpop.f32.mrf.mxu3 }
 0x780   : > { %v3113_v11 = vpop.f32.mrf.mxu0 }
 0x781   : > { %v3114_v57 = vadd.f32 %v3113_v11, %v3072_v5 }
 0x783   : > { %v3122_v58 = vadd.f32 %v3114_v57, %v3023_v49  ;;  %v2194_v49 = vsel %vm531_vm2, %v4820_v2, %v2193_v12 }
 0x785   : > { %v3125_v62 = vsel %vm475_vm1, %v3122_v58, 0.0 }
 0x786   : > { %3126 = vadd.xlane.f32.xlu1 %v3125_v62 }
 0x788   : > { %v3115_v63 = vpop.f32.mrf.mxu0 }
 0x789   : > { %v3116_v7 = vadd.f32 %v3115_v63, %v3072_v5  ;;  %v3191_v63 = vperm.slane %v4807_v32, 4 }
 0x78b   : > { %v3123_v16 = vadd.f32 %v3116_v7, %v3024_v13  ;;  %v2212_v13 = vperm.slane %v2204_v8, %v3825_v25 }
 0x78d   : > { %v3128_v1 = vsel %vm475_vm1, %v3123_v16, 0.0  ;;  %v2225_v0 = vrot.slane %v2212_v13, 4 }
 0x78e   : > { %3129 = vadd.xlane.f32.xlu2 %v3128_v1  ;;  %v3195_v1 = vperm.slane %v4807_v32, 5 }
 0x79f   : > { %2246 = vrot.lane.b32.xlu1 %v2238_v20, %s3697_s21 }
 0x7a6   : > { %2250 = vrot.lane.b32.xlu2 %v4848_v34, %s3696_s20  ;;  %v2202_v34 = vperm.slane %v2194_v49, %v3825_v25  ;;  %s3700_s20 = smov 40  }
 0x7a8   : > { %v2226_v10 = vsel %vm531_vm2, %v2225_v0, %v2202_v34  ;;  %v2227_v24 = vrot.slane %v2202_v34, 4 }
 0x7a9   : > { %v2232_v44 = vperm.slane %v2226_v10, %v3843_v46 }
 0x7aa   : > { %v2228_v31 = vsel %vm531_vm2, %v2212_v13, %v2227_v24 }
 0x7ab   : > { %v2241_v56 = vrot.slane %v2232_v44, 4 }
 0x7ad   : > { %v2242_v41 = vsel %vm531_vm2, 0.0, %v2241_v56 }
 0x7be   : > { %v3118_v59 = vpop.f32.mrf.mxu0 }
 0x7bf   : > { %v3119_v55 = vadd.f32 %v3118_v59, %v3072_v5 }
 0x7c1   : > { %v3124_v39 = vadd.f32 %v3119_v55, %v3025_v29  ;;  %v2236_v29 = vperm.slane %v2228_v31, %v3843_v46 }
 0x7c3   : > { %v3131_v26 = vsel %vm475_vm1, %v3124_v39, 0.0  ;;  %v2243_v48 = vrot.slane %v2236_v29, 4 }
 0x7c4   : > { %3132 = vadd.xlane.f32.xlu0 %v3131_v26 }
 0x7c5   : > { %v2244_v27 = vsel %vm531_vm2, 0.0, %v2243_v48 }
 0x7c6   : > { %v3120_v52 = vpop.f32.mrf.mxu0 }
 0x7d8   : > { %2258 = vrot.lane.b32.xlu0 %v2232_v44, %s3699_s13 }
 0x7f9   : > { %v3127_v6 = vpop.xlane.xlu1 %3126 }
 0x7fa   : > { %v3134_v42 = vmul.f32 %v3127_v6, %v4813_v60 }
 0x7fc   : > { %v3137_v36 = vsub.f32 %v3122_v58, %v3134_v42 }
 0x7fe   : > { %v3140_v15 = vmul.f32 %v3137_v36, %v3137_v36 }
 0x800   : > { %v3143_v33 = vsel %vm475_vm1, %v3140_v15, 0.0 }
 0x801   : > { %v3130_v51 = vpop.xlane.xlu2 %3129  ;;  %3144 = vadd.xlane.f32.xlu1 %v3143_v33 }
 0x802   : > { %v3135_v2 = vmul.f32 %v3130_v51, %v4813_v60 }
 0x804   : > { %v3138_v37 = vsub.f32 %v3123_v16, %v3135_v2 }
 0x806   : > { %v3141_v25 = vmul.f32 %v3138_v37, %v3138_v37 }
 0x808   : > { %v3146_v21 = vsel %vm475_vm1, %v3141_v25, 0.0 }
 0x809   : > { %3147 = vadd.xlane.f32.xlu2 %v3146_v21  ;;  %v2251_v30 = vpop.permute.xlu2 %2250 }
 0x811   : > { %v2247_v46 = vpop.permute.xlu1 %2246 }
 0x812   : > { %v2273_v13 = vsel %vm1629_vm3, %v4885_v9, %v2247_v46 }
 0x813   : > { %v2275_v0 = vsel %vm2274_vm0, %v2273_v13, %v2251_v30 }
 0x814   : > { %v2277_v6 = vsel %vm2276_vm5, %v2275_v0, %v4909_v53 }
 0x81a   : > { %2262 = vrot.lane.b32.xlu1 %v2242_v41, %s3700_s20 }
 0x821   : > { %2266 = vrot.lane.b32.xlu2 %v2236_v29, %s3701_s11 }
 0x837   : > { %v3133_v50 = vpop.xlane.xlu0 %3132 }
 0x838   : > { %v3136_v22 = vmul.f32 %v3133_v50, %v4813_v60 }
 0x83a   : > { %v4912_v14 = vsub.f32 %v3124_v39, %v3136_v22 }
 0x83c   : > { %v3142_v40 = vmul.f32 %v4912_v14, %v4912_v14 }
 0x83e   : > { %v3149_v19 = vsel %vm475_vm1, %v3142_v40, 0.0 }
 0x83f   : > { %3150 = vadd.xlane.f32.xlu0 %v3149_v19 }
 0x84a   : > { %v2259_v12 = vpop.permute.xlu0 %2258 }
 0x853   : > { %2270 = vrot.lane.b32.xlu0 %v2244_v27, %s3702_s12 }
 0x874   : > { %v3145_v18 = vpop.xlane.xlu1 %3144 }
 0x875   : > { %v3152_v3 = vmul.f32 %v3145_v18, %v4813_v60 }
 0x877   : > { %v3155_v61 = vadd.f32 1e-05, %v3152_v3 }
 0x879   : > { %3623 = vrsqrt.f32 %v3155_v61  ;;  %vm3164_vm6 = vweird.f32 %v3155_v61 }
 0x87c   : > { %v3148_v4 = vpop.xlane.xlu2 %3147 }
 0x87d   : > { %v3153_v45 = vmul.f32 %v3148_v4, %v4813_v60 }
 0x87f   : > { %v3624_v35 = vpop.eup %3623  ;;  %v3156_v47 = vadd.f32 1e-05, %v3153_v45 }
 0x880   : > { %v3159_v43 = vmul.f32 %v3624_v35, %v3155_v61  ;;  %vm3165_vm2 = vweird.f32 %v3624_v35 }
 0x881   : > { %3625 = vrsqrt.f32 %v3156_v47  ;;  %vm3166_vm7 = vmor %vm3164_vm6, %vm3165_vm2  ;;  %vm3174_vm9 = vweird.f32 %v3156_v47 }
 0x882   : > { %v3160_v28 = vmul.f32 %v3624_v35, %v3159_v43 }
 0x884   : > { %v3161_v5 = vmul.f32 0.5, %v3160_v28  ;;  %v2267_v33 = vpop.permute.xlu2 %2266 }
 0x886   : > { %v3162_v11 = vsub.f32 1.5, %v3161_v5 }
 0x887   : > { %v3626_v57 = vpop.eup %3625 }
 0x888   : > { %v3163_v58 = vmul.f32 %v3624_v35, %v3162_v11  ;;  %v3169_v62 = vmul.f32 %v3626_v57, %v3156_v47  ;;  %vm3175_vm8 = vweird.f32 %v3626_v57 }
 0x889   : > { %vm3176_vm10 = vmor %vm3174_vm9, %vm3175_vm8 }
 0x88a   : > { %v3167_v7 = vsel %vm3166_vm7, %v3624_v35, %v3163_v58  ;;  %v3170_v16 = vmul.f32 %v3626_v57, %v3169_v62 }
 0x88b   : > { %v3188_v54 = vmul.f32 %v3167_v7, %v3137_v36  ;;  %v2278_v36 = vsel %vm475_vm1, %v2277_v6, %v2259_v12 }
 0x88c   : > { %v3171_v17 = vmul.f32 0.5, %v3170_v16  ;;  %v2263_v44 = vpop.permute.xlu1 %2262 }
 0x88d   : > { %v3192_v23 = vmul.f32 %v3191_v63, %v3188_v54  ;;  %v2280_v15 = vsel %vm2279_vm11, %v2278_v36, %v2263_v44 }
 0x88e   : > { %v3172_v20 = vsub.f32 1.5, %v3171_v17  ;;  %v2282_v9 = vsel %vm2281_vm12, %v2280_v15, %v2267_v33 }
 0x88f   : > { %v3196_v59 = vadd.f32 %v3195_v1, %v3192_v23 }
 0x890   : > { %v3173_v55 = vmul.f32 %v3626_v57, %v3172_v20 }
 0x891   : > { %3199 = vst.msk [vmem:[#allocation2] sm:$0xff] %vm475_vm1, %v3196_v59 }
 0x892   : > { %v3177_v39 = vsel %vm3176_vm10, %v3626_v57, %v3173_v55 }
 0x893   : > { %v3189_v26 = vmul.f32 %v3177_v39, %v3138_v37 }
 0x895   : > { %v3193_v52 = vmul.f32 %v3191_v63, %v3189_v26 }
 0x897   : > { %v3197_v38 = vadd.f32 %v3195_v1, %v3193_v52 }
 0x899   : > { %3200 = vst.msk [vmem:[#allocation2 + $0x8] sm:$0xff] %vm475_vm1, %v3197_v38 }
 0x8b2   : > { %v3151_v8 = vpop.xlane.xlu0 %3150 }
 0x8b3   : > { %v3154_v32 = vmul.f32 %v3151_v8, %v4813_v60 }
 0x8b5   : > { %v3157_v49 = vadd.f32 1e-05, %v3154_v32 }
 0x8b7   : > { %3627 = vrsqrt.f32 %v3157_v49  ;;  %vm3184_vm0 = vweird.f32 %v3157_v49 }
 0x8bd   : > { %v3628_v34 = vpop.eup %3627 }
 0x8be   : > { %v3179_v10 = vmul.f32 %v3628_v34, %v3157_v49  ;;  %vm3185_vm3 = vweird.f32 %v3628_v34 }
 0x8bf   : > { %vm3186_vm14 = vmor %vm3184_vm0, %vm3185_vm3 }
 0x8c0   : > { %v3180_v42 = vmul.f32 %v3628_v34, %v3179_v10 }
 0x8c2   : > { %v3181_v60 = vmul.f32 0.5, %v3180_v42 }
 0x8c4   : > { %v3182_v51 = vsub.f32 1.5, %v3181_v60 }
 0x8c5   : > { %v2271_v2 = vpop.permute.xlu0 %2270 }
 0x8c6   : > { %v3183_v37 = vmul.f32 %v3628_v34, %v3182_v51  ;;  %v2284_v25 = vsel %vm2283_vm4, %v2282_v9, %v2271_v2 }
 0x8c7   : > { %2286 = vst.msk [vmem:[%s3786_s22] sm:$0x7] %vm2285_vm13, %v2284_v25 }
 0x8c8   : > { %v3187_v21 = vsel %vm3186_vm14, %v3628_v34, %v3183_v37 }
 0x8c9   : > { %v3190_v56 = vmul.f32 %v3187_v21, %v4912_v14 }
 0x8cb   : > { %v3194_v24 = vmul.f32 %v3191_v63, %v3190_v56 }
 0x8cd   : > { %v3198_v41 = vadd.f32 %v3195_v1, %v3194_v24 }
 0x8cf   : > { %3201 = vst.msk [vmem:[#allocation2 + $0x10] sm:$0xff] %vm475_vm1, %v3198_v41 }
 0x8d0   : > { %3441 = dma.vmem_to_hbm [thread:$0]  (%p3444_p6), %s3218_s23, 384, %s3220_s29, [#allocation3], %s3704_s19, %s3704_s19, %s3697_s21  }
 0x8d1   : > { %3673 = dma.done.wait (%p3444_p6), [#allocation3], 384  }
 0x8d2   : > { %3675 = vsyncadd (%p3444_p6), [#allocation3], 4294966912 }
 0x8d3 PF: > { %s22_s15 = sadd.s32 1, %s3686_s15   ;;  %s4970_s13 = smov %s3682_s14 }
 0x8d4   : > { %p19_p7 = scmp.ge.s32.totalorder %s22_s15, 6   ;;  %s4971_s14 = smov %s4973_s17 }
 0x8d6   :  { %21 = sbr.rel (!%p19_p7) target bundleno = 2 (0x2), region = 110 }
 0x8db   :  { %3249 = vsyncpa [#allocation3], 1 }
 0x8dc   :  { %3251 = vsyncpa [#allocation3 + $0x1], 1 }

</bundles_post_ra>
